<compile_context>
chip_gen: v6e
topology: v6e:2x2x1
jax: 0.10.0
libtpu: 0.0.40
codegen_flags: <defaults>
</compile_context>

<pallas_src>
import jax
import jax.numpy as jnp
from jax.experimental import pallas as pl
from jax.experimental.pallas import tpu as pltpu

CLASS_NUM = 10

OCP = 128   # lane-padded output channels / classes (16 -> 128, 32 -> 128, 10 -> 128)
K1P = 32    # conv1 contraction pad: 5*5*1  = 25  -> 32 (bf16 sublane multiple)
K2P = 400   # conv2 contraction:     5*5*16 = 400 (already 16-aligned, no pad)


def _round_up(x, m):
    return (x + m - 1) // m * m


def _pick_batch_tile(B, bytes_per_image, target_bytes=1 << 20):
    """Batch tile: large enough to amortize ~0.35us/step overhead, small enough
    to keep per-step VMEM tiny (v5e 16 MiB / v7x 32 MiB scoped defaults) and to
    leave >= 2 grid steps for v7x megacore when B >= 2."""
    bt = max(1, min(B, target_bytes // max(bytes_per_image, 1)))
    if B >= 2:
        bt = min(bt, (B + 1) // 2)
    return bt


# ---------------------------------------------------------------------------
# Fused conv (im2col matmul) + 2x2 max-pool + bias + ReLU kernel
# ---------------------------------------------------------------------------
def _conv_relu_pool_kernel(patch_ref, w_ref, b_ref, out_ref):
    # patch_ref: (bt, 4, mpb, Kp) bf16 -- 4 = 2x2 pooling phases, mpb pooled pixels
    # w_ref:     (Kp, 128) bf16
    # b_ref:     (1, 128)  f32
    # out_ref:   (bt, mpb, 128) bf16
    bt, nf, mpb, kp = patch_ref.shape
    n = out_ref.shape[-1]
    p = patch_ref[...].reshape(bt * nf * mpb, kp)                 # leading-dim collapse (free)
    y = jnp.dot(p, w_ref[...], preferred_element_type=jnp.float32)  # MXU, f32 accumulate
    y = y.reshape(bt, nf, mpb, n)
    pooled = jnp.maximum(jnp.maximum(y[:, 0], y[:, 1]),
                         jnp.maximum(y[:, 2], y[:, 3]))           # pool first (4x less epilogue)
    out_ref[...] = jnp.maximum(pooled + b_ref[...], 0.0).astype(out_ref.dtype)


def conv5x5_relu_pool2(x_nhwc, w_prep, b_prep, *, kp, batch_tile=None):
    """5x5 'same' conv + bias + ReLU + MaxPool2d(2), fused in one kernel.

    x_nhwc: (B, H, W, Cin) bf16 (H, W even).
    w_prep: (kp, 128) bf16, rows ordered (dy, dx, cin), zero past 25*Cin.
    b_prep: (1, 128) f32, zero past the true OC.
    Returns (B, H//2, W//2, 128) bf16; channels past the true OC are exactly 0.
    """
    B, H, W, Cin = x_nhwc.shape
    KH = KW = 5
    PAD = 2
    K = KH * KW * Cin
    Ho, Wo = H // 2, W // 2
    mpb = Ho * Wo

    # im2col glue (tap-major, channel-minor to match w_prep); tiny at this model
    # size and entirely in bf16.
    xp = jnp.pad(x_nhwc, ((0, 0), (PAD, PAD), (PAD, PAD), (0, 0)))
    shifted = [xp[:, dy:dy + H, dx:dx + W, :] for dy in range(KH) for dx in range(KW)]
    patches = jnp.stack(shifted, axis=3).reshape(B, H, W, K)
    # Regroup by 2x2 pooling window, phase-major per image: (B, 4, Ho*Wo, K).
    patches = patches.reshape(B, Ho, 2, Wo, 2, K)
    patches = jnp.transpose(patches, (0, 2, 4, 1, 3, 5)).reshape(B, 4, mpb, K)

    bt = batch_tile or _pick_batch_tile(B, 4 * mpb * kp * 2)
    Bp = _round_up(B, bt)
    if (Bp, kp) != (B, K):
        patches = jnp.pad(patches, ((0, Bp - B), (0, 0), (0, 0), (0, kp - K)))

    out = pl.pallas_call(
        _conv_relu_pool_kernel,
        out_shape=jax.ShapeDtypeStruct((Bp, mpb, OCP), jnp.bfloat16),
        grid=(Bp // bt,),
        in_specs=[
            pl.BlockSpec((bt, 4, mpb, kp), lambda i: (i, 0, 0, 0)),
            pl.BlockSpec((kp, OCP), lambda i: (0, 0)),
            pl.BlockSpec((1, OCP), lambda i: (0, 0)),
        ],
        out_specs=pl.BlockSpec((bt, mpb, OCP), lambda i: (i, 0, 0)),
        compiler_params=pltpu.CompilerParams(dimension_semantics=("parallel",)),
    )(patches, w_prep, b_prep)
    return out[:B].reshape(B, Ho, Wo, OCP)


# ---------------------------------------------------------------------------
# Linear kernel (lane-dense, class dim padded to 128; Din = 1568 real features)
# ---------------------------------------------------------------------------
def _linear_kernel(x_ref, w_ref, b_ref, o_ref):
    o_ref[...] = (
        jnp.dot(x_ref[...], w_ref[...], preferred_element_type=jnp.float32)
        + b_ref[...]
    ).astype(o_ref.dtype)


def linear_lanepadded(x_bf16, w_prep, b_prep, *, batch_tile=None):
    """x: (B, Din) bf16.  w_prep: (Din, 128) bf16.  Returns (B, 128) f32."""
    B, Din = x_bf16.shape
    Dp = w_prep.shape[1]
    # Full-extent block at small B (no pad at all); 16-aligned tile otherwise.
    tb = batch_tile or min(B, 256)
    Bp = _round_up(B, tb)
    if Bp != B:
        x_bf16 = jnp.pad(x_bf16, ((0, Bp - B), (0, 0)))
    out = pl.pallas_call(
        _linear_kernel,
        out_shape=jax.ShapeDtypeStruct((Bp, Dp), jnp.float32),
        grid=(Bp // tb,),
        in_specs=[
            pl.BlockSpec((tb, Din), lambda i: (i, 0)),
            pl.BlockSpec((Din, Dp), lambda i: (0, 0)),
            pl.BlockSpec((1, Dp), lambda i: (0, 0)),
        ],
        out_specs=pl.BlockSpec((tb, Dp), lambda i: (i, 0)),
        compiler_params=pltpu.CompilerParams(dimension_semantics=("parallel",)),
    )(x_bf16, w_prep, b_prep)
    return out[:B]


# ---------------------------------------------------------------------------
# One-time parameter preparation (all layout / padding / bf16 cast hoisted here)
# ---------------------------------------------------------------------------
def prepare_params(params):
    def conv_w(w_oihw, kp):
        OC, Cin, KH, KW = w_oihw.shape
        K = KH * KW * Cin
        w2d = jnp.transpose(w_oihw, (2, 3, 1, 0)).reshape(K, OC)  # rows = (dy, dx, cin)
        return jnp.pad(w2d, ((0, kp - K), (0, OCP - OC))).astype(jnp.bfloat16)

    def vec_b(b):
        return jnp.pad(b, (0, OCP - b.shape[0])).reshape(1, OCP).astype(jnp.float32)

    # Linear weight: permute columns from torch's NCHW flatten (c*49 + h*7 + w)
    # to our NHWC flatten over the 32 real channels ((h*7 + w)*32 + c);
    # only the class dim is lane-padded to 128.
    wl = params["wl"]                                              # (10, 32*7*7)
    dout = wl.shape[0]
    wl_nhwc = jnp.transpose(wl.reshape(dout, 32, 7, 7), (2, 3, 1, 0))   # (7,7,32,10)
    w_lin = jnp.pad(wl_nhwc.reshape(7 * 7 * 32, dout),
                    ((0, 0), (0, OCP - dout))).astype(jnp.bfloat16)      # (1568, 128)

    return {
        "w1": conv_w(params["w1"], K1P), "b1": vec_b(params["b1"]),
        "w2": conv_w(params["w2"], K2P), "b2": vec_b(params["b2"]),
        "wl": w_lin, "bl": vec_b(params["bl"]),
    }


# ---------------------------------------------------------------------------
# Full forward pass (matches PyTorch CNN.forward, inference mode)
# ---------------------------------------------------------------------------
def cnn_forward(x_nchw, prep):
    B = x_nchw.shape[0]
    x = jnp.transpose(x_nchw, (0, 2, 3, 1)).astype(jnp.bfloat16)          # NCHW -> NHWC, bf16 once
    x = conv5x5_relu_pool2(x, prep["w1"], prep["b1"], kp=K1P)             # (B,14,14,128) bf16
    # Dropout(0.5): identity at inference.
    x = conv5x5_relu_pool2(x[..., :16], prep["w2"], prep["b2"], kp=K2P)   # (B, 7, 7,128) bf16
    # Dropout(0.5): identity at inference.
    x = x[..., :32].reshape(B, 7 * 7 * 32)                                # NHWC flatten, (B,1568)
    logits = linear_lanepadded(x, prep["wl"], prep["bl"])                 # (B, 128) f32
    return logits[:, :CLASS_NUM]                                          # (B, 10)


# ---------------------------------------------------------------------------
# Deterministic synthetic parameters (PyTorch-layout shapes)
# ---------------------------------------------------------------------------
def init_params(key):
    ks = jax.random.split(key, 6)

    def u(k, shape, fan_in):
        bound = 1.0 / jnp.sqrt(jnp.float32(fan_in))
        return jax.random.uniform(k, shape, jnp.float32, -bound, bound)

    return {
        "w1": u(ks[0], (16, 1, 5, 5), 1 * 25),
        "b1": u(ks[1], (16,), 1 * 25),
        "w2": u(ks[2], (32, 16, 5, 5), 16 * 25),
        "b2": u(ks[3], (32,), 16 * 25),
        "wl": u(ks[4], (CLASS_NUM, 32 * 7 * 7), 32 * 7 * 7),
        "bl": u(ks[5], (CLASS_NUM,), 32 * 7 * 7),
    }


if __name__ == "__main__":
    key = jax.random.PRNGKey(0)
    pkey, xkey = jax.random.split(key)
    params = init_params(pkey)
    prep = prepare_params(params)          # one-time weight layout / padding / bf16
    # MNIST-like input implied by Linear(32*7*7, 10): (B, 1, 28, 28)
    x = jax.random.normal(xkey, (2, 1, 28, 28), jnp.float32)

    mu = jax.jit(cnn_forward)(x, prep)
    mu = jax.block_until_ready(mu)
    assert mu.shape == (2, CLASS_NUM) and mu.dtype == jnp.float32
    print("KERNEL_OK")
</pallas_src>

<mosaic_0001>
module attributes {stable_mosaic.version = 11 : i64} {
  func.func @_conv_relu_pool_kernel(%arg0: i32, %arg1: memref<1x4x196x32xbf16, #tpu.memory_space<vmem>>, %arg2: memref<32x128xbf16, #tpu.memory_space<vmem>>, %arg3: memref<1x128xf32, #tpu.memory_space<vmem>>, %arg4: memref<1x196x128xbf16, #tpu.memory_space<vmem>>) attributes {dimension_semantics = [#tpu.dimension_semantics<parallel>], iteration_bounds = array<i64: 2>, scalar_prefetch = 0 : i64, scratch_operands = 0 : i64, tpu.core_type = #tpu.core_type<tc>, window_params = [{transform_indices = @transform_0, window_bounds = array<i64: 1, 4, 196, 32>}, {pipeline_mode = #tpu.pipeline_mode<synchronous>, transform_indices = @transform_1, window_bounds = array<i64: 32, 128>}, {pipeline_mode = #tpu.pipeline_mode<synchronous>, transform_indices = @transform_2, window_bounds = array<i64: 1, 128>}, {transform_indices = @transform_3, window_bounds = array<i64: 1, 196, 128>}]} {
    %c0 = arith.constant 0 : index
    %c0_0 = arith.constant 0 : index
    %c0_1 = arith.constant 0 : index
    %c0_2 = arith.constant 0 : index
    %0 = vector.load %arg1[%c0, %c0_0, %c0_1, %c0_2] : memref<1x4x196x32xbf16, #tpu.memory_space<vmem>>, vector<1x4x196x32xbf16>
    %1 = vector.shape_cast %0 : vector<1x4x196x32xbf16> to vector<784x32xbf16>
    %c0_3 = arith.constant 0 : index
    %c0_4 = arith.constant 0 : index
    %2 = vector.load %arg2[%c0_3, %c0_4] : memref<32x128xbf16, #tpu.memory_space<vmem>>, vector<32x128xbf16>
    %cst = arith.constant dense<0.000000e+00> : vector<784x128xf32>
    %3 = tpu.matmul %1, %2, %cst {dimension_numbers = #tpu.dot_dimension_numbers<[1], [0], [0], [1], [0, 0, 1, 1], [], []>} : vector<784x32xbf16>, vector<32x128xbf16>, vector<784x128xf32> -> vector<784x128xf32>
    %4 = vector.shape_cast %3 : vector<784x128xf32> to vector<1x4x196x128xf32>
    %5 = vector.extract_strided_slice %4 {offsets = [0, 0, 0, 0], sizes = [1, 1, 196, 128], strides = [1, 1, 1, 1]} : vector<1x4x196x128xf32> to vector<1x1x196x128xf32>
    %6 = vector.shape_cast %5 : vector<1x1x196x128xf32> to vector<1x196x128xf32>
    %7 = vector.extract_strided_slice %4 {offsets = [0, 1, 0, 0], sizes = [1, 1, 196, 128], strides = [1, 1, 1, 1]} : vector<1x4x196x128xf32> to vector<1x1x196x128xf32>
    %8 = vector.shape_cast %7 : vector<1x1x196x128xf32> to vector<1x196x128xf32>
    %9 = arith.maximumf %6, %8 : vector<1x196x128xf32>
    %10 = vector.extract_strided_slice %4 {offsets = [0, 2, 0, 0], sizes = [1, 1, 196, 128], strides = [1, 1, 1, 1]} : vector<1x4x196x128xf32> to vector<1x1x196x128xf32>
    %11 = vector.shape_cast %10 : vector<1x1x196x128xf32> to vector<1x196x128xf32>
    %12 = vector.extract_strided_slice %4 {offsets = [0, 3, 0, 0], sizes = [1, 1, 196, 128], strides = [1, 1, 1, 1]} : vector<1x4x196x128xf32> to vector<1x1x196x128xf32>
    %13 = vector.shape_cast %12 : vector<1x1x196x128xf32> to vector<1x196x128xf32>
    %14 = arith.maximumf %11, %13 : vector<1x196x128xf32>
    %15 = arith.maximumf %9, %14 : vector<1x196x128xf32>
    %c0_5 = arith.constant 0 : index
    %c0_6 = arith.constant 0 : index
    %16 = vector.load %arg3[%c0_5, %c0_6] : memref<1x128xf32, #tpu.memory_space<vmem>>, vector<1x128xf32>
    %17 = vector.shape_cast %16 : vector<1x128xf32> to vector<1x1x128xf32>
    %18 = vector.broadcast %17 : vector<1x1x128xf32> to vector<1x196x128xf32>
    %19 = arith.addf %15, %18 : vector<1x196x128xf32>
    %cst_7 = arith.constant 0.000000e+00 : f32
    %20 = vector.broadcast %cst_7 : f32 to vector<1x196x128xf32>
    %21 = arith.maximumf %19, %20 : vector<1x196x128xf32>
    %22 = arith.truncf %21 : vector<1x196x128xf32> to vector<1x196x128xbf16>
    %c0_8 = arith.constant 0 : index
    %c0_9 = arith.constant 0 : index
    %c0_10 = arith.constant 0 : index
    %23 = vector.load %arg4[%c0_8, %c0_9, %c0_10] : memref<1x196x128xbf16, #tpu.memory_space<vmem>>, vector<1x196x128xbf16>
    tpu.vector_store %arg4[%c0_8, %c0_9, %c0_10], %22 {strides = array<i32>} : memref<1x196x128xbf16, #tpu.memory_space<vmem>>, vector<1x196x128xbf16>,
    return
  }
  func.func @transform_0(%arg0: i32) -> (i32, i32, i32, i32) {
    %c0_i32 = arith.constant 0 : i32
    %c0_i32_0 = arith.constant 0 : i32
    %c0_i32_1 = arith.constant 0 : i32
    %c0_i32_2 = arith.constant 0 : i32
    return %arg0, %c0_i32, %c0_i32_0, %c0_i32_1 : i32, i32, i32, i32
  }
  func.func @transform_1(%arg0: i32) -> (i32, i32) {
    %c0_i32 = arith.constant 0 : i32
    %c0_i32_0 = arith.constant 0 : i32
    %c0_i32_1 = arith.constant 0 : i32
    return %c0_i32, %c0_i32_0 : i32, i32
  }
  func.func @transform_2(%arg0: i32) -> (i32, i32) {
    %c0_i32 = arith.constant 0 : i32
    %c0_i32_0 = arith.constant 0 : i32
    %c0_i32_1 = arith.constant 0 : i32
    return %c0_i32, %c0_i32_0 : i32, i32
  }
  func.func @transform_3(%arg0: i32) -> (i32, i32, i32) {
    %c0_i32 = arith.constant 0 : i32
    %c0_i32_0 = arith.constant 0 : i32
    %c0_i32_1 = arith.constant 0 : i32
    return %arg0, %c0_i32, %c0_i32_0 : i32, i32, i32
  }
}

module attributes {stable_mosaic.version = 11 : i64} {
  func.func @_conv_relu_pool_kernel(%arg0: i32, %arg1: memref<1x4x49x400xbf16, #tpu.memory_space<vmem>>, %arg2: memref<400x128xbf16, #tpu.memory_space<vmem>>, %arg3: memref<1x128xf32, #tpu.memory_space<vmem>>, %arg4: memref<1x49x128xbf16, #tpu.memory_space<vmem>>) attributes {dimension_semantics = [#tpu.dimension_semantics<parallel>], iteration_bounds = array<i64: 2>, scalar_prefetch = 0 : i64, scratch_operands = 0 : i64, tpu.core_type = #tpu.core_type<tc>, window_params = [{transform_indices = @transform_0, window_bounds = array<i64: 1, 4, 49, 400>}, {pipeline_mode = #tpu.pipeline_mode<synchronous>, transform_indices = @transform_1, window_bounds = array<i64: 400, 128>}, {pipeline_mode = #tpu.pipeline_mode<synchronous>, transform_indices = @transform_2, window_bounds = array<i64: 1, 128>}, {transform_indices = @transform_3, window_bounds = array<i64: 1, 49, 128>}]} {
    %c0 = arith.constant 0 : index
    %c0_0 = arith.constant 0 : index
    %c0_1 = arith.constant 0 : index
    %c0_2 = arith.constant 0 : index
    %0 = vector.load %arg1[%c0, %c0_0, %c0_1, %c0_2] : memref<1x4x49x400xbf16, #tpu.memory_space<vmem>>, vector<1x4x49x400xbf16>
    %1 = vector.shape_cast %0 : vector<1x4x49x400xbf16> to vector<196x400xbf16>
    %c0_3 = arith.constant 0 : index
    %c0_4 = arith.constant 0 : index
    %2 = vector.load %arg2[%c0_3, %c0_4] : memref<400x128xbf16, #tpu.memory_space<vmem>>, vector<400x128xbf16>
    %cst = arith.constant dense<0.000000e+00> : vector<196x128xf32>
    %3 = tpu.matmul %1, %2, %cst {dimension_numbers = #tpu.dot_dimension_numbers<[1], [0], [0], [1], [0, 0, 1, 1], [], []>} : vector<196x400xbf16>, vector<400x128xbf16>, vector<196x128xf32> -> vector<196x128xf32>
    %4 = vector.shape_cast %3 : vector<196x128xf32> to vector<1x4x49x128xf32>
    %5 = vector.extract_strided_slice %4 {offsets = [0, 0, 0, 0], sizes = [1, 1, 49, 128], strides = [1, 1, 1, 1]} : vector<1x4x49x128xf32> to vector<1x1x49x128xf32>
    %6 = vector.shape_cast %5 : vector<1x1x49x128xf32> to vector<1x49x128xf32>
    %7 = vector.extract_strided_slice %4 {offsets = [0, 1, 0, 0], sizes = [1, 1, 49, 128], strides = [1, 1, 1, 1]} : vector<1x4x49x128xf32> to vector<1x1x49x128xf32>
    %8 = vector.shape_cast %7 : vector<1x1x49x128xf32> to vector<1x49x128xf32>
    %9 = arith.maximumf %6, %8 : vector<1x49x128xf32>
    %10 = vector.extract_strided_slice %4 {offsets = [0, 2, 0, 0], sizes = [1, 1, 49, 128], strides = [1, 1, 1, 1]} : vector<1x4x49x128xf32> to vector<1x1x49x128xf32>
    %11 = vector.shape_cast %10 : vector<1x1x49x128xf32> to vector<1x49x128xf32>
    %12 = vector.extract_strided_slice %4 {offsets = [0, 3, 0, 0], sizes = [1, 1, 49, 128], strides = [1, 1, 1, 1]} : vector<1x4x49x128xf32> to vector<1x1x49x128xf32>
    %13 = vector.shape_cast %12 : vector<1x1x49x128xf32> to vector<1x49x128xf32>
    %14 = arith.maximumf %11, %13 : vector<1x49x128xf32>
    %15 = arith.maximumf %9, %14 : vector<1x49x128xf32>
    %c0_5 = arith.constant 0 : index
    %c0_6 = arith.constant 0 : index
    %16 = vector.load %arg3[%c0_5, %c0_6] : memref<1x128xf32, #tpu.memory_space<vmem>>, vector<1x128xf32>
    %17 = vector.shape_cast %16 : vector<1x128xf32> to vector<1x1x128xf32>
    %18 = vector.broadcast %17 : vector<1x1x128xf32> to vector<1x49x128xf32>
    %19 = arith.addf %15, %18 : vector<1x49x128xf32>
    %cst_7 = arith.constant 0.000000e+00 : f32
    %20 = vector.broadcast %cst_7 : f32 to vector<1x49x128xf32>
    %21 = arith.maximumf %19, %20 : vector<1x49x128xf32>
    %22 = arith.truncf %21 : vector<1x49x128xf32> to vector<1x49x128xbf16>
    %c0_8 = arith.constant 0 : index
    %c0_9 = arith.constant 0 : index
    %c0_10 = arith.constant 0 : index
    %23 = vector.load %arg4[%c0_8, %c0_9, %c0_10] : memref<1x49x128xbf16, #tpu.memory_space<vmem>>, vector<1x49x128xbf16>
    tpu.vector_store %arg4[%c0_8, %c0_9, %c0_10], %22 {strides = array<i32>} : memref<1x49x128xbf16, #tpu.memory_space<vmem>>, vector<1x49x128xbf16>,
    return
  }
  func.func @transform_0(%arg0: i32) -> (i32, i32, i32, i32) {
    %c0_i32 = arith.constant 0 : i32
    %c0_i32_0 = arith.constant 0 : i32
    %c0_i32_1 = arith.constant 0 : i32
    %c0_i32_2 = arith.constant 0 : i32
    return %arg0, %c0_i32, %c0_i32_0, %c0_i32_1 : i32, i32, i32, i32
  }
  func.func @transform_1(%arg0: i32) -> (i32, i32) {
    %c0_i32 = arith.constant 0 : i32
    %c0_i32_0 = arith.constant 0 : i32
    %c0_i32_1 = arith.constant 0 : i32
    return %c0_i32, %c0_i32_0 : i32, i32
  }
  func.func @transform_2(%arg0: i32) -> (i32, i32) {
    %c0_i32 = arith.constant 0 : i32
    %c0_i32_0 = arith.constant 0 : i32
    %c0_i32_1 = arith.constant 0 : i32
    return %c0_i32, %c0_i32_0 : i32, i32
  }
  func.func @transform_3(%arg0: i32) -> (i32, i32, i32) {
    %c0_i32 = arith.constant 0 : i32
    %c0_i32_0 = arith.constant 0 : i32
    %c0_i32_1 = arith.constant 0 : i32
    return %arg0, %c0_i32, %c0_i32_0 : i32, i32, i32
  }
}

module attributes {stable_mosaic.version = 11 : i64} {
  func.func @_linear_kernel(%arg0: i32, %arg1: memref<2x1568xbf16, #tpu.memory_space<vmem>>, %arg2: memref<1568x128xbf16, #tpu.memory_space<vmem>>, %arg3: memref<1x128xf32, #tpu.memory_space<vmem>>, %arg4: memref<2x128xf32, #tpu.memory_space<vmem>>) attributes {dimension_semantics = [#tpu.dimension_semantics<parallel>], iteration_bounds = array<i64: 1>, scalar_prefetch = 0 : i64, scratch_operands = 0 : i64, tpu.core_type = #tpu.core_type<tc>, window_params = [{transform_indices = @transform_0, window_bounds = array<i64: 2, 1568>}, {pipeline_mode = #tpu.pipeline_mode<synchronous>, transform_indices = @transform_1, window_bounds = array<i64: 1568, 128>}, {pipeline_mode = #tpu.pipeline_mode<synchronous>, transform_indices = @transform_2, window_bounds = array<i64: 1, 128>}, {transform_indices = @transform_3, window_bounds = array<i64: 2, 128>}]} {
    %c0 = arith.constant 0 : index
    %c0_0 = arith.constant 0 : index
    %0 = vector.load %arg1[%c0, %c0_0] : memref<2x1568xbf16, #tpu.memory_space<vmem>>, vector<2x1568xbf16>
    %c0_1 = arith.constant 0 : index
    %c0_2 = arith.constant 0 : index
    %1 = vector.load %arg2[%c0_1, %c0_2] : memref<1568x128xbf16, #tpu.memory_space<vmem>>, vector<1568x128xbf16>
    %cst = arith.constant dense<0.000000e+00> : vector<2x128xf32>
    %2 = tpu.matmul %0, %1, %cst {dimension_numbers = #tpu.dot_dimension_numbers<[1], [0], [0], [1], [0, 0, 1, 1], [], []>} : vector<2x1568xbf16>, vector<1568x128xbf16>, vector<2x128xf32> -> vector<2x128xf32>
    %c0_3 = arith.constant 0 : index
    %c0_4 = arith.constant 0 : index
    %3 = vector.load %arg3[%c0_3, %c0_4] : memref<1x128xf32, #tpu.memory_space<vmem>>, vector<1x128xf32>
    %4 = vector.broadcast %3 : vector<1x128xf32> to vector<2x128xf32>
    %5 = arith.addf %2, %4 : vector<2x128xf32>
    %c0_5 = arith.constant 0 : index
    %c0_6 = arith.constant 0 : index
    %6 = vector.load %arg4[%c0_5, %c0_6] : memref<2x128xf32, #tpu.memory_space<vmem>>, vector<2x128xf32>
    tpu.vector_store %arg4[%c0_5, %c0_6], %5 {strides = array<i32>} : memref<2x128xf32, #tpu.memory_space<vmem>>, vector<2x128xf32>,
    return
  }
  func.func @transform_0(%arg0: i32) -> (i32, i32) {
    %c0_i32 = arith.constant 0 : i32
    %c0_i32_0 = arith.constant 0 : i32
    return %arg0, %c0_i32 : i32, i32
  }
  func.func @transform_1(%arg0: i32) -> (i32, i32) {
    %c0_i32 = arith.constant 0 : i32
    %c0_i32_0 = arith.constant 0 : i32
    %c0_i32_1 = arith.constant 0 : i32
    return %c0_i32, %c0_i32_0 : i32, i32
  }
  func.func @transform_2(%arg0: i32) -> (i32, i32) {
    %c0_i32 = arith.constant 0 : i32
    %c0_i32_0 = arith.constant 0 : i32
    %c0_i32_1 = arith.constant 0 : i32
    return %c0_i32, %c0_i32_0 : i32, i32
  }
  func.func @transform_3(%arg0: i32) -> (i32, i32) {
    %c0_i32 = arith.constant 0 : i32
    %c0_i32_0 = arith.constant 0 : i32
    return %arg0, %c0_i32 : i32, i32
  }
}

</mosaic_0001>

<bundles_post_ra>
// kernel: cnn_forward.3
= control target key start
LH: loop header
LB: loop body
LE: loop exit
PB: predicated region body
PF: predicated region fallthrough
CT: control target
= control target key end

     0   :  { %s3998_s12 = smov 0   ;;  %s4709_s0 = inlined_call_operand.vmem [shape: bf16[2,4,196,32], index: 0, kind: input, shape index: {}]   ;;  %s4710_s1 = inlined_call_operand.vmem [shape: bf16[32,128], index: 1, kind: input, shape index: {}]   ;;  %s4711_s2 = inlined_call_operand.vmem [shape: f32[1,128], index: 2, kind: input, shape index: {}]   ;;  %s4712_s3 = inlined_call_operand.vmem [shape: bf16[2,196,128], index: 3, kind: output, shape index: {}]  }
   0x1 LB: > { %s3415_s13 = sadd.s32 4294967295, %s3973_s12   ;;  %p3419_p0 = scmp.ge.s32.totalorder %s3973_s12, 1  ;;  %s3973_s12 = sphi %s3998_s12, %s13_s12  }
   0x2   : > { %p137_p1 = scmp.lt.s32.totalorder %s3973_s12, 3 }
   0x4   : > { %p138_p2 = pnand %p3419_p0, %p137_p1 }
   0x6   : > { %141 = sbr.rel (%p138_p2) target bundleno = 431 (0x1af), region = 32 }
   0xb   : > { %v3965_v0 = vld [vmem:[%s4710_s1 + $0x8] sm:$0xff]   ;;  %v3975_v1 = vmov 0.0   ;;  %v3966_v2 = vld [vmem:[%s4710_s1] sm:$0xff]   ;;  %p161_p3 = scmp.lt.s32.totalorder %s3415_s13, 1  ;;  %v1177_v3 = vlaneseq  ;;  %v3976_v4 = vmov 1983009808  }
   0xc   : > { %3748 = vmatprep.subr.bf16.mxu0 %v3975_v1  ;;  %3948 = vmatprep.subr.bf16.mxu1 %v3975_v1  ;;  %v1175_v5 = vunpack.c.l.s4 %v3976_v4  ;;  %vm3977_vm0 = vmmov 0   ;;  %vm2017_vm1 = vcmask 261120  }
   0xd   : > { %3749 = vmatpush3.bf16.msra.mxu0 %v3965_v0  ;;  %3950 = vmatpush3.bf16.msra.mxu1 %v3965_v0  ;;  %s4744_s13 = smov (!%p161_p3, %s3415_s13), 1  ;;  %v1178_v7 = vshrl.u32 %v1177_v3, 7 }
   0xe   : > { %3750 = vmatprep.subr.bf16.mxu0 %v3975_v1  ;;  %3949 = vmatprep.subr.bf16.mxu1 %v3975_v1  ;;  %s3952_s18 = smul.u32 400, %s4744_s13  ;;  %v1176_v6 = vunpack.c.0.s8 %v1175_v5 }
   0xf   : > { %3752 = vmatprep.mubr.msk.bf16.mxu0 %vm3977_vm0, %v3975_v1  ;;  %3852 = vmatprep.mubr.msk.bf16.mxu1 %vm3977_vm0, %v3975_v1  ;;  %s3953_s24 = smul.u32 100, %s4744_s13 }
  0x10   : > { %s4026_s21 = scalar_lea.vmem %s4709_s0, %s3952_s18  ;;  %v4030_v11 = vsub.s32 %v1176_v6, %v1178_v7 }
  0x11   : > { %3751 = vmatpush3.bf16.msra.mxu0 %v3966_v2  ;;  %3951 = vmatpush3.bf16.msra.mxu1 %v3966_v2  ;;  %v3422_v8 = vld.sshfl [vmem:[%s4026_s21] sm:$0x33 pattern:$0x76325410]  ;;  %s4533_s27 = scalar_lea.vmem %s4712_s3, %s3953_s24 }
  0x12   : > { %v3423_v9 = vld.sshfl [vmem:[%s4026_s21 + $0x4] sm:$0x33 pattern:$0x76325410]  ;;  %v379_v10 = vcombine.high %v3422_v8, %v3422_v8 }
  0x13   : > { %v387_v12 = vcombine.high %v3423_v9, %v3423_v9  ;;  %v3473_v13 = vld.sshfl [vmem:[%s4026_s21 + $0xcc] sm:$0x33 pattern:$0x76325410] }
  0x14   : > { %v1172_v14 = vcombine.low %v3422_v8, %v379_v10  ;;  %v3474_v15 = vld.sshfl [vmem:[%s4026_s21 + $0xd0] sm:$0x33 pattern:$0x76325410]  ;;  %v785_v16 = vcombine.high %v3473_v13, %v3473_v13 }
  0x15   : > { %v1173_v17 = vcombine.low %v3423_v9, %v387_v12  ;;  %v793_v18 = vcombine.high %v3474_v15, %v3474_v15  ;;  %v3424_v19 = vld.sshfl [vmem:[%s4026_s21 + $0x8] sm:$0x33 pattern:$0x76325410] }
  0x16   : > { %v1180_v20 = vrot.slane %v1172_v14, %v4030_v11  ;;  %v1597_v21 = vcombine.low %v3473_v13, %v785_v16  ;;  %v3425_v22 = vld.sshfl [vmem:[%s4026_s21 + $0xc] sm:$0x33 pattern:$0x76325410]  ;;  %v395_v23 = vcombine.high %v3424_v19, %v3424_v19 }
  0x17   : > { %v1187_v24 = vrot.slane %v1173_v17, %v4030_v11  ;;  %v1598_v25 = vcombine.low %v3474_v15, %v793_v18  ;;  %v403_v26 = vcombine.high %v3425_v22, %v3425_v22  ;;  %v3475_v27 = vld.sshfl [vmem:[%s4026_s21 + $0xd4] sm:$0x33 pattern:$0x76325410] }
  0x18   : > { %v1605_v28 = vrot.slane %v1597_v21, %v4030_v11  ;;  %v1189_v29 = vcombine.low %v3424_v19, %v395_v23  ;;  %v3476_v30 = vld.sshfl [vmem:[%s4026_s21 + $0xd8] sm:$0x33 pattern:$0x76325410]  ;;  %v801_v31 = vcombine.high %v3475_v27, %v3475_v27 }
  0x19   : > { %v1188_v32 = vcombine.low %v1180_v20, %v1187_v24  ;;  %v1612_v33 = vrot.slane %v1598_v25, %v4030_v11  ;;  %v1190_v34 = vcombine.low %v3425_v22, %v403_v26  ;;  %v809_v35 = vcombine.high %v3476_v30, %v3476_v30  ;;  %v3426_v36 = vld.sshfl [vmem:[%s4026_s21 + $0x10] sm:$0x33 pattern:$0x76325410] }
  0x1a   : > { %v1197_v37 = vrot.slane %v1189_v29, %v4030_v11  ;;  %v1614_v38 = vcombine.low %v3475_v27, %v801_v31  ;;  %v3427_v39 = vld.sshfl [vmem:[%s4026_s21 + $0x14] sm:$0x33 pattern:$0x76325410]  ;;  %v411_v40 = vcombine.high %v3426_v36, %v3426_v36 }
  0x1b   : > { %3753 = vmatmul.mubr.msk.bf16.vlgmr.msra.gmra.mxu0 %vm2017_vm1, %v1188_v32  ;;  %v1613_v41 = vcombine.low %v1605_v28, %v1612_v33  ;;  %v1204_v42 = vrot.slane %v1190_v34, %v4030_v11  ;;  %v1615_v43 = vcombine.low %v3476_v30, %v809_v35  ;;  %v419_v44 = vcombine.high %v3427_v39, %v3427_v39  ;;  %v3477_v45 = vld.sshfl [vmem:[%s4026_s21 + $0xdc] sm:$0x33 pattern:$0x76325410] }
  0x1c   : > { %3756 = vmatprep.mubr.msk.bf16.mxu0 %vm3977_vm0, %v3975_v1  ;;  %v3478_v46 = vld.sshfl [vmem:[%s4026_s21 + $0xe0] sm:$0x33 pattern:$0x76325410]  ;;  %v1622_v47 = vrot.slane %v1614_v38, %v4030_v11  ;;  %v817_v49 = vcombine.high %v3477_v45, %v3477_v45  ;;  %v1206_v52 = vcombine.low %v3426_v36, %v411_v40 }
  0x1d   : > { %3853 = vmatmul.mubr.msk.bf16.vlgmr.msra.gmra.mxu1 %vm2017_vm1, %v1613_v41  ;;  %v1629_v48 = vrot.slane %v1615_v43, %v4030_v11  ;;  %v825_v50 = vcombine.high %v3478_v46, %v3478_v46  ;;  %v1205_v51 = vcombine.low %v1197_v37, %v1204_v42  ;;  %v1207_v53 = vcombine.low %v3427_v39, %v419_v44  ;;  %v3428_v54 = vld.sshfl [vmem:[%s4026_s21 + $0x18] sm:$0x33 pattern:$0x76325410] }
  0x1e   : > { %3856 = vmatprep.mubr.msk.bf16.mxu1 %vm3977_vm0, %v3975_v1  ;;  %v3429_v55 = vld.sshfl [vmem:[%s4026_s21 + $0x1c] sm:$0x33 pattern:$0x76325410]  ;;  %v1631_v57 = vcombine.low %v3477_v45, %v817_v49  ;;  %v1214_v61 = vrot.slane %v1206_v52, %v4030_v11  ;;  %v427_v63 = vcombine.high %v3428_v54, %v3428_v54 }
  0x1f   : > { %v1630_v56 = vcombine.low %v1622_v47, %v1629_v48  ;;  %v1632_v58 = vcombine.low %v3478_v46, %v825_v50  ;;  %v3479_v59 = vld.sshfl [vmem:[%s4026_s21 + $0xe4] sm:$0x33 pattern:$0x76325410]  ;;  %v1221_v62 = vrot.slane %v1207_v53, %v4030_v11  ;;  %v435_v0 = vcombine.high %v3429_v55, %v3429_v55 }
  0x20   : > { %v3480_v60 = vld.sshfl [vmem:[%s4026_s21 + $0xe8] sm:$0x33 pattern:$0x76325410]  ;;  %v1639_v2 = vrot.slane %v1631_v57, %v4030_v11  ;;  %v833_v4 = vcombine.high %v3479_v59, %v3479_v59  ;;  %v1223_v7 = vcombine.low %v3428_v54, %v427_v63 }
  0x21   : > { %v1646_v3 = vrot.slane %v1632_v58, %v4030_v11  ;;  %v841_v5 = vcombine.high %v3480_v60, %v3480_v60  ;;  %v1222_v6 = vcombine.low %v1214_v61, %v1221_v62  ;;  %v1224_v8 = vcombine.low %v3429_v55, %v435_v0  ;;  %v3430_v9 = vld.sshfl [vmem:[%s4026_s21 + $0x20] sm:$0x33 pattern:$0x76325410] }
  0x22   : > { %v3431_v10 = vld.sshfl [vmem:[%s4026_s21 + $0x24] sm:$0x33 pattern:$0x76325410]  ;;  %v1648_v13 = vcombine.low %v3479_v59, %v833_v4  ;;  %v1231_v17 = vrot.slane %v1223_v7, %v4030_v11  ;;  %v443_v19 = vcombine.high %v3430_v9, %v3430_v9 }
  0x23   : > { %3757 = vmatmul.mubr.msk.bf16.gmra.mxu0 %vm2017_vm1, %v1205_v51  ;;  %v1647_v12 = vcombine.low %v1639_v2, %v1646_v3  ;;  %v1649_v14 = vcombine.low %v3480_v60, %v841_v5  ;;  %v3481_v15 = vld.sshfl [vmem:[%s4026_s21 + $0xec] sm:$0x33 pattern:$0x76325410]  ;;  %v1238_v18 = vrot.slane %v1224_v8, %v4030_v11  ;;  %v451_v20 = vcombine.high %v3431_v10, %v3431_v10 }
  0x24   : > { %3760 = vmatprep.mubr.msk.bf16.mxu0 %vm3977_vm0, %v3975_v1  ;;  %v3482_v16 = vld.sshfl [vmem:[%s4026_s21 + $0xf0] sm:$0x33 pattern:$0x76325410]  ;;  %v1656_v21 = vrot.slane %v1648_v13, %v4030_v11  ;;  %v849_v23 = vcombine.high %v3481_v15, %v3481_v15  ;;  %v1240_v26 = vcombine.low %v3430_v9, %v443_v19 }
  0x25   : > { %3857 = vmatmul.mubr.msk.bf16.gmra.mxu1 %vm2017_vm1, %v1630_v56  ;;  %v1663_v22 = vrot.slane %v1649_v14, %v4030_v11  ;;  %v857_v24 = vcombine.high %v3482_v16, %v3482_v16  ;;  %v1239_v25 = vcombine.low %v1231_v17, %v1238_v18  ;;  %v1241_v27 = vcombine.low %v3431_v10, %v451_v20  ;;  %v3432_v28 = vld.sshfl [vmem:[%s4026_s21 + $0x28] sm:$0x33 pattern:$0x76325410] }
  0x26   : > { %3860 = vmatprep.mubr.msk.bf16.mxu1 %vm3977_vm0, %v3975_v1  ;;  %v3433_v29 = vld.sshfl [vmem:[%s4026_s21 + $0x2c] sm:$0x33 pattern:$0x76325410]  ;;  %v1665_v31 = vcombine.low %v3481_v15, %v849_v23  ;;  %v1248_v35 = vrot.slane %v1240_v26, %v4030_v11  ;;  %v459_v37 = vcombine.high %v3432_v28, %v3432_v28 }
  0x27   : > { %v1664_v30 = vcombine.low %v1656_v21, %v1663_v22  ;;  %v1666_v32 = vcombine.low %v3482_v16, %v857_v24  ;;  %v3483_v33 = vld.sshfl [vmem:[%s4026_s21 + $0xf4] sm:$0x33 pattern:$0x76325410]  ;;  %v1255_v36 = vrot.slane %v1241_v27, %v4030_v11  ;;  %v467_v38 = vcombine.high %v3433_v29, %v3433_v29 }
  0x28   : > { %v3484_v34 = vld.sshfl [vmem:[%s4026_s21 + $0xf8] sm:$0x33 pattern:$0x76325410]  ;;  %v1673_v39 = vrot.slane %v1665_v31, %v4030_v11  ;;  %v865_v41 = vcombine.high %v3483_v33, %v3483_v33  ;;  %v1257_v44 = vcombine.low %v3432_v28, %v459_v37 }
  0x29   : > { %v1680_v40 = vrot.slane %v1666_v32, %v4030_v11  ;;  %v873_v42 = vcombine.high %v3484_v34, %v3484_v34  ;;  %v1256_v43 = vcombine.low %v1248_v35, %v1255_v36  ;;  %v1258_v45 = vcombine.low %v3433_v29, %v467_v38  ;;  %v3434_v46 = vld.sshfl [vmem:[%s4026_s21 + $0x30] sm:$0x33 pattern:$0x76325410] }
  0x2a   : > { %v3435_v47 = vld.sshfl [vmem:[%s4026_s21 + $0x34] sm:$0x33 pattern:$0x76325410]  ;;  %v1682_v49 = vcombine.low %v3483_v33, %v865_v41  ;;  %v1265_v53 = vrot.slane %v1257_v44, %v4030_v11  ;;  %v475_v55 = vcombine.high %v3434_v46, %v3434_v46 }
  0x2b   : > { %3761 = vmatmul.mubr.msk.bf16.gmra.mxu0 %vm2017_vm1, %v1222_v6  ;;  %v1681_v48 = vcombine.low %v1673_v39, %v1680_v40  ;;  %v1683_v50 = vcombine.low %v3484_v34, %v873_v42  ;;  %v3485_v51 = vld.sshfl [vmem:[%s4026_s21 + $0xfc] sm:$0x33 pattern:$0x76325410]  ;;  %v1272_v54 = vrot.slane %v1258_v45, %v4030_v11  ;;  %v483_v56 = vcombine.high %v3435_v47, %v3435_v47 }
  0x2c   : > { %3764 = vmatprep.mubr.msk.bf16.mxu0 %vm3977_vm0, %v3975_v1  ;;  %v3486_v52 = vld.sshfl [vmem:[%s4026_s21 + $0x100] sm:$0x33 pattern:$0x76325410]  ;;  %v1690_v57 = vrot.slane %v1682_v49, %v4030_v11  ;;  %v881_v59 = vcombine.high %v3485_v51, %v3485_v51  ;;  %v1274_v62 = vcombine.low %v3434_v46, %v475_v55 }
  0x2d   : > { %3861 = vmatmul.mubr.msk.bf16.gmra.mxu1 %vm2017_vm1, %v1647_v12  ;;  %v1697_v58 = vrot.slane %v1683_v50, %v4030_v11  ;;  %v889_v60 = vcombine.high %v3486_v52, %v3486_v52  ;;  %v1273_v61 = vcombine.low %v1265_v53, %v1272_v54  ;;  %v1275_v63 = vcombine.low %v3435_v47, %v483_v56  ;;  %v3436_v0 = vld.sshfl [vmem:[%s4026_s21 + $0x38] sm:$0x33 pattern:$0x76325410] }
  0x2e   : > { %3864 = vmatprep.mubr.msk.bf16.mxu1 %vm3977_vm0, %v3975_v1  ;;  %v3437_v2 = vld.sshfl [vmem:[%s4026_s21 + $0x3c] sm:$0x33 pattern:$0x76325410]  ;;  %v1699_v4 = vcombine.low %v3485_v51, %v881_v59  ;;  %v1282_v8 = vrot.slane %v1274_v62, %v4030_v11  ;;  %v491_v10 = vcombine.high %v3436_v0, %v3436_v0 }
  0x2f   : > { %v1698_v3 = vcombine.low %v1690_v57, %v1697_v58  ;;  %v1700_v5 = vcombine.low %v3486_v52, %v889_v60  ;;  %v3487_v6 = vld.sshfl [vmem:[%s4026_s21 + $0x104] sm:$0x33 pattern:$0x76325410]  ;;  %v1289_v9 = vrot.slane %v1275_v63, %v4030_v11  ;;  %v499_v12 = vcombine.high %v3437_v2, %v3437_v2 }
  0x30   : > { %v3488_v7 = vld.sshfl [vmem:[%s4026_s21 + $0x108] sm:$0x33 pattern:$0x76325410]  ;;  %v1707_v13 = vrot.slane %v1699_v4, %v4030_v11  ;;  %v897_v15 = vcombine.high %v3487_v6, %v3487_v6  ;;  %v1291_v18 = vcombine.low %v3436_v0, %v491_v10 }
  0x31   : > { %v1714_v14 = vrot.slane %v1700_v5, %v4030_v11  ;;  %v905_v16 = vcombine.high %v3488_v7, %v3488_v7  ;;  %v1290_v17 = vcombine.low %v1282_v8, %v1289_v9  ;;  %v1292_v19 = vcombine.low %v3437_v2, %v499_v12  ;;  %v3438_v20 = vld.sshfl [vmem:[%s4026_s21 + $0x40] sm:$0x33 pattern:$0x76325410] }
  0x32   : > { %v3439_v21 = vld.sshfl [vmem:[%s4026_s21 + $0x44] sm:$0x33 pattern:$0x76325410]  ;;  %v1716_v23 = vcombine.low %v3487_v6, %v897_v15  ;;  %v1299_v27 = vrot.slane %v1291_v18, %v4030_v11  ;;  %v507_v29 = vcombine.high %v3438_v20, %v3438_v20 }
  0x33   : > { %3765 = vmatmul.mubr.msk.bf16.gmra.mxu0 %vm2017_vm1, %v1239_v25  ;;  %v1715_v22 = vcombine.low %v1707_v13, %v1714_v14  ;;  %v1717_v24 = vcombine.low %v3488_v7, %v905_v16  ;;  %v3489_v25 = vld.sshfl [vmem:[%s4026_s21 + $0x10c] sm:$0x33 pattern:$0x76325410]  ;;  %v1306_v28 = vrot.slane %v1292_v19, %v4030_v11 }
  0x34   : > { %3768 = vmatprep.mubr.msk.bf16.mxu0 %vm3977_vm0, %v3975_v1  ;;  %v3490_v26 = vld.sshfl [vmem:[%s4026_s21 + $0x110] sm:$0x33 pattern:$0x76325410]  ;;  %v1724_v31 = vrot.slane %v1716_v23, %v4030_v11  ;;  %v913_v33 = vcombine.high %v3489_v25, %v3489_v25  ;;  %v1308_v36 = vcombine.low %v3438_v20, %v507_v29 }
  0x35   : > { %3865 = vmatmul.mubr.msk.bf16.gmra.mxu1 %vm2017_vm1, %v1664_v30  ;;  %v515_v30 = vcombine.high %v3439_v21, %v3439_v21  ;;  %v1731_v32 = vrot.slane %v1717_v24, %v4030_v11  ;;  %v921_v34 = vcombine.high %v3490_v26, %v3490_v26  ;;  %v1307_v35 = vcombine.low %v1299_v27, %v1306_v28  ;;  %v3440_v38 = vld.sshfl [vmem:[%s4026_s21 + $0x48] sm:$0x33 pattern:$0x76325410] }
  0x36   : > { %3868 = vmatprep.mubr.msk.bf16.mxu1 %vm3977_vm0, %v3975_v1  ;;  %v3441_v39 = vld.sshfl [vmem:[%s4026_s21 + $0x4c] sm:$0x33 pattern:$0x76325410]  ;;  %v1733_v41 = vcombine.low %v3489_v25, %v913_v33  ;;  %v1316_v45 = vrot.slane %v1308_v36, %v4030_v11  ;;  %v523_v47 = vcombine.high %v3440_v38, %v3440_v38 }
  0x37   : > { %v1309_v37 = vcombine.low %v3439_v21, %v515_v30  ;;  %v1732_v40 = vcombine.low %v1724_v31, %v1731_v32  ;;  %v1734_v42 = vcombine.low %v3490_v26, %v921_v34  ;;  %v3492_v44 = vld.sshfl [vmem:[%s4026_s21 + $0x118] sm:$0x33 pattern:$0x76325410] }
  0x38   : > { %v1741_v49 = vrot.slane %v1733_v41, %v4030_v11  ;;  %v937_v52 = vcombine.high %v3492_v44, %v3492_v44  ;;  %v1325_v54 = vcombine.low %v3440_v38, %v523_v47  ;;  %v3442_v56 = vld.sshfl [vmem:[%s4026_s21 + $0x50] sm:$0x33 pattern:$0x76325410] }
  0x39   : > { %v1323_v46 = vrot.slane %v1309_v37, %v4030_v11  ;;  %v1748_v50 = vrot.slane %v1734_v42, %v4030_v11  ;;  %v3443_v57 = vld.sshfl [vmem:[%s4026_s21 + $0x54] sm:$0x33 pattern:$0x76325410]  ;;  %v539_v2 = vcombine.high %v3442_v56, %v3442_v56 }
  0x3a   : > { %v1751_v60 = vcombine.low %v3492_v44, %v937_v52  ;;  %v3494_v62 = vld.sshfl [vmem:[%s4026_s21 + $0x120] sm:$0x33 pattern:$0x76325410]  ;;  %v1333_v63 = vrot.slane %v1325_v54, %v4030_v11 }
  0x3b   : > { %3769 = vmatmul.mubr.msk.bf16.gmra.mxu0 %vm2017_vm1, %v1256_v43  ;;  %v3491_v43 = vld.sshfl [vmem:[%s4026_s21 + $0x114] sm:$0x33 pattern:$0x76325410]  ;;  %v1324_v53 = vcombine.low %v1316_v45, %v1323_v46  ;;  %v1749_v58 = vcombine.low %v1741_v49, %v1748_v50  ;;  %v953_v7 = vcombine.high %v3494_v62, %v3494_v62  ;;  %v1342_v9 = vcombine.low %v3442_v56, %v539_v2 }
  0x3c   : > { %3772 = vmatprep.mubr.msk.bf16.mxu0 %vm3977_vm0, %v3975_v1  ;;  %v929_v51 = vcombine.high %v3491_v43, %v3491_v43  ;;  %v1765_v5 = vrot.slane %v1751_v60, %v4030_v11  ;;  %v3444_v12 = vld.sshfl [vmem:[%s4026_s21 + $0x58] sm:$0x33 pattern:$0x76325410] }
  0x3d   : > { %3869 = vmatmul.mubr.msk.bf16.gmra.mxu1 %vm2017_vm1, %v1681_v48  ;;  %v531_v48 = vcombine.high %v3441_v39, %v3441_v39  ;;  %v3445_v13 = vld.sshfl [vmem:[%s4026_s21 + $0x5c] sm:$0x33 pattern:$0x76325410]  ;;  %v1768_v16 = vcombine.low %v3494_v62, %v953_v7  ;;  %v1350_v18 = vrot.slane %v1342_v9, %v4030_v11  ;;  %v555_v20 = vcombine.high %v3444_v12, %v3444_v12 }
  0x3e   : > { %3872 = vmatprep.mubr.msk.bf16.mxu1 %vm3977_vm0, %v3975_v1  ;;  %v1750_v59 = vcombine.low %v3491_v43, %v929_v51  ;;  %v563_v21 = vcombine.high %v3445_v13, %v3445_v13  ;;  %v3496_v24 = vld.sshfl [vmem:[%s4026_s21 + $0x128] sm:$0x3 pattern:$0x76325410] }
  0x3f   : > { %v1326_v55 = vcombine.low %v3441_v39, %v531_v48  ;;  %v1782_v23 = vrot.slane %v1768_v16, %v4030_v11  ;;  %v3497_v26 = vld.sshfl [vmem:[%s4026_s21 + $0x12c] sm:$0x33 pattern:$0x76325410]  ;;  %v1359_v28 = vcombine.low %v3444_v12, %v555_v20 }
  0x40   : > { %v1758_v4 = vrot.slane %v1750_v59, %v4030_v11  ;;  %v1360_v29 = vcombine.low %v3445_v13, %v563_v21  ;;  %v3447_v30 = vld.sshfl [vmem:[%s4026_s21 + $0x64] sm:$0x33 pattern:$0x76325410]  ;;  %v1785_v33 = vcombine.low %v3496_v24, %v3497_v26  ;;  %v976_v42 = vcombine.high %v3497_v26, %v3497_v26 }
  0x41   : > { %v1340_v0 = vrot.slane %v1326_v55, %v4030_v11  ;;  %v3498_v34 = vld.sshfl [vmem:[%s4026_s21 + $0x130] sm:$0x33 pattern:$0x76325410]  ;;  %v578_v38 = vcombine.high %v3447_v30, %v3447_v30 }
  0x42   : > { %v1766_v14 = vcombine.low %v1758_v4, %v1765_v5  ;;  %v1374_v36 = vrot.slane %v1360_v29, %v4030_v11  ;;  %v3446_v37 = vld.sshfl [vmem:[%s4026_s21 + $0x60] sm:$0x3 pattern:$0x76325410]  ;;  %v1799_v41 = vrot.slane %v1785_v33, %v4030_v11  ;;  %v984_v43 = vcombine.high %v3498_v34, %v3498_v34 }
  0x43   : > { %3773 = vmatmul.mubr.msk.bf16.gmra.mxu0 %vm2017_vm1, %v1273_v61  ;;  %v3493_v61 = vld.sshfl [vmem:[%s4026_s21 + $0x11c] sm:$0x33 pattern:$0x76325410]  ;;  %v1341_v8 = vcombine.low %v1333_v63, %v1340_v0  ;;  %v1376_v46 = vcombine.low %v3446_v37, %v3447_v30  ;;  %v1801_v50 = vcombine.low %v976_v42, %v3498_v34 }
  0x44   : > { %3776 = vmatprep.mubr.msk.bf16.mxu0 %vm3977_vm0, %v3975_v1  ;;  %v945_v6 = vcombine.high %v3493_v61, %v3493_v61  ;;  %v3448_v39 = vld.sshfl [vmem:[%s4026_s21 + $0x68] sm:$0x33 pattern:$0x76325410] }
  0x45   : > { %3873 = vmatmul.mubr.msk.bf16.gmra.mxu1 %vm2017_vm1, %v1698_v3  ;;  %v547_v3 = vcombine.high %v3443_v57, %v3443_v57  ;;  %v3499_v44 = vld.sshfl [vmem:[%s4026_s21 + $0x134] sm:$0x33 pattern:$0x76325410]  ;;  %v1377_v47 = vcombine.low %v578_v38, %v3448_v39  ;;  %v586_v55 = vcombine.high %v3448_v39, %v3448_v39 }
  0x46   : > { %3876 = vmatprep.mubr.msk.bf16.mxu1 %vm3977_vm0, %v3975_v1  ;;  %v1767_v15 = vcombine.low %v3493_v61, %v945_v6  ;;  %v3449_v48 = vld.sshfl [vmem:[%s4026_s21 + $0x6c] sm:$0x33 pattern:$0x76325410]  ;;  %v1802_v51 = vcombine.low %v984_v43, %v3499_v44  ;;  %v992_v60 = vcombine.high %v3499_v44, %v3499_v44 }
  0x47   : > { %v1343_v10 = vcombine.low %v3443_v57, %v547_v3  ;;  %v3500_v52 = vld.sshfl [vmem:[%s4026_s21 + $0x138] sm:$0x33 pattern:$0x76325410]  ;;  %v1391_v54 = vrot.slane %v1377_v47, %v4030_v11  ;;  %v594_v56 = vcombine.high %v3449_v48, %v3449_v48  ;;  %v1393_v0 = vcombine.low %v586_v55, %v3449_v48 }
  0x48   : > { %v3450_v57 = vld.sshfl [vmem:[%s4026_s21 + $0x70] sm:$0x33 pattern:$0x76325410]  ;;  %v1816_v59 = vrot.slane %v1802_v51, %v4030_v11  ;;  %v1000_v61 = vcombine.high %v3500_v52, %v3500_v52  ;;  %v1818_v5 = vcombine.low %v992_v60, %v3500_v52 }
  0x49   : > { %v1357_v19 = vrot.slane %v1343_v10, %v4030_v11  ;;  %v3501_v62 = vld.sshfl [vmem:[%s4026_s21 + $0x13c] sm:$0x33 pattern:$0x76325410]  ;;  %v1394_v2 = vcombine.low %v594_v56, %v3450_v57  ;;  %v602_v10 = vcombine.high %v3450_v57, %v3450_v57 }
  0x4a   : > { %v3451_v3 = vld.sshfl [vmem:[%s4026_s21 + $0x74] sm:$0x33 pattern:$0x76325410]  ;;  %v1819_v6 = vcombine.low %v1000_v61, %v3501_v62  ;;  %v1008_v16 = vcombine.high %v3501_v62, %v3501_v62 }
  0x4b   : > { %3777 = vmatmul.mubr.msk.bf16.gmra.mxu0 %vm2017_vm1, %v1290_v17  ;;  %v3495_v17 = vld.sshfl [vmem:[%s4026_s21 + $0x124] sm:$0x33 pattern:$0x76325410]  ;;  %v1358_v27 = vcombine.low %v1350_v18, %v1357_v19  ;;  %v1408_v9 = vrot.slane %v1394_v2, %v4030_v11  ;;  %v610_v12 = vcombine.high %v3451_v3, %v3451_v3  ;;  %v1410_v20 = vcombine.low %v602_v10, %v3451_v3 }
  0x4c   : > { %3780 = vmatprep.mubr.msk.bf16.mxu0 %vm3977_vm0, %v3975_v1  ;;  %v961_v25 = vcombine.high %v3495_v17, %v3495_v17  ;;  %v3502_v7 = vld.sshfl [vmem:[%s4026_s21 + $0x140] sm:$0x33 pattern:$0x76325410] }
  0x4d   : > { %3877 = vmatmul.mubr.msk.bf16.gmra.mxu1 %vm2017_vm1, %v1715_v22  ;;  %v1775_v22 = vrot.slane %v1767_v15, %v4030_v11  ;;  %v3452_v13 = vld.sshfl [vmem:[%s4026_s21 + $0x78] sm:$0x33 pattern:$0x76325410]  ;;  %v1833_v15 = vrot.slane %v1819_v6, %v4030_v11  ;;  %v1835_v24 = vcombine.low %v1008_v16, %v3502_v7 }
  0x4e   : > { %3880 = vmatprep.mubr.msk.bf16.mxu1 %vm3977_vm0, %v3975_v1  ;;  %v1784_v32 = vcombine.low %v3495_v17, %v961_v25  ;;  %v1016_v17 = vcombine.high %v3502_v7, %v3502_v7  ;;  %v3503_v18 = vld.sshfl [vmem:[%s4026_s21 + $0x144] sm:$0x33 pattern:$0x76325410]  ;;  %v1411_v21 = vcombine.low %v610_v12, %v3452_v13  ;;  %v618_v29 = vcombine.high %v3452_v13, %v3452_v13 }
  0x4f   : > { %v1783_v31 = vcombine.low %v1775_v22, %v1782_v23  ;;  %v3453_v22 = vld.sshfl [vmem:[%s4026_s21 + $0x7c] sm:$0x33 pattern:$0x76325410]  ;;  %v1024_v34 = vcombine.high %v3503_v18, %v3503_v18 }
  0x50   : > { %v1836_v25 = vcombine.low %v1016_v17, %v3503_v18  ;;  %v3504_v26 = vld.sshfl [vmem:[%s4026_s21 + $0x148] sm:$0x33 pattern:$0x76325410]  ;;  %v626_v30 = vcombine.high %v3453_v22, %v3453_v22  ;;  %v1427_v38 = vcombine.low %v618_v29, %v3453_v22 }
  0x51   : > { %v1852_v42 = vcombine.low %v1024_v34, %v3504_v26  ;;  %v3506_v44 = vld.sshfl [vmem:[%s4026_s21 + $0x150] sm:$0x33 pattern:$0x76325410] }
  0x52   : > { %v1850_v33 = vrot.slane %v1836_v25, %v4030_v11  ;;  %v3508_v62 = vld.sshfl [vmem:[%s4026_s21 + $0x158] sm:$0x33 pattern:$0x76325410] }
  0x53   : > { %3781 = vmatmul.mubr.msk.bf16.gmra.mxu0 %vm2017_vm1, %v1307_v35  ;;  %v1367_v35 = vrot.slane %v1359_v28, %v4030_v11  ;;  %v1425_v28 = vrot.slane %v1411_v21, %v4030_v11  ;;  %v3510_v18 = vld.sshfl [vmem:[%s4026_s21 + $0x160] sm:$0x33 pattern:$0x76325410] }
  0x54   : > { %3784 = vmatprep.mubr.msk.bf16.mxu0 %vm3977_vm0, %v3975_v1 }
  0x55   : > { %3881 = vmatmul.mubr.msk.bf16.gmra.mxu1 %vm2017_vm1, %v1732_v40  ;;  %v1792_v40 = vrot.slane %v1784_v32, %v4030_v11  ;;  %v1375_v45 = vcombine.low %v1367_v35, %v1374_v36  ;;  %v1843_v32 = vrot.slane %v1835_v24, %v4030_v11  ;;  %v1032_v35 = vcombine.high %v3504_v26, %v3504_v26  ;;  %v3505_v36 = vld.sshfl [vmem:[%s4026_s21 + $0x14c] sm:$0x33 pattern:$0x76325410] }
  0x56   : > { %3884 = vmatprep.mubr.msk.bf16.mxu1 %vm3977_vm0, %v3975_v1  ;;  %v1040_v52 = vcombine.high %v3505_v36, %v3505_v36 }
  0x57   : > { %v1800_v49 = vcombine.low %v1792_v40, %v1799_v41  ;;  %v3455_v40 = vld.sshfl [vmem:[%s4026_s21 + $0x84] sm:$0x33 pattern:$0x76325410]  ;;  %v1851_v41 = vcombine.low %v1843_v32, %v1850_v33  ;;  %v1853_v43 = vcombine.low %v1032_v35, %v3505_v36 }
  0x58   : > { %v642_v48 = vcombine.high %v3455_v40, %v3455_v40  ;;  %v1869_v60 = vcombine.low %v1040_v52, %v3506_v44  ;;  %v3461_v32 = vld.sshfl [vmem:[%s4026_s21 + $0x9c] sm:$0x33 pattern:$0x76325410] }
  0x59   : > { %v1867_v51 = vrot.slane %v1853_v43, %v4030_v11  ;;  %v3512_v36 = vld.sshfl [vmem:[%s4026_s21 + $0x168] sm:$0x33 pattern:$0x76325410] }
  0x5b   : > { %3785 = vmatmul.mubr.msk.bf16.gmra.mxu0 %vm2017_vm1, %v1324_v53  ;;  %v1384_v53 = vrot.slane %v1376_v46, %v4030_v11 }
  0x5c   : > { %3788 = vmatprep.mubr.msk.bf16.mxu0 %vm3977_vm0, %v3975_v1 }
  0x5d   : > { %3885 = vmatmul.mubr.msk.bf16.gmra.mxu1 %vm2017_vm1, %v1749_v58  ;;  %v1809_v58 = vrot.slane %v1801_v50, %v4030_v11  ;;  %v1392_v63 = vcombine.low %v1384_v53, %v1391_v54  ;;  %v1860_v50 = vrot.slane %v1852_v42, %v4030_v11  ;;  %v1048_v53 = vcombine.high %v3506_v44, %v3506_v44  ;;  %v3507_v54 = vld.sshfl [vmem:[%s4026_s21 + $0x154] sm:$0x33 pattern:$0x76325410] }
  0x5e   : > { %3888 = vmatprep.mubr.msk.bf16.mxu1 %vm3977_vm0, %v3975_v1  ;;  %v1056_v7 = vcombine.high %v3507_v54, %v3507_v54 }
  0x5f   : > { %v1817_v4 = vcombine.low %v1809_v58, %v1816_v59  ;;  %v3457_v58 = vld.sshfl [vmem:[%s4026_s21 + $0x8c] sm:$0x33 pattern:$0x76325410]  ;;  %v1868_v59 = vcombine.low %v1860_v50, %v1867_v51  ;;  %v1870_v61 = vcombine.low %v1048_v53, %v3507_v54 }
  0x60   : > { %v658_v3 = vcombine.high %v3457_v58, %v3457_v58  ;;  %v1886_v16 = vcombine.low %v1056_v7, %v3508_v62  ;;  %v3463_v50 = vld.sshfl [vmem:[%s4026_s21 + $0xa4] sm:$0x33 pattern:$0x76325410] }
  0x61   : > { %v1884_v6 = vrot.slane %v1870_v61, %v4030_v11  ;;  %v3514_v54 = vld.sshfl [vmem:[%s4026_s21 + $0x170] sm:$0x33 pattern:$0x76325410] }
  0x62   : > { %v1894_v24 = vrot.slane %v1886_v16, %v4030_v11 }
  0x63   : > { %3789 = vmatmul.mubr.msk.bf16.gmra.mxu0 %vm2017_vm1, %v1341_v8  ;;  %v1401_v8 = vrot.slane %v1393_v0, %v4030_v11 }
  0x64   : > { %3792 = vmatprep.mubr.msk.bf16.mxu0 %vm3977_vm0, %v3975_v1 }
  0x65   : > { %3889 = vmatmul.mubr.msk.bf16.gmra.mxu1 %vm2017_vm1, %v1766_v14  ;;  %v1826_v14 = vrot.slane %v1818_v5, %v4030_v11  ;;  %v1409_v19 = vcombine.low %v1401_v8, %v1408_v9  ;;  %v1877_v5 = vrot.slane %v1869_v60, %v4030_v11  ;;  %v1064_v8 = vcombine.high %v3508_v62, %v3508_v62  ;;  %v3509_v9 = vld.sshfl [vmem:[%s4026_s21 + $0x15c] sm:$0x33 pattern:$0x76325410] }
  0x66   : > { %3892 = vmatprep.mubr.msk.bf16.mxu1 %vm3977_vm0, %v3975_v1  ;;  %v1072_v26 = vcombine.high %v3509_v9, %v3509_v9 }
  0x67   : > { %v1834_v23 = vcombine.low %v1826_v14, %v1833_v15  ;;  %v3459_v14 = vld.sshfl [vmem:[%s4026_s21 + $0x94] sm:$0x33 pattern:$0x76325410]  ;;  %v1885_v15 = vcombine.low %v1877_v5, %v1884_v6  ;;  %v1887_v17 = vcombine.low %v1064_v8, %v3509_v9 }
  0x68   : > { %v674_v22 = vcombine.high %v3459_v14, %v3459_v14  ;;  %v1903_v34 = vcombine.low %v1072_v26, %v3510_v18  ;;  %v3465_v5 = vld.sshfl [vmem:[%s4026_s21 + $0xac] sm:$0x33 pattern:$0x76325410] }
  0x69   : > { %v1901_v25 = vrot.slane %v1887_v17, %v4030_v11  ;;  %v3516_v9 = vld.sshfl [vmem:[%s4026_s21 + $0x178] sm:$0x33 pattern:$0x76325410] }
  0x6a   : > { %v1911_v42 = vrot.slane %v1903_v34, %v4030_v11 }
  0x6b   : > { %3793 = vmatmul.mubr.msk.bf16.gmra.mxu0 %vm2017_vm1, %v1358_v27  ;;  %v1418_v27 = vrot.slane %v1410_v20, %v4030_v11  ;;  %v1902_v33 = vcombine.low %v1894_v24, %v1901_v25  ;;  %v3467_v24 = vld.sshfl [vmem:[%s4026_s21 + $0xb4] sm:$0x33 pattern:$0x76325410] }
  0x6c   : > { %3796 = vmatprep.mubr.msk.bf16.mxu0 %vm3977_vm0, %v3975_v1 }
  0x6d   : > { %3893 = vmatmul.mubr.msk.bf16.gmra.mxu1 %vm2017_vm1, %v1783_v31  ;;  %v3454_v31 = vld.sshfl [vmem:[%s4026_s21 + $0x80] sm:$0x33 pattern:$0x76325410]  ;;  %v1426_v37 = vcombine.low %v1418_v27, %v1425_v28  ;;  %v1080_v27 = vcombine.high %v3510_v18, %v3510_v18 }
  0x6e   : > { %3896 = vmatprep.mubr.msk.bf16.mxu1 %vm3977_vm0, %v3975_v1  ;;  %v1428_v39 = vcombine.low %v626_v30, %v3454_v31  ;;  %v634_v47 = vcombine.high %v3454_v31, %v3454_v31  ;;  %v3511_v28 = vld.sshfl [vmem:[%s4026_s21 + $0x164] sm:$0x33 pattern:$0x76325410] }
  0x6f   : > { %v1904_v35 = vcombine.low %v1080_v27, %v3511_v28  ;;  %v1088_v44 = vcombine.high %v3511_v28, %v3511_v28  ;;  %v3518_v28 = vld.sshfl [vmem:[%s4026_s21 + $0x180] sm:$0x33 pattern:$0x76325410] }
  0x70   : > { %v1442_v46 = vrot.slane %v1428_v39, %v4030_v11  ;;  %v1444_v56 = vcombine.low %v634_v47, %v3455_v40  ;;  %v690_v40 = vcombine.high %v3461_v32, %v3461_v32 }
  0x71   : > { %v1918_v43 = vrot.slane %v1904_v35, %v4030_v11  ;;  %v1920_v52 = vcombine.low %v1088_v44, %v3512_v36 }
  0x73   : > { %3797 = vmatmul.mubr.msk.bf16.gmra.mxu0 %vm2017_vm1, %v1375_v45  ;;  %v1435_v45 = vrot.slane %v1427_v38, %v4030_v11  ;;  %v1919_v51 = vcombine.low %v1911_v42, %v1918_v43  ;;  %v1928_v60 = vrot.slane %v1920_v52, %v4030_v11  ;;  %v3469_v42 = vld.sshfl [vmem:[%s4026_s21 + $0xbc] sm:$0x33 pattern:$0x76325410] }
  0x74   : > { %3800 = vmatprep.mubr.msk.bf16.mxu0 %vm3977_vm0, %v3975_v1 }
  0x75   : > { %3897 = vmatmul.mubr.msk.bf16.gmra.mxu1 %vm2017_vm1, %v1800_v49  ;;  %v3456_v49 = vld.sshfl [vmem:[%s4026_s21 + $0x88] sm:$0x33 pattern:$0x76325410]  ;;  %v1443_v55 = vcombine.low %v1435_v45, %v1442_v46  ;;  %v1096_v45 = vcombine.high %v3512_v36, %v3512_v36 }
  0x76   : > { %3900 = vmatprep.mubr.msk.bf16.mxu1 %vm3977_vm0, %v3975_v1  ;;  %v1445_v57 = vcombine.low %v642_v48, %v3456_v49  ;;  %v650_v2 = vcombine.high %v3456_v49, %v3456_v49  ;;  %v3513_v46 = vld.sshfl [vmem:[%s4026_s21 + $0x16c] sm:$0x33 pattern:$0x76325410] }
  0x77   : > { %v1921_v53 = vcombine.low %v1096_v45, %v3513_v46  ;;  %v1104_v62 = vcombine.high %v3513_v46, %v3513_v46  ;;  %v3520_v46 = vld.sshfl [vmem:[%s4026_s21 + $0x188] sm:$0x33 pattern:$0x76325410] }
  0x78   : > { %v1459_v0 = vrot.slane %v1445_v57, %v4030_v11  ;;  %v1461_v12 = vcombine.low %v650_v2, %v3457_v58  ;;  %v706_v58 = vcombine.high %v3463_v50, %v3463_v50 }
  0x79   : > { %v1935_v61 = vrot.slane %v1921_v53, %v4030_v11  ;;  %v1937_v7 = vcombine.low %v1104_v62, %v3514_v54 }
  0x7b   : > { %3801 = vmatmul.mubr.msk.bf16.gmra.mxu0 %vm2017_vm1, %v1392_v63  ;;  %v1452_v63 = vrot.slane %v1444_v56, %v4030_v11  ;;  %v1936_v6 = vcombine.low %v1928_v60, %v1935_v61  ;;  %v1945_v16 = vrot.slane %v1937_v7, %v4030_v11  ;;  %v3472_v60 = vld.sshfl [vmem:[%s4026_s21 + $0xc8] sm:$0x33 pattern:$0x76325410] }
  0x7c   : > { %3804 = vmatprep.mubr.msk.bf16.mxu0 %vm3977_vm0, %v3975_v1 }
  0x7d   : > { %3901 = vmatmul.mubr.msk.bf16.gmra.mxu1 %vm2017_vm1, %v1817_v4  ;;  %v3458_v4 = vld.sshfl [vmem:[%s4026_s21 + $0x90] sm:$0x33 pattern:$0x76325410]  ;;  %v1460_v10 = vcombine.low %v1452_v63, %v1459_v0  ;;  %v1112_v63 = vcombine.high %v3514_v54, %v3514_v54 }
  0x7e   : > { %3904 = vmatprep.mubr.msk.bf16.mxu1 %vm3977_vm0, %v3975_v1  ;;  %v1462_v13 = vcombine.low %v658_v3, %v3458_v4  ;;  %v666_v21 = vcombine.high %v3458_v4, %v3458_v4  ;;  %v3515_v0 = vld.sshfl [vmem:[%s4026_s21 + $0x174] sm:$0x33 pattern:$0x76325410] }
  0x7f   : > { %v1938_v8 = vcombine.low %v1112_v63, %v3515_v0  ;;  %v1120_v18 = vcombine.high %v3515_v0, %v3515_v0 }
  0x80   : > { %v1476_v20 = vrot.slane %v1462_v13, %v4030_v11  ;;  %v1478_v30 = vcombine.low %v666_v21, %v3459_v14  ;;  %v722_v14 = vcombine.high %v3465_v5, %v3465_v5 }
  0x81   : > { %v1952_v17 = vrot.slane %v1938_v8, %v4030_v11  ;;  %v1954_v26 = vcombine.low %v1120_v18, %v3516_v9 }
  0x83   : > { %3805 = vmatmul.mubr.msk.bf16.gmra.mxu0 %vm2017_vm1, %v1409_v19  ;;  %v1469_v19 = vrot.slane %v1461_v12, %v4030_v11  ;;  %v1953_v25 = vcombine.low %v1945_v16, %v1952_v17  ;;  %v1962_v34 = vrot.slane %v1954_v26, %v4030_v11 }
  0x84   : > { %3808 = vmatprep.mubr.msk.bf16.mxu0 %vm3977_vm0, %v3975_v1 }
  0x85   : > { %3905 = vmatmul.mubr.msk.bf16.gmra.mxu1 %vm2017_vm1, %v1834_v23  ;;  %v3460_v23 = vld.sshfl [vmem:[%s4026_s21 + $0x98] sm:$0x33 pattern:$0x76325410]  ;;  %v1477_v29 = vcombine.low %v1469_v19, %v1476_v20  ;;  %v1128_v19 = vcombine.high %v3516_v9, %v3516_v9 }
  0x86   : > { %3908 = vmatprep.mubr.msk.bf16.mxu1 %vm3977_vm0, %v3975_v1  ;;  %v1479_v31 = vcombine.low %v674_v22, %v3460_v23  ;;  %v682_v39 = vcombine.high %v3460_v23, %v3460_v23  ;;  %v3517_v20 = vld.sshfl [vmem:[%s4026_s21 + $0x17c] sm:$0x33 pattern:$0x76325410] }
  0x87   : > { %v1955_v27 = vcombine.low %v1128_v19, %v3517_v20  ;;  %v1136_v36 = vcombine.high %v3517_v20, %v3517_v20 }
  0x88   : > { %v1493_v38 = vrot.slane %v1479_v31, %v4030_v11  ;;  %v1495_v48 = vcombine.low %v682_v39, %v3461_v32  ;;  %v738_v32 = vcombine.high %v3467_v24, %v3467_v24 }
  0x89   : > { %v1969_v35 = vrot.slane %v1955_v27, %v4030_v11  ;;  %v1971_v44 = vcombine.low %v1136_v36, %v3518_v28 }
  0x8b   : > { %3809 = vmatmul.mubr.msk.bf16.gmra.mxu0 %vm2017_vm1, %v1426_v37  ;;  %v1486_v37 = vrot.slane %v1478_v30, %v4030_v11  ;;  %v1970_v43 = vcombine.low %v1962_v34, %v1969_v35  ;;  %v1979_v52 = vrot.slane %v1971_v44, %v4030_v11 }
  0x8c   : > { %3812 = vmatprep.mubr.msk.bf16.mxu0 %vm3977_vm0, %v3975_v1 }
  0x8d   : > { %3909 = vmatmul.mubr.msk.bf16.gmra.mxu1 %vm2017_vm1, %v1851_v41  ;;  %v3462_v41 = vld.sshfl [vmem:[%s4026_s21 + $0xa0] sm:$0x33 pattern:$0x76325410]  ;;  %v1494_v47 = vcombine.low %v1486_v37, %v1493_v38  ;;  %v1144_v37 = vcombine.high %v3518_v28, %v3518_v28 }
  0x8e   : > { %3912 = vmatprep.mubr.msk.bf16.mxu1 %vm3977_vm0, %v3975_v1  ;;  %v1496_v49 = vcombine.low %v690_v40, %v3462_v41  ;;  %v698_v57 = vcombine.high %v3462_v41, %v3462_v41  ;;  %v3519_v38 = vld.sshfl [vmem:[%s4026_s21 + $0x184] sm:$0x33 pattern:$0x76325410] }
  0x8f   : > { %v1972_v45 = vcombine.low %v1144_v37, %v3519_v38  ;;  %v1152_v54 = vcombine.high %v3519_v38, %v3519_v38 }
  0x90   : > { %v1510_v56 = vrot.slane %v1496_v49, %v4030_v11  ;;  %v1512_v3 = vcombine.low %v698_v57, %v3463_v50  ;;  %v754_v50 = vcombine.high %v3469_v42, %v3469_v42 }
  0x91   : > { %v1986_v53 = vrot.slane %v1972_v45, %v4030_v11  ;;  %v1988_v62 = vcombine.low %v1152_v54, %v3520_v46 }
  0x93   : > { %3813 = vmatmul.mubr.msk.bf16.gmra.mxu0 %vm2017_vm1, %v1443_v55  ;;  %v1503_v55 = vrot.slane %v1495_v48, %v4030_v11  ;;  %v1987_v61 = vcombine.low %v1979_v52, %v1986_v53 }
  0x94   : > { %3816 = vmatprep.mubr.msk.bf16.mxu0 %vm3977_vm0, %v3975_v1 }
  0x95   : > { %3913 = vmatmul.mubr.msk.bf16.gmra.mxu1 %vm2017_vm1, %v1868_v59  ;;  %v3464_v59 = vld.sshfl [vmem:[%s4026_s21 + $0xa8] sm:$0x33 pattern:$0x76325410]  ;;  %v1511_v2 = vcombine.low %v1503_v55, %v1510_v56  ;;  %v1160_v55 = vcombine.high %v3520_v46, %v3520_v46 }
  0x96   : > { %3916 = vmatprep.mubr.msk.bf16.mxu1 %vm3977_vm0, %v3975_v1  ;;  %v1513_v4 = vcombine.low %v706_v58, %v3464_v59  ;;  %v714_v13 = vcombine.high %v3464_v59, %v3464_v59  ;;  %v3521_v56 = vld.sshfl [vmem:[%s4026_s21 + $0x18c] sm:$0x3 pattern:$0x76325410] }
  0x97   : > { %v1989_v63 = vcombine.low %v1160_v55, %v3521_v56 }
  0x98   : > { %v1527_v12 = vrot.slane %v1513_v4, %v4030_v11  ;;  %v1529_v22 = vcombine.low %v714_v13, %v3465_v5  ;;  %v777_v4 = vcombine.high %v3472_v60, %v3472_v60  ;;  %v3471_v5 = vld.sshfl [vmem:[%s4026_s21 + $0xc4] sm:$0x3 pattern:$0x76325410] }
  0x99   : > { %v2003_v7 = vrot.slane %v1989_v63, %v4030_v11 }
  0x9b   : > { %3817 = vmatmul.mubr.msk.bf16.gmra.mxu0 %vm2017_vm1, %v1460_v10  ;;  %v1520_v10 = vrot.slane %v1512_v3, %v4030_v11 }
  0x9c   : > { %3820 = vmatprep.mubr.msk.bf16.mxu0 %vm3977_vm0, %v3975_v1 }
  0x9d   : > { %3917 = vmatmul.mubr.msk.bf16.gmra.mxu1 %vm2017_vm1, %v1885_v15  ;;  %v3466_v15 = vld.sshfl [vmem:[%s4026_s21 + $0xb0] sm:$0x33 pattern:$0x76325410]  ;;  %v1528_v21 = vcombine.low %v1520_v10, %v1527_v12  ;;  %v1581_v10 = vcombine.low %v3472_v60, %v777_v4 }
  0x9e   : > { %3920 = vmatprep.mubr.msk.bf16.mxu1 %vm3977_vm0, %v3975_v1  ;;  %v1530_v23 = vcombine.low %v722_v14, %v3466_v15  ;;  %v730_v31 = vcombine.high %v3466_v15, %v3466_v15 }
  0x9f   : > { %v1595_v14 = vrot.slane %v1581_v10, %v4030_v11 }
  0xa0   : > { %v1544_v30 = vrot.slane %v1530_v23, %v4030_v11  ;;  %v1546_v40 = vcombine.low %v730_v31, %v3467_v24 }
  0xa3   : > { %3821 = vmatmul.mubr.msk.bf16.gmra.mxu0 %vm2017_vm1, %v1477_v29  ;;  %v1537_v29 = vrot.slane %v1529_v22, %v4030_v11 }
  0xa4   : > { %3824 = vmatprep.mubr.msk.bf16.mxu0 %vm3977_vm0, %v3975_v1 }
  0xa5   : > { %3921 = vmatmul.mubr.msk.bf16.gmra.mxu1 %vm2017_vm1, %v1902_v33  ;;  %v3468_v33 = vld.sshfl [vmem:[%s4026_s21 + $0xb8] sm:$0x33 pattern:$0x76325410]  ;;  %v1545_v39 = vcombine.low %v1537_v29, %v1544_v30 }
  0xa6   : > { %3924 = vmatprep.mubr.msk.bf16.mxu1 %vm3977_vm0, %v3975_v1  ;;  %v1547_v41 = vcombine.low %v738_v32, %v3468_v33  ;;  %v746_v49 = vcombine.high %v3468_v33, %v3468_v33 }
  0xa8   : > { %v1561_v48 = vrot.slane %v1547_v41, %v4030_v11  ;;  %v1563_v58 = vcombine.low %v746_v49, %v3469_v42 }
  0xaa   : > { %v1571_v0 = vrot.slane %v1563_v58, %v4030_v11 }
  0xab   : > { %3825 = vmatmul.mubr.msk.bf16.gmra.mxu0 %vm2017_vm1, %v1494_v47  ;;  %v1554_v47 = vrot.slane %v1546_v40, %v4030_v11 }
  0xac   : > { %3828 = vmatprep.mubr.msk.bf16.mxu0 %vm3977_vm0, %v3975_v1 }
  0xad   : > { %3925 = vmatmul.mubr.msk.bf16.gmra.mxu1 %vm2017_vm1, %v1919_v51  ;;  %v3470_v51 = vld.sshfl [vmem:[%s4026_s21 + $0xc0] sm:$0x33 pattern:$0x76325410]  ;;  %v1562_v57 = vcombine.low %v1554_v47, %v1561_v48 }
  0xae   : > { %3928 = vmatprep.mubr.msk.bf16.mxu1 %vm3977_vm0, %v3975_v1  ;;  %v1564_v59 = vcombine.low %v754_v50, %v3470_v51  ;;  %v762_v3 = vcombine.high %v3470_v51, %v3470_v51 }
  0xb0   : > { %v1580_v9 = vcombine.low %v762_v3, %v3471_v5 }
  0xb2   : > { %v1588_v13 = vrot.slane %v1580_v9, %v4030_v11 }
  0xb3   : > { %3829 = vmatmul.mubr.msk.bf16.gmra.mxu0 %vm2017_vm1, %v1511_v2  ;;  %v1578_v2 = vrot.slane %v1564_v59, %v4030_v11 }
  0xb4   : > { %3832 = vmatprep.mubr.msk.bf16.mxu0 %vm3977_vm0, %v3975_v1  ;;  %v1596_v15 = vcombine.low %v1588_v13, %v1595_v14 }
  0xb5   : > { %3929 = vmatmul.mubr.msk.bf16.gmra.mxu1 %vm2017_vm1, %v1936_v6  ;;  %v1996_v6 = vrot.slane %v1988_v62, %v4030_v11  ;;  %v1579_v8 = vcombine.low %v1571_v0, %v1578_v2 }
  0xb6   : > { %3932 = vmatprep.mubr.msk.bf16.mxu1 %vm3977_vm0, %v3975_v1 }
  0xb7   : > { %v2004_v12 = vcombine.low %v1996_v6, %v2003_v7 }
  0xbb   : > { %3833 = vmatmul.mubr.msk.bf16.gmra.mxu0 %vm2017_vm1, %v1528_v21 }
  0xbc   : > { %3836 = vmatprep.mubr.msk.bf16.mxu0 %vm3977_vm0, %v3975_v1 }
  0xbd   : > { %3933 = vmatmul.mubr.msk.bf16.gmra.mxu1 %vm2017_vm1, %v1953_v25 }
  0xbe   : > { %3936 = vmatprep.mubr.msk.bf16.mxu1 %vm3977_vm0, %v3975_v1 }
  0xc3   : > { %3837 = vmatmul.mubr.msk.bf16.gmra.mxu0 %vm2017_vm1, %v1545_v39 }
  0xc4   : > { %3840 = vmatprep.mubr.msk.bf16.mxu0 %vm3977_vm0, %v3975_v1 }
  0xc5   : > { %3937 = vmatmul.mubr.msk.bf16.gmra.mxu1 %vm2017_vm1, %v1970_v43 }
  0xc6   : > { %3940 = vmatprep.mubr.msk.bf16.mxu1 %vm3977_vm0, %v3975_v1 }
  0xcb   : > { %3841 = vmatmul.mubr.msk.bf16.gmra.mxu0 %vm2017_vm1, %v1562_v57 }
  0xcc   : > { %3844 = vmatprep.mubr.msk.bf16.mxu0 %vm3977_vm0, %v3975_v1 }
  0xcd   : > { %3941 = vmatmul.mubr.msk.bf16.gmra.mxu1 %vm2017_vm1, %v1987_v61 }
  0xce   : > { %3944 = vmatprep.mubr.msk.bf16.mxu1 %vm3977_vm0, %v3975_v1 }
  0xd3   : > { %3845 = vmatmul.mubr.msk.bf16.gmra.mxu0 %vm2017_vm1, %v1579_v8 }
  0xd4   : > { %3848 = vmatprep.mubr.msk.bf16.mxu0 %vm3977_vm0, %v3975_v1 }
  0xd5   : > { %3945 = vmatmul.mubr.msk.bf16.gmra.mxu1 %vm2017_vm1, %v2004_v12 }
  0xdb   : > { %v4370_v16 = vpop.f32.mrf.mxu0  ;;  %3849 = vmatmul.mubr.msk.bf16.gmra.mxu0 %vm2017_vm1, %v1596_v15 }
  0xdc   : > { %4723 = vst [vmem:[#allocation2_spill] sm:$0xff] %v4370_v16 }
  0xdd   : > { %v4373_v17 = vpop.f32.mrf.mxu1  ;;  %v3754_v18 = vpop.f32.mrf.mxu0 }
  0xdf   : > { %v3854_v19 = vpop.f32.mrf.mxu1  ;;  %v4375_v20 = vpop.f32.mrf.mxu0 }
  0xe1   : > { %v4377_v21 = vpop.f32.mrf.mxu1  ;;  %v3755_v22 = vpop.f32.mrf.mxu0 }
  0xe3   : > { %v3855_v11 = vpop.f32.mrf.mxu1  ;;  %v4379_v23 = vpop.f32.mrf.mxu0 }
  0xe5   : > { %v4381_v1 = vpop.f32.mrf.mxu1  ;;  %v3758_v24 = vpop.f32.mrf.mxu0 }
  0xe7   : > { %v3858_v25 = vpop.f32.mrf.mxu1  ;;  %v4383_v26 = vpop.f32.mrf.mxu0 }
  0xe9   : > { %v4385_v27 = vpop.f32.mrf.mxu1  ;;  %v3759_v28 = vpop.f32.mrf.mxu0 }
  0xeb   : > { %v3859_v29 = vpop.f32.mrf.mxu1  ;;  %v4387_v30 = vpop.f32.mrf.mxu0 }
  0xed   : > { %v4389_v31 = vpop.f32.mrf.mxu1  ;;  %v3762_v32 = vpop.f32.mrf.mxu0 }
  0xef   : > { %v3862_v33 = vpop.f32.mrf.mxu1  ;;  %v4391_v34 = vpop.f32.mrf.mxu0 }
  0xf1   : > { %v4393_v35 = vpop.f32.mrf.mxu1  ;;  %v3763_v36 = vpop.f32.mrf.mxu0 }
  0xf3   : > { %v3863_v37 = vpop.f32.mrf.mxu1  ;;  %v4395_v38 = vpop.f32.mrf.mxu0 }
  0xf5   : > { %v4397_v39 = vpop.f32.mrf.mxu1  ;;  %v3766_v40 = vpop.f32.mrf.mxu0 }
  0xf7   : > { %v3866_v41 = vpop.f32.mrf.mxu1  ;;  %v4399_v42 = vpop.f32.mrf.mxu0 }
  0xf9   : > { %v4401_v43 = vpop.f32.mrf.mxu1  ;;  %v3767_v44 = vpop.f32.mrf.mxu0 }
  0xfb   : > { %v3867_v45 = vpop.f32.mrf.mxu1  ;;  %v4403_v46 = vpop.f32.mrf.mxu0 }
  0xfd   : > { %v4405_v47 = vpop.f32.mrf.mxu1  ;;  %v3770_v48 = vpop.f32.mrf.mxu0 }
  0xff   : > { %v3870_v49 = vpop.f32.mrf.mxu1  ;;  %v4407_v50 = vpop.f32.mrf.mxu0 }
 0x101   : > { %v4409_v51 = vpop.f32.mrf.mxu1  ;;  %v3771_v52 = vpop.f32.mrf.mxu0 }
 0x103   : > { %v3871_v53 = vpop.f32.mrf.mxu1  ;;  %v4411_v54 = vpop.f32.mrf.mxu0 }
 0x105   : > { %v4413_v55 = vpop.f32.mrf.mxu1  ;;  %v3774_v56 = vpop.f32.mrf.mxu0 }
 0x107   : > { %v3874_v57 = vpop.f32.mrf.mxu1  ;;  %v4415_v58 = vpop.f32.mrf.mxu0 }
 0x109   : > { %v4417_v59 = vpop.f32.mrf.mxu1  ;;  %v3775_v60 = vpop.f32.mrf.mxu0 }
 0x10b   : > { %v3875_v61 = vpop.f32.mrf.mxu1  ;;  %v4419_v62 = vpop.f32.mrf.mxu0 }
 0x10d   : > { %v4421_v63 = vpop.f32.mrf.mxu1  ;;  %v3778_v0 = vpop.f32.mrf.mxu0 }
 0x10f   : > { %v3878_v2 = vpop.f32.mrf.mxu1  ;;  %v4423_v3 = vpop.f32.mrf.mxu0 }
 0x111   : > { %v4425_v4 = vpop.f32.mrf.mxu1  ;;  %v3779_v5 = vpop.f32.mrf.mxu0 }
 0x113   : > { %v3879_v6 = vpop.f32.mrf.mxu1  ;;  %v4427_v7 = vpop.f32.mrf.mxu0 }
 0x115   : > { %v4429_v8 = vpop.f32.mrf.mxu1  ;;  %v3782_v9 = vpop.f32.mrf.mxu0 }
 0x117   : > { %v3882_v10 = vpop.f32.mrf.mxu1  ;;  %v4431_v12 = vpop.f32.mrf.mxu0 }
 0x119   : > { %v4433_v13 = vpop.f32.mrf.mxu1  ;;  %v3783_v14 = vpop.f32.mrf.mxu0 }
 0x11b   : > { %v3883_v15 = vpop.f32.mrf.mxu1  ;;  %v4435_v18 = vpop.f32.mrf.mxu0 }
 0x11d   : > { %v4437_v19 = vpop.f32.mrf.mxu1  ;;  %v3786_v22 = vpop.f32.mrf.mxu0 }
 0x11f   : > { %v3886_v11 = vpop.f32.mrf.mxu1  ;;  %v4439_v24 = vpop.f32.mrf.mxu0 }
 0x121   : > { %v4441_v25 = vpop.f32.mrf.mxu1  ;;  %v3787_v28 = vpop.f32.mrf.mxu0 }
 0x123   : > { %v3887_v29 = vpop.f32.mrf.mxu1  ;;  %v4443_v32 = vpop.f32.mrf.mxu0 }
 0x125   : > { %v4445_v33 = vpop.f32.mrf.mxu1  ;;  %v3790_v36 = vpop.f32.mrf.mxu0 }
 0x127   : > { %v3890_v37 = vpop.f32.mrf.mxu1  ;;  %v4447_v40 = vpop.f32.mrf.mxu0 }
 0x129   : > { %v4449_v41 = vpop.f32.mrf.mxu1  ;;  %v3791_v44 = vpop.f32.mrf.mxu0 }
 0x12b   : > { %v3891_v45 = vpop.f32.mrf.mxu1  ;;  %v4451_v48 = vpop.f32.mrf.mxu0 }
 0x12c   : > { %v4480_v45 = vld [vmem:[%s4711_s2] ss:$0 sm:$0xff] }
 0x12d   : > { %v4453_v49 = vpop.f32.mrf.mxu1  ;;  %v3794_v52 = vpop.f32.mrf.mxu0 }
 0x12e   : > { %v2738_v52 = vcombine.high %v4373_v17, %v4373_v17 }
 0x12f   : > { %v3894_v53 = vpop.f32.mrf.mxu1  ;;  %v4455_v56 = vpop.f32.mrf.mxu0 }
 0x130   : > { %4724 = vst [vmem:[#allocation3_spill] sm:$0xff] %v4455_v56 }
 0x131   : > { %v4457_v57 = vpop.f32.mrf.mxu1  ;;  %v3795_v60 = vpop.f32.mrf.mxu0 }
 0x132   : > { %4725 = vst [vmem:[#allocation4_spill] sm:$0xff] %v4457_v57 }
 0x133   : > { %v3895_v61 = vpop.f32.mrf.mxu1  ;;  %v4459_v0 = vpop.f32.mrf.mxu0 }
 0x134   : > { %4726 = vst [vmem:[#allocation5_spill] sm:$0xff] %v4459_v0  ;;  %v2689_v61 = vcombine.high %v4375_v20, %v4375_v20 }
 0x135   : > { %v4461_v2 = vpop.f32.mrf.mxu1  ;;  %v3798_v5 = vpop.f32.mrf.mxu0 }
 0x136   : > { %4727 = vst [vmem:[#allocation6_spill] sm:$0xff] %v4461_v2 }
 0x137   : > { %v3898_v6 = vpop.f32.mrf.mxu1  ;;  %v4463_v9 = vpop.f32.mrf.mxu0 }
 0x138   : > { %4728 = vst [vmem:[#allocation7_spill] sm:$0xff] %v4463_v9 }
 0x139   : > { %v4465_v10 = vpop.f32.mrf.mxu1  ;;  %v3799_v14 = vpop.f32.mrf.mxu0 }
 0x13a   : > { %4729 = vst [vmem:[#allocation8_spill] sm:$0xff] %v4465_v10 }
 0x13b   : > { %v3899_v15 = vpop.f32.mrf.mxu1  ;;  %v4467_v22 = vpop.f32.mrf.mxu0 }
 0x13c   : > { %4730 = vst [vmem:[#allocation9_spill] sm:$0xff] %v4467_v22 }
 0x13d   : > { %v4469_v11 = vpop.f32.mrf.mxu1  ;;  %v3802_v28 = vpop.f32.mrf.mxu0 }
 0x13e   : > { %4731 = vst [vmem:[#allocation10_spill] sm:$0xff] %v4469_v11  ;;  %v2762_v29 = vcombine.high %v4469_v11, %v4469_v11 }
 0x13f   : > { %v3902_v36 = vpop.f32.mrf.mxu1  ;;  %v4473_v37 = vpop.f32.mrf.mxu0 }
 0x140   : > { %4732 = vst [vmem:[#allocation11_spill] sm:$0xff] %v4473_v37  ;;  %v2713_v44 = vcombine.high %v4473_v37, %v4473_v37  ;;  %v2935_v5 = vmax.f32 %v4373_v17, %v2762_v29  ;;  %v4490_v36 = vcombine.high %v4480_v45, %v4480_v45  ;;  %v2739_v29 = vcombine.high %v4377_v21, %v4377_v21 }
 0x141   : > { %v2498_v53 = vpop.f32.mrf.mxu1  ;;  %v3803_v60 = vpop.f32.mrf.mxu0 }
 0x142   : > { %v2886_v6 = vmax.f32 %v4375_v20, %v2713_v44  ;;  %v2763_v14 = vcombine.high %v2498_v53, %v2498_v53  ;;  %v2936_v37 = vmax.f32 %v2738_v52, %v2498_v53  ;;  %v2690_v44 = vcombine.high %v4379_v23, %v4379_v23 }
 0x143   : > { %v3903_v15 = vpop.f32.mrf.mxu1  ;;  %v2303_v28 = vpop.f32.mrf.mxu0 }
 0x144   : > { %v2984_v11 = vmax.f32 %v2886_v6, %v2935_v5  ;;  %v2714_v16 = vcombine.high %v2303_v28, %v2303_v28  ;;  %v2887_v10 = vmax.f32 %v2689_v61, %v2303_v28  ;;  %v2937_v2 = vmax.f32 %v4377_v21, %v2763_v14 }
 0x145   : > { %v2503_v22 = vpop.f32.mrf.mxu1  ;;  %v3806_v60 = vpop.f32.mrf.mxu0  ;;  %v2691_v21 = vcombine.high %v4383_v26, %v4383_v26 }
 0x146   : > { %v3042_v9 = vadd.f32 %v4480_v45, %v2984_v11  ;;  %v2888_v17 = vmax.f32 %v4379_v23, %v2714_v16  ;;  %v2985_v20 = vmax.f32 %v2887_v10, %v2936_v37  ;;  %v2764_v15 = vcombine.high %v2503_v22, %v2503_v22 }
 0x147   : > { %v3906_v5 = vpop.f32.mrf.mxu1  ;;  %v2306_v52 = vpop.f32.mrf.mxu0  ;;  %v2938_v6 = vmax.f32 %v2739_v29, %v2503_v22  ;;  %v2740_v16 = vcombine.high %v4381_v1, %v4381_v1 }
 0x148   : > { %v2986_v53 = vmax.f32 %v2888_v17, %v2937_v2  ;;  %v3043_v61 = vadd.f32 %v4490_v36, %v2985_v20  ;;  %v2715_v28 = vcombine.high %v2306_v52, %v2306_v52  ;;  %v2889_v11 = vmax.f32 %v2690_v44, %v2306_v52 }
 0x149   : > { %v2506_v60 = vpop.f32.mrf.mxu1  ;;  %v3807_v14 = vpop.f32.mrf.mxu0  ;;  %v3091_v10 = vmax.f32 %v3042_v9, 0.0  ;;  %v2939_v23 = vmax.f32 %v4381_v1, %v2764_v15  ;;  %v2741_v1 = vcombine.high %v4385_v27, %v4385_v27 }
 0x14a   : > { %v3092_v37 = vmax.f32 %v3043_v61, 0.0  ;;  %v2890_v5 = vmax.f32 %v4383_v26, %v2715_v28  ;;  %v2987_v2 = vmax.f32 %v2889_v11, %v2938_v6  ;;  %v2765_v17 = vcombine.high %v2506_v60, %v2506_v60 }
 0x14b   : > { %v3907_v20 = vpop.f32.mrf.mxu1  ;;  %v2311_v22 = vpop.f32.mrf.mxu0  ;;  %v3044_v29 = vadd.f32 %v4480_v45, %v2986_v53  ;;  %v2940_v57 = vmax.f32 %v2740_v16, %v2506_v60  ;;  %v2692_v26 = vcombine.high %v4387_v30, %v4387_v30 }
 0x14c   : > { %v4507_v44 = vcombine.low %v3091_v10, %v3092_v37  ;;  %v2716_v52 = vcombine.high %v2311_v22, %v2311_v22  ;;  %v2988_v14 = vmax.f32 %v2890_v5, %v2939_v23  ;;  %v3045_v0 = vadd.f32 %v4490_v36, %v2987_v2 }
 0x14d   : > { %v2891_v56 = vmax.f32 %v2691_v21, %v2311_v22  ;;  %v2511_v9 = vpop.f32.mrf.mxu1  ;;  %v3810_v61 = vpop.f32.mrf.mxu0  ;;  %v2941_v28 = vmax.f32 %v4385_v27, %v2765_v17  ;;  %v3093_v5 = vmax.f32 %v3044_v29, 0.0 }
 0x14e   : > { %v2892_v15 = vmax.f32 %v4387_v30, %v2716_v52  ;;  %v2766_v53 = vcombine.high %v2511_v9, %v2511_v9  ;;  %v3046_v6 = vadd.f32 %v4480_v45, %v2988_v14  ;;  %v3094_v16 = vmax.f32 %v3045_v0, 0.0 }
 0x14f   : > { %v2989_v11 = vmax.f32 %v2891_v56, %v2940_v57  ;;  %v3910_v10 = vpop.f32.mrf.mxu1  ;;  %v2314_v60 = vpop.f32.mrf.mxu0  ;;  %v2942_v21 = vmax.f32 %v2741_v1, %v2511_v9  ;;  %v2742_v56 = vcombine.high %v4389_v31, %v4389_v31  ;;  %v2693_v57 = vcombine.high %v4391_v34, %v4391_v34 }
 0x150   : > { %v2717_v37 = vcombine.high %v2314_v60, %v2314_v60  ;;  %v2893_v23 = vmax.f32 %v2692_v26, %v2314_v60  ;;  %v2990_v2 = vmax.f32 %v2892_v15, %v2941_v28  ;;  %v2943_v30 = vmax.f32 %v4389_v31, %v2766_v53 }
 0x151   : > { %v3047_v20 = vadd.f32 %v4490_v36, %v2989_v11  ;;  %v2514_v22 = vpop.f32.mrf.mxu1  ;;  %v3811_v61 = vpop.f32.mrf.mxu0  ;;  %v3095_v0 = vmax.f32 %v3046_v6, 0.0  ;;  %v2743_v1 = vcombine.high %v4393_v35, %v4393_v35  ;;  %v3188_v26 = vcombine.low %v3093_v5, %v3094_v16 }
 0x152   : > { %v2894_v52 = vmax.f32 %v4391_v34, %v2717_v37  ;;  %v2991_v14 = vmax.f32 %v2893_v23, %v2942_v21  ;;  %v2767_v27 = vcombine.high %v2514_v22, %v2514_v22  ;;  %v2944_v11 = vmax.f32 %v2742_v56, %v2514_v22 }
 0x153   : > { %v3096_v17 = vmax.f32 %v3047_v20, 0.0  ;;  %v3911_v29 = vpop.f32.mrf.mxu1  ;;  %v2319_v9 = vpop.f32.mrf.mxu0  ;;  %v2694_v34 = vcombine.high %v4395_v38, %v4395_v38  ;;  %v3048_v6 = vadd.f32 %v4480_v45, %v2990_v2 }
 0x154   : > { %v2992_v15 = vmax.f32 %v2894_v52, %v2943_v30  ;;  %v3049_v53 = vadd.f32 %v4490_v36, %v2991_v14  ;;  %v2718_v10 = vcombine.high %v2319_v9, %v2319_v9  ;;  %v2895_v60 = vmax.f32 %v2693_v57, %v2319_v9 }
 0x155   : > { %v3189_v28 = vcombine.low %v3095_v0, %v3096_v17  ;;  %v2519_v21 = vpop.f32.mrf.mxu1  ;;  %v3814_v31 = vpop.f32.mrf.mxu0  ;;  %v2945_v16 = vmax.f32 %v4393_v35, %v2767_v27  ;;  %v2744_v52 = vcombine.high %v4397_v39, %v4397_v39  ;;  %v2695_v29 = vcombine.high %v4399_v42, %v4399_v42 }
 0x156   : > { %v2768_v37 = vcombine.high %v2519_v21, %v2519_v21  ;;  %v3050_v5 = vadd.f32 %v4480_v45, %v2992_v15  ;;  %v2896_v20 = vmax.f32 %v4395_v38, %v2718_v10  ;;  %v2993_v22 = vmax.f32 %v2895_v60, %v2944_v11 }
 0x157   : > { %v3634_v23 = vpack.c.bf16 %v3189_v28, %v3188_v26  ;;  %v3914_v61 = vpop.f32.mrf.mxu1  ;;  %v2322_v30 = vpop.f32.mrf.mxu0  ;;  %v3098_v14 = vmax.f32 %v3049_v53, 0.0  ;;  %v2946_v0 = vmax.f32 %v2743_v1, %v2519_v21  ;;  %v3097_v15 = vmax.f32 %v3048_v6, 0.0 }
 0x158   : > { %v2719_v56 = vcombine.high %v2322_v30, %v2322_v30  ;;  %v2994_v57 = vmax.f32 %v2896_v20, %v2945_v16  ;;  %v3051_v2 = vadd.f32 %v4490_v36, %v2993_v22  ;;  %v2897_v35 = vmax.f32 %v2694_v34, %v2322_v30 }
 0x159   : > { %3686 = vst [vmem:[%s4533_s27 + $0x8] sm:$0xff] %v3634_v23   ;;  %v2522_v27 = vpop.f32.mrf.mxu1  ;;  %v3815_v17 = vpop.f32.mrf.mxu0  ;;  %v2947_v38 = vmax.f32 %v4397_v39, %v2768_v37  ;;  %v3099_v28 = vmax.f32 %v3050_v5, 0.0  ;;  %v3190_v34 = vcombine.low %v3097_v15, %v3098_v14  ;;  %v2745_v30 = vcombine.high %v4401_v43, %v4401_v43 }
 0x15a   : > { %v2898_v9 = vmax.f32 %v4399_v42, %v2719_v56  ;;  %v2769_v26 = vcombine.high %v2522_v27, %v2522_v27  ;;  %v3100_v53 = vmax.f32 %v3051_v2, 0.0  ;;  %v2995_v11 = vmax.f32 %v2897_v35, %v2946_v0 }
 0x15b   : > { %v3915_v10 = vpop.f32.mrf.mxu1  ;;  %v2327_v60 = vpop.f32.mrf.mxu0  ;;  %v2948_v16 = vmax.f32 %v2744_v52, %v2522_v27  ;;  %v3052_v23 = vadd.f32 %v4480_v45, %v2994_v57  ;;  %v2696_v52 = vcombine.high %v4403_v46, %v4403_v46  ;;  %v2746_v0 = vcombine.high %v4405_v47, %v4405_v47 }
 0x15c   : > { %v2996_v31 = vmax.f32 %v2898_v9, %v2947_v38  ;;  %v2720_v1 = vcombine.high %v2327_v60, %v2327_v60  ;;  %v2899_v21 = vmax.f32 %v2695_v29, %v2327_v60  ;;  %v3191_v20 = vcombine.low %v3099_v28, %v3100_v53 }
 0x15d   : > { %v3053_v22 = vadd.f32 %v4490_v36, %v2995_v11  ;;  %v2527_v39 = vpop.f32.mrf.mxu1  ;;  %v3818_v37 = vpop.f32.mrf.mxu0  ;;  %v2949_v6 = vmax.f32 %v4401_v43, %v2769_v26  ;;  %v2697_v29 = vcombine.high %v4407_v50, %v4407_v50  ;;  %v2747_v15 = vcombine.high %v4409_v51, %v4409_v51 }
 0x15e   : > { %v3054_v42 = vadd.f32 %v4480_v45, %v2996_v31  ;;  %v2900_v5 = vmax.f32 %v4403_v46, %v2720_v1  ;;  %v2997_v61 = vmax.f32 %v2899_v21, %v2948_v16  ;;  %v3639_v14 = vpack.c.bf16 %v3191_v20, %v3190_v34 }
 0x15f   : > { %v2770_v56 = vcombine.high %v2527_v39, %v2527_v39  ;;  %v3918_v57 = vpop.f32.mrf.mxu1  ;;  %v2330_v2 = vpop.f32.mrf.mxu0  ;;  %v3102_v35 = vmax.f32 %v3053_v22, 0.0  ;;  %v2950_v38 = vmax.f32 %v2745_v30, %v2527_v39  ;;  %v3101_v28 = vmax.f32 %v3052_v23, 0.0 }
 0x160   : > { %v2998_v27 = vmax.f32 %v2900_v5, %v2949_v6  ;;  %v3055_v17 = vadd.f32 %v4490_v36, %v2997_v61  ;;  %3687 = vst [vmem:[%s4533_s27 + $0x10] sm:$0xff] %v3639_v14   ;;  %v2721_v43 = vcombine.high %v2330_v2, %v2330_v2  ;;  %v2901_v9 = vmax.f32 %v2696_v52, %v2330_v2 }
 0x161   : > { %v2530_v26 = vpop.f32.mrf.mxu1  ;;  %v3819_v46 = vpop.f32.mrf.mxu0  ;;  %v3103_v53 = vmax.f32 %v3054_v42, 0.0  ;;  %v2951_v10 = vmax.f32 %v4405_v47, %v2770_v56  ;;  %v3192_v34 = vcombine.low %v3101_v28, %v3102_v35  ;;  %v2698_v47 = vcombine.high %v4411_v54, %v4411_v54 }
 0x162   : > { %v3104_v11 = vmax.f32 %v3055_v17, 0.0  ;;  %v2902_v60 = vmax.f32 %v4407_v50, %v2721_v43  ;;  %v2999_v31 = vmax.f32 %v2901_v9, %v2950_v38  ;;  %v2771_v16 = vcombine.high %v2530_v26, %v2530_v26 }
 0x163   : > { %v3919_v1 = vpop.f32.mrf.mxu1  ;;  %v2335_v21 = vpop.f32.mrf.mxu0  ;;  %v3056_v20 = vadd.f32 %v4480_v45, %v2998_v27  ;;  %v2952_v23 = vmax.f32 %v2746_v0, %v2530_v26 }
 0x164   : > { %v3193_v22 = vcombine.low %v3103_v53, %v3104_v11  ;;  %v2722_v39 = vcombine.high %v2335_v21, %v2335_v21  ;;  %v3000_v37 = vmax.f32 %v2902_v60, %v2951_v10  ;;  %v3057_v6 = vadd.f32 %v4490_v36, %v2999_v31 }
 0x165   : > { %v2903_v42 = vmax.f32 %v2697_v29, %v2335_v21  ;;  %v2535_v5 = vpop.f32.mrf.mxu1  ;;  %v3822_v61 = vpop.f32.mrf.mxu0  ;;  %v2953_v56 = vmax.f32 %v4409_v51, %v2771_v16  ;;  %v3105_v38 = vmax.f32 %v3056_v20, 0.0  ;;  %v2748_v11 = vcombine.high %v4413_v55, %v4413_v55 }
 0x166   : > { %v3644_v50 = vpack.c.bf16 %v3193_v22, %v3192_v34  ;;  %v2904_v30 = vmax.f32 %v4411_v54, %v2722_v39  ;;  %v2772_v52 = vcombine.high %v2535_v5, %v2535_v5  ;;  %v3058_v14 = vadd.f32 %v4480_v45, %v3000_v37 }
 0x167   : > { %v3001_v57 = vmax.f32 %v2903_v42, %v2952_v23  ;;  %v3922_v2 = vpop.f32.mrf.mxu1  ;;  %v2338_v35 = vpop.f32.mrf.mxu0  ;;  %v3106_v27 = vmax.f32 %v3057_v6, 0.0  ;;  %v2954_v0 = vmax.f32 %v2747_v15, %v2535_v5  ;;  %v2699_v15 = vcombine.high %v4415_v58, %v4415_v58 }
 0x168   : > { %3688 = vst [vmem:[%s4533_s27 + $0x18] sm:$0xff] %v3644_v50   ;;  %v2723_v17 = vcombine.high %v2338_v35, %v2338_v35  ;;  %v2905_v29 = vmax.f32 %v2698_v47, %v2338_v35  ;;  %v3002_v43 = vmax.f32 %v2904_v30, %v2953_v56  ;;  %v2955_v54 = vmax.f32 %v4413_v55, %v2772_v52 }
 0x169   : > { %v3059_v9 = vadd.f32 %v4490_v36, %v3001_v57  ;;  %v2538_v26 = vpop.f32.mrf.mxu1  ;;  %v3823_v46 = vpop.f32.mrf.mxu0  ;;  %v3107_v10 = vmax.f32 %v3058_v14, 0.0  ;;  %v2749_v1 = vcombine.high %v4417_v59, %v4417_v59  ;;  %v3194_v21 = vcombine.low %v3105_v38, %v3106_v27 }
 0x16a   : > { %v2906_v28 = vmax.f32 %v4415_v58, %v2723_v17  ;;  %v3003_v53 = vmax.f32 %v2905_v29, %v2954_v0  ;;  %v2773_v51 = vcombine.high %v2538_v26, %v2538_v26  ;;  %v2956_v39 = vmax.f32 %v2748_v11, %v2538_v26 }
 0x16b   : > { %v3108_v60 = vmax.f32 %v3059_v9, 0.0  ;;  %v3923_v31 = vpop.f32.mrf.mxu1  ;;  %v2343_v16 = vpop.f32.mrf.mxu0  ;;  %v2700_v58 = vcombine.high %v4419_v62, %v4419_v62  ;;  %v3060_v42 = vadd.f32 %v4480_v45, %v3002_v43  ;;  %v2750_v57 = vcombine.high %v4421_v63, %v4421_v63 }
 0x16c   : > { %v3004_v34 = vmax.f32 %v2906_v28, %v2955_v54  ;;  %v3061_v20 = vadd.f32 %v4490_v36, %v3003_v53  ;;  %v2724_v37 = vcombine.high %v2343_v16, %v2343_v16  ;;  %v2907_v6 = vmax.f32 %v2699_v15, %v2343_v16 }
 0x16d   : > { %v3195_v22 = vcombine.low %v3107_v10, %v3108_v60  ;;  %v2543_v55 = vpop.f32.mrf.mxu1  ;;  %v3826_v23 = vpop.f32.mrf.mxu0  ;;  %v2957_v5 = vmax.f32 %v4417_v59, %v2773_v51  ;;  %v2701_v43 = vcombine.high %v4423_v3, %v4423_v3  ;;  %v3109_v46 = vmax.f32 %v3060_v42, 0.0 }
 0x16e   : > { %v2774_v61 = vcombine.high %v2543_v55, %v2543_v55  ;;  %v3062_v50 = vadd.f32 %v4480_v45, %v3004_v34  ;;  %v2908_v30 = vmax.f32 %v4419_v62, %v2724_v37  ;;  %v3005_v52 = vmax.f32 %v2907_v6, %v2956_v39 }
 0x16f   : > { %v3649_v47 = vpack.c.bf16 %v3195_v22, %v3194_v21  ;;  %v3926_v14 = vpop.f32.mrf.mxu1  ;;  %v2346_v56 = vpop.f32.mrf.mxu0  ;;  %v3110_v2 = vmax.f32 %v3061_v20, 0.0  ;;  %v2958_v17 = vmax.f32 %v2749_v1, %v2543_v55  ;;  %v2751_v6 = vcombine.high %v4425_v4, %v4425_v4 }
 0x170   : > { %v2725_v35 = vcombine.high %v2346_v56, %v2346_v56  ;;  %v3006_v27 = vmax.f32 %v2908_v30, %v2957_v5  ;;  %v3063_v0 = vadd.f32 %v4490_v36, %v3005_v52  ;;  %v2909_v59 = vmax.f32 %v2700_v58, %v2346_v56 }
 0x171   : > { %3689 = vst [vmem:[%s4533_s27 + $0x20] sm:$0xff] %v3649_v47   ;;  %v2546_v29 = vpop.f32.mrf.mxu1  ;;  %v3827_v38 = vpop.f32.mrf.mxu0  ;;  %v2959_v62 = vmax.f32 %v4421_v63, %v2774_v61  ;;  %v3111_v54 = vmax.f32 %v3062_v50, 0.0  ;;  %v3196_v16 = vcombine.low %v3109_v46, %v3110_v2  ;;  %v2702_v55 = vcombine.high %v4427_v7, %v4427_v7 }
 0x172   : > { %v2910_v9 = vmax.f32 %v4423_v3, %v2725_v35  ;;  %v2775_v26 = vcombine.high %v2546_v29, %v2546_v29  ;;  %v3112_v28 = vmax.f32 %v3063_v0, 0.0  ;;  %v3007_v53 = vmax.f32 %v2909_v59, %v2958_v17 }
 0x173   : > { %v3927_v51 = vpop.f32.mrf.mxu1  ;;  %v2351_v11 = vpop.f32.mrf.mxu0  ;;  %v2960_v10 = vmax.f32 %v2750_v57, %v2546_v29  ;;  %v3064_v1 = vadd.f32 %v4480_v45, %v3006_v27  ;;  %v2752_v61 = vcombine.high %v4429_v8, %v4429_v8  ;;  %v2703_v52 = vcombine.high %v4431_v12, %v4431_v12 }
 0x174   : > { %v3008_v15 = vmax.f32 %v2910_v9, %v2959_v62  ;;  %v2726_v60 = vcombine.high %v2351_v11, %v2351_v11  ;;  %v2911_v31 = vmax.f32 %v2701_v43, %v2351_v11  ;;  %v3197_v21 = vcombine.low %v3111_v54, %v3112_v28 }
 0x175   : > { %v3065_v34 = vadd.f32 %v4490_v36, %v3007_v53  ;;  %v2551_v63 = vpop.f32.mrf.mxu1  ;;  %v3830_v20 = vpop.f32.mrf.mxu0  ;;  %v2961_v22 = vmax.f32 %v4425_v4, %v2775_v26  ;;  %v2753_v2 = vcombine.high %v4433_v13, %v4433_v13  ;;  %v3113_v35 = vmax.f32 %v3064_v1, 0.0 }
 0x176   : > { %v3066_v3 = vadd.f32 %v4480_v45, %v3008_v15  ;;  %v2912_v39 = vmax.f32 %v4427_v7, %v2726_v60  ;;  %v3009_v37 = vmax.f32 %v2911_v31, %v2960_v10  ;;  %v3654_v23 = vpack.c.bf16 %v3197_v21, %v3196_v16 }
 0x177   : > { %v2776_v58 = vcombine.high %v2551_v63, %v2551_v63  ;;  %v3930_v42 = vpop.f32.mrf.mxu1  ;;  %v2354_v5 = vpop.f32.mrf.mxu0  ;;  %v3114_v47 = vmax.f32 %v3065_v34, 0.0  ;;  %v2962_v14 = vmax.f32 %v2751_v6, %v2551_v63 }
 0x178   : > { %v3010_v50 = vmax.f32 %v2912_v39, %v2961_v22  ;;  %v3067_v30 = vadd.f32 %v4490_v36, %v3009_v37  ;;  %3690 = vst [vmem:[%s4533_s27 + $0x28] sm:$0xff] %v3654_v23   ;;  %v2727_v4 = vcombine.high %v2354_v5, %v2354_v5  ;;  %v2913_v56 = vmax.f32 %v2702_v55, %v2354_v5 }
 0x179   : > { %v2554_v57 = vpop.f32.mrf.mxu1  ;;  %v3831_v7 = vpop.f32.mrf.mxu0  ;;  %v3115_v27 = vmax.f32 %v3066_v3, 0.0  ;;  %v2963_v17 = vmax.f32 %v4429_v8, %v2776_v58  ;;  %v3198_v9 = vcombine.low %v3113_v35, %v3114_v47  ;;  %v2704_v8 = vcombine.high %v4435_v18, %v4435_v18 }
 0x17a   : > { %v3116_v0 = vmax.f32 %v3067_v30, 0.0  ;;  %v2914_v59 = vmax.f32 %v4431_v12, %v2727_v4  ;;  %v3011_v29 = vmax.f32 %v2913_v56, %v2962_v14  ;;  %v2777_v38 = vcombine.high %v2554_v57, %v2554_v57 }
 0x17b   : > { %v3931_v43 = vpop.f32.mrf.mxu1  ;;  %v2359_v62 = vpop.f32.mrf.mxu0  ;;  %v3068_v26 = vadd.f32 %v4480_v45, %v3010_v50  ;;  %v2964_v51 = vmax.f32 %v2752_v61, %v2554_v57  ;;  %v2754_v61 = vcombine.high %v4437_v19, %v4437_v19  ;;  %v2705_v47 = vcombine.high %v4439_v24, %v4439_v24 }
 0x17c   : > { %v3199_v46 = vcombine.low %v3115_v27, %v3116_v0  ;;  %v2728_v54 = vcombine.high %v2359_v62, %v2359_v62  ;;  %v3012_v28 = vmax.f32 %v2914_v59, %v2963_v17  ;;  %v3069_v53 = vadd.f32 %v4490_v36, %v3011_v29 }
 0x17d   : > { %v2915_v11 = vmax.f32 %v2703_v52, %v2359_v62  ;;  %v2559_v15 = vpop.f32.mrf.mxu1  ;;  %v3834_v10 = vpop.f32.mrf.mxu0  ;;  %v2965_v1 = vmax.f32 %v4433_v13, %v2777_v38  ;;  %v3117_v37 = vmax.f32 %v3068_v26, 0.0  ;;  %v2755_v4 = vcombine.high %v4441_v25, %v4441_v25 }
 0x17e   : > { %v3659_v12 = vpack.c.bf16 %v3199_v46, %v3198_v9  ;;  %v2916_v60 = vmax.f32 %v4435_v18, %v2728_v54  ;;  %v2778_v31 = vcombine.high %v2559_v15, %v2559_v15  ;;  %v3070_v16 = vadd.f32 %v4480_v45, %v3012_v28 }
 0x17f   : > { %v3013_v21 = vmax.f32 %v2915_v11, %v2964_v51  ;;  %v3934_v34 = vpop.f32.mrf.mxu1  ;;  %v2362_v63 = vpop.f32.mrf.mxu0  ;;  %v3118_v20 = vmax.f32 %v3069_v53, 0.0  ;;  %v2966_v3 = vmax.f32 %v2753_v2, %v2559_v15  ;;  %v2756_v28 = vcombine.high %v4445_v33, %v4445_v33 }
 0x180   : > { %3691 = vst [vmem:[%s4533_s27 + $0x30] sm:$0xff] %v3659_v12   ;;  %v2729_v22 = vcombine.high %v2362_v63, %v2362_v63  ;;  %v2917_v39 = vmax.f32 %v2704_v8, %v2362_v63  ;;  %v3014_v6 = vmax.f32 %v2916_v60, %v2965_v1  ;;  %v2967_v18 = vmax.f32 %v4437_v19, %v2778_v31 }
 0x181   : > { %v3071_v55 = vadd.f32 %v4490_v36, %v3013_v21  ;;  %v2562_v23 = vpop.f32.mrf.mxu1  ;;  %v3835_v58 = vpop.f32.mrf.mxu0  ;;  %v3119_v50 = vmax.f32 %v3070_v16, 0.0  ;;  %v3200_v56 = vcombine.low %v3117_v37, %v3118_v20  ;;  %v2707_v60 = vcombine.high %v4447_v40, %v4447_v40 }
 0x182   : > { %v2918_v42 = vmax.f32 %v4439_v24, %v2729_v22  ;;  %v3015_v5 = vmax.f32 %v2917_v39, %v2966_v3  ;;  %v2779_v13 = vcombine.high %v2562_v23, %v2562_v23  ;;  %v2968_v35 = vmax.f32 %v2754_v61, %v2562_v23 }
 0x183   : > { %v3120_v30 = vmax.f32 %v3071_v55, 0.0  ;;  %v3935_v52 = vpop.f32.mrf.mxu1  ;;  %v2367_v14 = vpop.f32.mrf.mxu0  ;;  %v2706_v24 = vcombine.high %v4443_v32, %v4443_v32  ;;  %v3072_v59 = vadd.f32 %v4480_v45, %v3014_v6 }
 0x184   : > { %v3016_v57 = vmax.f32 %v2918_v42, %v2967_v18  ;;  %v3073_v7 = vadd.f32 %v4490_v36, %v3015_v5  ;;  %v2730_v27 = vcombine.high %v2367_v14, %v2367_v14  ;;  %v2919_v0 = vmax.f32 %v2705_v47, %v2367_v14 }
 0x185   : > { %v3201_v2 = vcombine.low %v3119_v50, %v3120_v30  ;;  %v2567_v19 = vpop.f32.mrf.mxu1  ;;  %v3838_v17 = vpop.f32.mrf.mxu0  ;;  %v2969_v29 = vmax.f32 %v4441_v25, %v2779_v13  ;;  %v3121_v1 = vmax.f32 %v3072_v59, 0.0  ;;  %v2757_v47 = vcombine.high %v4449_v41, %v4449_v41 }
 0x186   : > { %v2780_v38 = vcombine.high %v2567_v19, %v2567_v19  ;;  %v3074_v62 = vadd.f32 %v4480_v45, %v3016_v57  ;;  %v2920_v9 = vmax.f32 %v4443_v32, %v2730_v27  ;;  %v3017_v26 = vmax.f32 %v2919_v0, %v2968_v35  ;;  %v4733_v35 = vld [vmem:[#allocation3_spill] sm:$0xff] }
 0x187   : > { %v3664_v43 = vpack.c.bf16 %v3201_v2, %v3200_v56  ;;  %v3938_v46 = vpop.f32.mrf.mxu1  ;;  %v2370_v54 = vpop.f32.mrf.mxu0  ;;  %v3122_v53 = vmax.f32 %v3073_v7, 0.0  ;;  %v2970_v10 = vmax.f32 %v2755_v4, %v2567_v19  ;;  %v2708_v50 = vcombine.high %v4451_v48, %v4451_v48 }
 0x188   : > { %v2731_v51 = vcombine.high %v2370_v54, %v2370_v54  ;;  %v3018_v11 = vmax.f32 %v2920_v9, %v2969_v29  ;;  %v3075_v15 = vadd.f32 %v4490_v36, %v3017_v26  ;;  %v2921_v25 = vmax.f32 %v2706_v24, %v2370_v54  ;;  %v4734_v24 = vld [vmem:[#allocation4_spill] sm:$0xff] }
 0x189   : > { %3692 = vst [vmem:[%s4533_s27 + $0x38] sm:$0xff] %v3664_v43   ;;  %v2570_v8 = vpop.f32.mrf.mxu1  ;;  %v3839_v12 = vpop.f32.mrf.mxu0  ;;  %v2971_v32 = vmax.f32 %v4445_v33, %v2780_v38  ;;  %v3123_v21 = vmax.f32 %v3074_v62, 0.0  ;;  %v3202_v55 = vcombine.low %v3121_v1, %v3122_v53  ;;  %v2758_v56 = vcombine.high %v4453_v49, %v4453_v49 }
 0x18a   : > { %v2922_v31 = vmax.f32 %v4447_v40, %v2731_v51  ;;  %v2781_v16 = vcombine.high %v2570_v8, %v2570_v8  ;;  %v3124_v34 = vmax.f32 %v3075_v15, 0.0  ;;  %v3019_v63 = vmax.f32 %v2921_v25, %v2970_v10 }
 0x18b   : > { %v3939_v20 = vpop.f32.mrf.mxu1  ;;  %v2375_v3 = vpop.f32.mrf.mxu0  ;;  %v2972_v39 = vmax.f32 %v2756_v28, %v2570_v8  ;;  %v3076_v23 = vadd.f32 %v4480_v45, %v3018_v11  ;;  %v2709_v27 = vcombine.high %v4733_v35, %v4733_v35  ;;  %v2759_v59 = vcombine.high %v4734_v24, %v4734_v24 }
 0x18c   : > { %v3020_v22 = vmax.f32 %v2922_v31, %v2971_v32  ;;  %v2732_v37 = vcombine.high %v2375_v3, %v2375_v3  ;;  %v2923_v6 = vmax.f32 %v2707_v60, %v2375_v3  ;;  %v3203_v58 = vcombine.low %v3123_v21, %v3124_v34 }
 0x18d   : > { %v3077_v18 = vadd.f32 %v4490_v36, %v3019_v63  ;;  %v2575_v33 = vpop.f32.mrf.mxu1  ;;  %v3842_v42 = vpop.f32.mrf.mxu0  ;;  %v2973_v5 = vmax.f32 %v4449_v41, %v2781_v16  ;;  %v3125_v29 = vmax.f32 %v3076_v23, 0.0  ;;  %v4736_v23 = vld [vmem:[#allocation6_spill] sm:$0xff] }
 0x18e   : > { %v3078_v40 = vadd.f32 %v4480_v45, %v3020_v22  ;;  %v2924_v13 = vmax.f32 %v4451_v48, %v2732_v37  ;;  %v3021_v61 = vmax.f32 %v2923_v6, %v2972_v39  ;;  %v3669_v30 = vpack.c.bf16 %v3203_v58, %v3202_v55 }
 0x18f   : > { %v2782_v52 = vcombine.high %v2575_v33, %v2575_v33  ;;  %v3942_v14 = vpop.f32.mrf.mxu1  ;;  %v2378_v4 = vpop.f32.mrf.mxu0  ;;  %v3126_v57 = vmax.f32 %v3077_v18, 0.0  ;;  %v2974_v0 = vmax.f32 %v2757_v47, %v2575_v33  ;;  %v2760_v58 = vcombine.high %v4736_v23, %v4736_v23 }
 0x190   : > { %v3022_v7 = vmax.f32 %v2924_v13, %v2973_v5  ;;  %v3079_v2 = vadd.f32 %v4490_v36, %v3021_v61  ;;  %3693 = vst [vmem:[%s4533_s27 + $0x40] sm:$0xff] %v3669_v30   ;;  %v2733_v41 = vcombine.high %v2378_v4, %v2378_v4  ;;  %v2925_v19 = vmax.f32 %v2708_v50, %v2378_v4  ;;  %v4737_v61 = vld [vmem:[#allocation7_spill] sm:$0xff] }
 0x191   : > { %v2578_v17 = vpop.f32.mrf.mxu1  ;;  %v3843_v48 = vpop.f32.mrf.mxu0  ;;  %v3127_v38 = vmax.f32 %v3078_v40, 0.0  ;;  %v2975_v62 = vmax.f32 %v4453_v49, %v2782_v52  ;;  %v3204_v53 = vcombine.low %v3125_v29, %v3126_v57  ;;  %v4735_v49 = vld [vmem:[#allocation5_spill] sm:$0xff]  ;;  %v2711_v52 = vcombine.high %v4737_v61, %v4737_v61 }
 0x192   : > { %v3128_v43 = vmax.f32 %v3079_v2, 0.0  ;;  %v2926_v9 = vmax.f32 %v4733_v35, %v2733_v41  ;;  %v3023_v26 = vmax.f32 %v2925_v19, %v2974_v0  ;;  %v2783_v46 = vcombine.high %v2578_v17, %v2578_v17 }
 0x193   : > { %v3943_v54 = vpop.f32.mrf.mxu1  ;;  %v2383_v28 = vpop.f32.mrf.mxu0  ;;  %v3080_v51 = vadd.f32 %v4480_v45, %v3022_v7  ;;  %v2976_v8 = vmax.f32 %v2758_v56, %v2578_v17  ;;  %v2710_v31 = vcombine.high %v4735_v49, %v4735_v49  ;;  %v4738_v7 = vld [vmem:[#allocation9_spill] sm:$0xff] }
 0x194   : > { %v3205_v11 = vcombine.low %v3127_v38, %v3128_v43  ;;  %v2734_v15 = vcombine.high %v2383_v28, %v2383_v28  ;;  %v3024_v10 = vmax.f32 %v2926_v9, %v2975_v62  ;;  %v3081_v25 = vadd.f32 %v4490_v36, %v3023_v26 }
 0x195   : > { %v2927_v12 = vmax.f32 %v2709_v27, %v2383_v28  ;;  %v2583_v60 = vpop.f32.mrf.mxu1  ;;  %v3846_v32 = vpop.f32.mrf.mxu0  ;;  %v2977_v63 = vmax.f32 %v4734_v24, %v2783_v46  ;;  %v3129_v18 = vmax.f32 %v3080_v51, 0.0  ;;  %v2712_v2 = vcombine.high %v4738_v7, %v4738_v7  ;;  %v4740_v28 = vld [vmem:[#allocation2_spill] sm:$0xff] }
 0x196   : > { %v3674_v16 = vpack.c.bf16 %v3205_v11, %v3204_v53  ;;  %v2928_v1 = vmax.f32 %v4735_v49, %v2734_v15  ;;  %v2784_v21 = vcombine.high %v2583_v60, %v2583_v60  ;;  %v3082_v34 = vadd.f32 %v4480_v45, %v3024_v10  ;;  %v4742_v49 = vld [vmem:[#allocation10_spill] sm:$0xff] }
 0x197   : > { %v3025_v20 = vmax.f32 %v2927_v12, %v2976_v8  ;;  %v3946_v3 = vpop.f32.mrf.mxu1  ;;  %v2386_v22 = vpop.f32.mrf.mxu0  ;;  %v3130_v39 = vmax.f32 %v3081_v25, 0.0  ;;  %v2978_v37 = vmax.f32 %v2759_v59, %v2583_v60  ;;  %v4739_v59 = vld [vmem:[#allocation8_spill] sm:$0xff]  ;;  %v2688_v53 = vcombine.high %v4740_v28, %v4740_v28  ;;  %v4741_v60 = vld [vmem:[#allocation11_spill] sm:$0xff] }
 0x198   : > { %3694 = vst [vmem:[%s4533_s27 + $0x48] sm:$0xff] %v3674_v16   ;;  %v2735_v6 = vcombine.high %v2386_v22, %v2386_v22  ;;  %v2929_v55 = vmax.f32 %v2710_v31, %v2386_v22  ;;  %v3026_v33 = vmax.f32 %v2928_v1, %v2977_v63  ;;  %v2979_v13 = vmax.f32 %v4736_v23, %v2784_v21 }
 0x199   : > { %v3083_v42 = vadd.f32 %v4490_v36, %v3025_v20  ;;  %v2586_v40 = vpop.f32.mrf.mxu1  ;;  %v3847_v5 = vpop.f32.mrf.mxu0  ;;  %v3131_v14 = vmax.f32 %v3082_v34, 0.0  ;;  %v3206_v35 = vcombine.low %v3129_v18, %v3130_v39  ;;  %v2761_v29 = vcombine.high %v4739_v59, %v4739_v59 }
 0x19a   : > { %v2930_v47 = vmax.f32 %v4737_v61, %v2735_v6  ;;  %v3027_v50 = vmax.f32 %v2929_v55, %v2978_v37  ;;  %v2785_v30 = vcombine.high %v2586_v40, %v2586_v40  ;;  %v2980_v0 = vmax.f32 %v2760_v58, %v2586_v40 }
 0x19b   : > { %v3132_v4 = vmax.f32 %v3083_v42, 0.0  ;;  %v2391_v56 = vpop.f32.mrf.mxu0  ;;  %v3947_v57 = vpop.f32.mrf.mxu1  ;;  %v3084_v38 = vadd.f32 %v4480_v45, %v3026_v33  ;;  %v2884_v51 = vmax.f32 %v4740_v28, %v2712_v2  ;;  %v2885_v32 = vmax.f32 %v2688_v53, %v4741_v60 }
 0x19c   : > { %v3028_v27 = vmax.f32 %v2930_v47, %v2979_v13  ;;  %v3085_v19 = vadd.f32 %v4490_v36, %v3027_v50  ;;  %v2736_v17 = vcombine.high %v2391_v56, %v2391_v56  ;;  %v2931_v48 = vmax.f32 %v2711_v52, %v2391_v56 }
 0x19d   : > { %v3207_v41 = vcombine.low %v3131_v14, %v3132_v4  ;;  %v3850_v24 = vpop.f32.mrf.mxu0  ;;  %v2981_v43 = vmax.f32 %v4739_v59, %v2785_v30  ;;  %v3133_v1 = vmax.f32 %v3084_v38, 0.0 }
 0x19e   : > { %v3086_v9 = vadd.f32 %v4480_v45, %v3028_v27  ;;  %v2932_v26 = vmax.f32 %v4738_v7, %v2736_v17  ;;  %v3029_v46 = vmax.f32 %v2931_v48, %v2980_v0  ;;  %v3134_v10 = vmax.f32 %v3085_v19, 0.0 }
 0x19f   : > { %v3679_v62 = vpack.c.bf16 %v3207_v41, %v3206_v35  ;;  %v2394_v54 = vpop.f32.mrf.mxu0 }
 0x1a0   : > { %v2737_v11 = vcombine.high %v2394_v54, %v2394_v54  ;;  %v2933_v15 = vmax.f32 %v2394_v54, %v2761_v29  ;;  %v3030_v25 = vmax.f32 %v2932_v26, %v2981_v43  ;;  %v3087_v8 = vadd.f32 %v4490_v36, %v3029_v46 }
 0x1a1   : > { %3695 = vst [vmem:[%s4533_s27 + $0x50] sm:$0xff] %v3679_v62   ;;  %v3851_v12 = vpop.f32.mrf.mxu0  ;;  %v3135_v21 = vmax.f32 %v3086_v9, 0.0  ;;  %v3208_v22 = vcombine.low %v3133_v1, %v3134_v10 }
 0x1a2   : > { %v2934_v31 = vmax.f32 %v2737_v11, %v4742_v49  ;;  %v2982_v16 = vmax.f32 %v2884_v51, %v2933_v15  ;;  %v3088_v34 = vadd.f32 %v4480_v45, %v3030_v25  ;;  %v3136_v63 = vmax.f32 %v3087_v8, 0.0 }
 0x1a4   : > { %v2983_v20 = vmax.f32 %v2885_v32, %v2934_v31  ;;  %v3040_v3 = vadd.f32 %v4480_v45, %v2982_v16  ;;  %v3137_v39 = vmax.f32 %v3088_v34, 0.0  ;;  %v3209_v37 = vcombine.low %v3135_v21, %v3136_v63 }
 0x1a6   : > { %v3041_v6 = vadd.f32 %v4490_v36, %v2983_v20  ;;  %v3625_v55 = vpack.c.bf16 %v3137_v39, %v3137_v39  ;;  %v3684_v23 = vpack.c.bf16 %v3209_v37, %v3208_v22  ;;  %v3089_v58 = vmax.f32 %v3040_v3, 0.0 }
 0x1a8   : > { %v3090_v18 = vmax.f32 %v3041_v6, 0.0  ;;  %3696 = vst [vmem:[%s4533_s27 + $0x58] sm:$0xff] %v3684_v23   ;;  %3359 = vst [vmem:[%s4533_s27 + $0x60] sm:$0x3] %v3625_v55 }
 0x1aa   : > { %v3186_v33 = vcombine.low %v3089_v58, %v3090_v18 }
 0x1ac   : > { %v3629_v42 = vpack.c.bf16 %v4507_v44, %v3186_v33 }
 0x1ae   : > { %3630 = vst [vmem:[%s4533_s27] sm:$0xff] %v3629_v42  }
 0x1af PF: > { %s13_s12 = sadd.s32 1, %s3973_s12  }
 0x1b0   : > { %p10_p4 = scmp.ge.s32.totalorder %s13_s12, 4  }
 0x1b2   :  { %12 = sbr.rel (!%p10_p4) target bundleno = 1 (0x1), region = 62 }

// kernel: cnn_forward.4
= control target key start
LH: loop header
LB: loop body
LE: loop exit
PB: predicated region body
PF: predicated region fallthrough
CT: control target
= control target key end

     0   :  { %s5367_s12 = smov 0   ;;  %s6699_s0 = inlined_call_operand.vmem [shape: bf16[2,4,49,400], index: 0, kind: input, shape index: {}]   ;;  %s6700_s1 = inlined_call_operand.vmem [shape: bf16[400,128], index: 1, kind: input, shape index: {}]   ;;  %s6701_s2 = inlined_call_operand.vmem [shape: f32[1,128], index: 2, kind: input, shape index: {}]   ;;  %s6702_s3 = inlined_call_operand.vmem [shape: bf16[2,49,128], index: 3, kind: output, shape index: {}]  }
   0x1 LB: > { %s5015_s13 = sadd.s32 4294967295, %s5343_s12   ;;  %p5019_p0 = scmp.ge.s32.totalorder %s5343_s12, 1  ;;  %s5343_s12 = sphi %s5367_s12, %s13_s12  }
   0x2   : > { %p137_p1 = scmp.lt.s32.totalorder %s5343_s12, 3 }
   0x4   : > { %p138_p2 = pnand %p5019_p0, %p137_p1 }
   0x6   : > { %141 = sbr.rel (%p138_p2) target bundleno = 457 (0x1c9), region = 32 }
   0xb   : > { %v5312_v0 = vld [vmem:[%s6700_s1 + $0x78] sm:$0xff]   ;;  %v5345_v1 = vmov 0   ;;  %v5315_v4 = vld [vmem:[%s6700_s1 + $0x70] sm:$0xff]   ;;  %v5318_v7 = vld [vmem:[%s6700_s1 + $0x68] sm:$0xff]   ;;  %p161_p3 = scmp.lt.s32.totalorder %s5015_s13, 1  ;;  %v303_v23 = vlaneseq  ;;  %vm2514_vm0 = vcmask 130048  }
   0xc   : > { %2690 = vmatprep.subr.bf16.mxu1 %v5345_v1  ;;  %v5313_v2 = vld [vmem:[%s6700_s1 + $0xb8] sm:$0xff]   ;;  %5206 = vmatprep.subr.bf16.mxu0 %v5312_v0  ;;  %v5316_v5 = vld [vmem:[%s6700_s1 + $0xb0] sm:$0xff]   ;;  %v5319_v8 = vld [vmem:[%s6700_s1 + $0xa8] sm:$0xff]   ;;  %v5346_v30 = vmov 1966171168   ;;  %vm4954_vm1 = vcmask 1040384  }
   0xd   : > { %v5314_v3 = vld [vmem:[%s6700_s1 + $0x38] sm:$0xff]   ;;  %2691 = vmatpush1.bf16.msra.mxu1 %v5313_v2  ;;  %v5317_v6 = vld [vmem:[%s6700_s1 + $0x30] sm:$0xff]   ;;  %v5320_v9 = vld [vmem:[%s6700_s1 + $0x28] sm:$0xff]   ;;  %s6904_s13 = smov (!%p161_p3, %s5015_s13), 1  ;;  %v301_v31 = vunpack.c.l.s4 %v5346_v30  ;;  %v304_v32 = vshrl.u32 %v303_v23, 7 }
   0xe   : > { %5207 = vmatpush3.bf16.msra.mxu0 %v5314_v3  ;;  %2692 = vmatprep.subr.bf16.mxu1 %v5345_v1  ;;  %v5321_v10 = vld [vmem:[%s6700_s1 + $0x60] sm:$0xff]   ;;  %v5324_v13 = vld [vmem:[%s6700_s1 + $0x58] sm:$0xff]   ;;  %v5327_v16 = vld [vmem:[%s6700_s1 + $0x50] sm:$0xff]   ;;  %s5300_s21 = smul.u32 448, %s6904_s13  ;;  %vm4955_vm2 = vsmask.f32 256 }
   0xf   : > { %5208 = vmatprep.subr.bf16.mxu0 %v5315_v4  ;;  %v5322_v11 = vld [vmem:[%s6700_s1 + $0xa0] sm:$0xff]   ;;  %v5325_v14 = vld [vmem:[%s6700_s1 + $0x98] sm:$0xff]   ;;  %v5328_v17 = vld [vmem:[%s6700_s1 + $0x90] sm:$0xff]   ;;  %v302_v38 = vunpack.c.0.s8 %v301_v31  ;;  %s5301_s20 = smul.u32 28, %s6904_s13 }
  0x10   : > { %v5323_v12 = vld [vmem:[%s6700_s1 + $0x20] sm:$0xff]   ;;  %v5326_v15 = vld [vmem:[%s6700_s1 + $0x18] sm:$0xff]   ;;  %v5329_v18 = vld [vmem:[%s6700_s1 + $0x10] sm:$0xff]   ;;  %s5451_s5 = scalar_lea.vmem %s6699_s0, %s5300_s21 }
  0x11   : > { %2693 = vmatpush1.bf16.msra.mxu1 %v5316_v5  ;;  %v5330_v19 = vld [vmem:[%s6700_s1 + $0x48] sm:$0xff]   ;;  %v5333_v22 = vld [vmem:[%s6700_s1 + $0x40] sm:$0xff]   ;;  %v5024_v26 = vld.sshfl [vmem:[%s5451_s5 + $0x10] sm:$0xff pattern:$0x75316420]  ;;  %v5484_v49 = vsub.s32 %v302_v38, %v304_v32  ;;  %s6527_s22 = scalar_lea.vmem %s6702_s3, %s5301_s20 }
  0x12   : > { %5209 = vmatpush3.bf16.msra.mxu0 %v5317_v6  ;;  %2694 = vmatprep.subr.bf16.mxu1 %v5345_v1  ;;  %v5331_v20 = vld [vmem:[%s6700_s1 + $0x88] sm:$0xff]   ;;  %v5022_v24 = vld.sshfl [vmem:[%s5451_s5] sm:$0xff pattern:$0x75316420]  ;;  %vm4956_vm3 = vmand %vm4954_vm1, %vm4955_vm2 }
  0x13   : > { %5210 = vmatprep.subr.bf16.mxu0 %v5318_v7  ;;  %v5332_v21 = vld [vmem:[%s6700_s1 + $0x8] sm:$0xff]   ;;  %v5025_v27 = vld.sshfl [vmem:[%s5451_s5 + $0x18] sm:$0xff pattern:$0x75316420]  ;;  %v5334_v28 = vld [vmem:[%s6700_s1 + $0x80] sm:$0xff]  }
  0x14   : > { %v5023_v25 = vld.sshfl [vmem:[%s5451_s5 + $0x8] sm:$0xff pattern:$0x75316420]  ;;  %v5335_v29 = vld [vmem:[%s6700_s1] sm:$0xff]   ;;  %v330_v39 = vcombine.low %v5024_v26, %v5025_v27  ;;  %v331_v40 = vcombine.high %v5024_v26, %v5025_v27 }
  0x15   : > { %2695 = vmatpush1.bf16.msra.mxu1 %v5319_v8  ;;  %v5026_v33 = vld.sshfl [vmem:[%s5451_s5 + $0x20] sm:$0xff pattern:$0x75316420]  ;;  %v298_v34 = vcombine.low %v5022_v24, %v5023_v25  ;;  %v5027_v35 = vld.sshfl [vmem:[%s5451_s5 + $0x28] sm:$0xff pattern:$0x75316420]  ;;  %v299_v37 = vcombine.high %v5022_v24, %v5023_v25 }
  0x16   : > { %5211 = vmatpush3.bf16.msra.mxu0 %v5320_v9  ;;  %2696 = vmatprep.subr.bf16.mxu1 %v5345_v1  ;;  %v5028_v36 = vld.sshfl [vmem:[%s5451_s5 + $0x30] sm:$0xff pattern:$0x75316420]  ;;  %v5029_v41 = vld.sshfl [vmem:[%s5451_s5 + $0x38] sm:$0xff pattern:$0x75316420]  ;;  %v362_v43 = vcombine.low %v5026_v33, %v5027_v35  ;;  %v363_v44 = vcombine.high %v5026_v33, %v5027_v35  ;;  %v338_v58 = vrot.slane %v330_v39, %v5484_v49 }
  0x17   : > { %5212 = vmatprep.subr.bf16.mxu0 %v5321_v10  ;;  %v5476_v42 = vld.sshfl [vmem:[%s5451_s5 + $0x40] sm:$0xff pattern:$0x75316420]  ;;  %v394_v45 = vcombine.low %v5028_v36, %v5029_v41  ;;  %v395_v46 = vcombine.high %v5028_v36, %v5029_v41  ;;  %v5479_v47 = vld.sshfl [vmem:[%s5451_s5 + $0x48] sm:$0xff pattern:$0x75316420]  ;;  %v306_v56 = vrot.slane %v298_v34, %v5484_v49  ;;  %v313_v57 = vrot.slane %v299_v37, %v5484_v49 }
  0x18   : > { %v5482_v48 = vld.sshfl [vmem:[%s5451_s5 + $0x50] sm:$0xff pattern:$0x75316420]  ;;  %v5336_v50 = vld [vmem:[%s6700_s1 + $0xc0] sm:$0xff]   ;;  %v426_v52 = vcombine.low %v5476_v42, %v5479_v47  ;;  %v427_v53 = vcombine.high %v5476_v42, %v5479_v47  ;;  %v345_v59 = vrot.slane %v331_v40, %v5484_v49  ;;  %v370_v60 = vrot.slane %v362_v43, %v5484_v49 }
  0x19   : > { %2697 = vmatpush1.bf16.msra.mxu1 %v5322_v11  ;;  %v5490_v51 = vld.sshfl [vmem:[%s5451_s5 + $0x58] sm:$0xff pattern:$0x75316420]  ;;  %v377_v61 = vrot.slane %v363_v44, %v5484_v49  ;;  %v402_v62 = vrot.slane %v394_v45, %v5484_v49  ;;  %v409_v63 = vrot.slane %v395_v46, %v5484_v49  ;;  %v1484_v0 = vcombine.low %v306_v56, %v313_v57  ;;  %v5036_v38 = vld.sshfl [vmem:[%s5451_s5 + $0x70] sm:$0xff pattern:$0x75316420] }
  0x1a   : > { %5213 = vmatpush3.bf16.msra.mxu0 %v5323_v12  ;;  %2698 = vmatprep.subr.bf16.mxu1 %v5345_v1  ;;  %v458_v54 = vcombine.low %v5482_v48, %v5490_v51  ;;  %v459_v55 = vcombine.high %v5482_v48, %v5490_v51  ;;  %v1486_v2 = vcombine.low %v338_v58, %v345_v59  ;;  %v5035_v33 = vld.sshfl [vmem:[%s5451_s5 + $0x68] sm:$0x5 pattern:$0x75316420] }
  0x1b   : > { %5214 = vmatprep.subr.bf16.mxu0 %v5324_v13  ;;  %v5129_v3 = vcombine.high %v338_v58, %v345_v59  ;;  %v1552_v4 = vcombine.low %v370_v60, %v377_v61  ;;  %v5130_v5 = vcombine.high %v370_v60, %v377_v61  ;;  %v1554_v6 = vcombine.low %v402_v62, %v409_v63  ;;  %v5037_v39 = vld.sshfl [vmem:[%s5451_s5 + $0x78] sm:$0xff pattern:$0x75316420]  ;;  %v5038_v48 = vld.sshfl [vmem:[%s5451_s5 + $0x80] sm:$0xff pattern:$0x75316420] }
  0x1c   : > { %v5131_v7 = vcombine.high %v402_v62, %v409_v63  ;;  %v1494_v8 = vrot.slane %v1484_v0, %v5484_v49  ;;  %v1508_v10 = vrot.slane %v1486_v2, %v5484_v49  ;;  %v434_v44 = vrot.slane %v426_v52, %v5484_v49 }
  0x1d   : > { %2699 = vmatpush1.bf16.msra.mxu1 %v5325_v14  ;;  %v1515_v11 = vrot.slane %v5129_v3, %v5484_v49  ;;  %v1562_v12 = vrot.slane %v1552_v4, %v5484_v49  ;;  %v1569_v13 = vrot.slane %v5130_v5, %v5484_v49  ;;  %v1576_v14 = vrot.slane %v1554_v6, %v5484_v49 }
  0x1e   : > { %5215 = vmatpush3.bf16.msra.mxu0 %v5326_v15  ;;  %2700 = vmatprep.subr.bf16.mxu1 %v5345_v1  ;;  %v1583_v15 = vrot.slane %v5131_v7, %v5484_v49  ;;  %v441_v45 = vrot.slane %v427_v53, %v5484_v49  ;;  %v466_v46 = vrot.slane %v458_v54, %v5484_v49 }
  0x1f   : > { %5216 = vmatprep.subr.bf16.mxu0 %v5327_v16  ;;  %v473_v47 = vrot.slane %v459_v55, %v5484_v49  ;;  %v513_v59 = vcombine.high %v5036_v38, %v5037_v39 }
  0x20   : > { %v1586_v23 = vcombine.low %v1576_v14, %v1583_v15  ;;  %v5132_v58 = vcombine.high %v434_v44, %v441_v45 }
  0x21   : > { %2701 = vmatpush1.bf16.msra.mxu1 %v5328_v17  ;;  %v1519_v17 = vcombine.high %v1508_v10, %v1515_v11  ;;  %v1622_v60 = vcombine.low %v466_v46, %v473_v47  ;;  %v5133_v52 = vcombine.high %v466_v46, %v473_v47  ;;  %v527_v62 = vrot.slane %v513_v59, %v5484_v49 }
  0x22   : > { %5217 = vmatpush3.bf16.msra.mxu0 %v5329_v18  ;;  %2702 = vmatprep.subr.bf16.mxu1 %v5345_v1  ;;  %v1608_v32 = vrot.slane %v1586_v23, %v5484_v49  ;;  %v1637_v55 = vrot.slane %v5132_v58, %v5484_v49 }
  0x23   : > { %5218 = vmatprep.subr.bf16.mxu0 %v5330_v19  ;;  %v1518_v19 = vcombine.low %v1508_v10, %v1515_v11  ;;  %v1547_v25 = vrot.slane %v1519_v17, %v5484_v49  ;;  %v1644_v0 = vrot.slane %v1622_v60, %v5484_v49  ;;  %v529_v6 = vcombine.high %v527_v62, %v527_v62 }
  0x25   : > { %2703 = vmatpush1.bf16.msra.mxu1 %v5331_v20  ;;  %v1585_v20 = vcombine.high %v1562_v12, %v1569_v13  ;;  %v1540_v27 = vrot.slane %v1518_v19, %v5484_v49 }
  0x26   : > { %5219 = vmatpush3.bf16.msra.mxu0 %v5332_v21  ;;  %2704 = vmatprep.subr.bf16.mxu1 %v5345_v1  ;;  %v1587_v21 = vcombine.high %v1576_v14, %v1583_v15  ;;  %v1192_v15 = vunpack.i.h.s16 %v527_v62 }
  0x27   : > { %5220 = vmatprep.subr.bf16.mxu0 %v5333_v22  ;;  %v1584_v22 = vcombine.low %v1562_v12, %v1569_v13 }
  0x28   : > { %v1615_v30 = vrot.slane %v1587_v21, %v5484_v49 }
  0x29   : > { %2705 = vmatpush1.bf16.msra.mxu1 %v5334_v28  ;;  %v5034_v28 = vld.sshfl [vmem:[%s5451_s5 + $0x60] sm:$0x5 pattern:$0x75316420]  ;;  %v1594_v31 = vrot.slane %v1584_v22, %v5484_v49 }
  0x2a   : > { %5221 = vmatpush3.bf16.msra.mxu0 %v5335_v29  ;;  %2720 = vmatprep.subr.bf16.mxu1 %v5345_v1  ;;  %v5128_v1 = vcombine.high %v306_v56, %v313_v57  ;;  %v1601_v29 = vrot.slane %v1585_v20, %v5484_v49  ;;  %v490_v51 = vcombine.low %v5034_v28, %v5035_v33  ;;  %v1196_v20 = vunpack.i.h.s16 %v529_v6  ;;  %v5040_v28 = vld.sshfl [vmem:[%s5451_s5 + $0x90] sm:$0xff pattern:$0x75316420] }
  0x2b   : > { %v1616_v41 = vcombine.low %v1594_v31, %v1608_v32  ;;  %v1617_v43 = vcombine.high %v1594_v31, %v1608_v32  ;;  %v512_v56 = vcombine.low %v5036_v38, %v5037_v39  ;;  %v1620_v57 = vcombine.low %v434_v44, %v441_v45 }
  0x2c   : > { %v1501_v9 = vrot.slane %v5128_v1, %v5484_v49  ;;  %v1618_v40 = vcombine.low %v1601_v29, %v1615_v30  ;;  %v1619_v42 = vcombine.high %v1601_v29, %v1615_v30  ;;  %v497_v53 = vrot.slane %v490_v51, %v5484_v49  ;;  %v5041_v29 = vld.sshfl [vmem:[%s5451_s5 + $0x98] sm:$0xff pattern:$0x75316420] }
  0x2d   : > { %2721 = vmatpush2.bf16.msra.mxu1 %v5336_v50  ;;  %v5039_v50 = vld.sshfl [vmem:[%s5451_s5 + $0x88] sm:$0xff pattern:$0x75316420]  ;;  %v520_v54 = vrot.slane %v512_v56, %v5484_v49  ;;  %v1630_v61 = vrot.slane %v1620_v57, %v5484_v49  ;;  %v1651_v1 = vrot.slane %v5133_v52, %v5484_v49  ;;  %v577_v44 = vcombine.high %v5040_v28, %v5041_v29 }
  0x2e   : > { %v1517_v16 = vcombine.high %v1494_v8, %v1501_v9  ;;  %v1516_v18 = vcombine.low %v1494_v8, %v1501_v9  ;;  %v544_v63 = vcombine.low %v5038_v48, %v5039_v50  ;;  %v545_v3 = vcombine.high %v5038_v48, %v5039_v50 }
  0x2f   : > { %v528_v2 = vcombine.high %v520_v54, %v520_v54  ;;  %v1653_v4 = vcombine.high %v1630_v61, %v1637_v55  ;;  %v1652_v5 = vcombine.low %v1630_v61, %v1637_v55  ;;  %v1655_v8 = vcombine.high %v1644_v0, %v1651_v1 }
  0x30   : > { %v1533_v24 = vrot.slane %v1517_v16, %v5484_v49  ;;  %v1526_v26 = vrot.slane %v1516_v18, %v5484_v49  ;;  %v552_v7 = vrot.slane %v544_v63, %v5484_v49  ;;  %v1654_v9 = vcombine.low %v1644_v0, %v1651_v1 }
  0x31   : > { %v559_v10 = vrot.slane %v545_v3, %v5484_v49  ;;  %v1190_v11 = vunpack.i.h.s16 %v520_v54  ;;  %v1669_v12 = vrot.slane %v1653_v4, %v5484_v49  ;;  %v1662_v13 = vrot.slane %v1652_v5, %v5484_v49 }
  0x32   : > { %v1550_v34 = vcombine.low %v1533_v24, %v1547_v25  ;;  %v1548_v35 = vcombine.low %v1526_v26, %v1540_v27  ;;  %v1551_v36 = vcombine.high %v1533_v24, %v1547_v25  ;;  %v1549_v37 = vcombine.high %v1526_v26, %v1540_v27 }
  0x33   : > { %v560_v14 = vcombine.high %v552_v7, %v552_v7  ;;  %v1683_v16 = vrot.slane %v1655_v8, %v5484_v49  ;;  %v1676_v17 = vrot.slane %v1654_v9, %v5484_v49  ;;  %v5550_v18 = vcombine.high %v559_v10, %v559_v10 }
  0x34   : > { %2586 = vmatprep.mubr.bf16.mxu0 %v1550_v34  ;;  %5159 = vmatprep.mubr.msk.bf16.mxu1 %vm2514_vm0, %v1551_v36  ;;  %v1194_v19 = vunpack.i.h.s16 %v528_v2  ;;  %v1198_v21 = vunpack.i.h.s16 %v552_v7  ;;  %v1200_v22 = vunpack.i.h.s16 %v559_v10  ;;  %v5078_v30 = vpack.i.b16 %v520_v54, %v497_v53  ;;  %v5042_v34 = vld.sshfl [vmem:[%s5451_s5 + $0xa0] sm:$0xff pattern:$0x75316420] }
  0x35   : > { %2587 = vmatmul.mubr.bf16.vlgmr.msra.gmra.mxu0 %v1548_v35  ;;  %2723 = vmatmul.mubr.bf16.vlgmr.msra.gmra.mxu1 %v1549_v37  ;;  %v1202_v23 = vunpack.i.h.s16 %v560_v14  ;;  %v1686_v24 = vcombine.low %v1669_v12, %v1683_v16  ;;  %v1684_v25 = vcombine.low %v1662_v13, %v1676_v17  ;;  %v1687_v26 = vcombine.high %v1669_v12, %v1683_v16  ;;  %v5043_v35 = vld.sshfl [vmem:[%s5451_s5 + $0xa8] sm:$0xff pattern:$0x75316420]  ;;  %v5044_v16 = vld.sshfl [vmem:[%s5451_s5 + $0xb0] sm:$0xff pattern:$0x75316420] }
  0x36   : > { %2594 = vmatprep.mubr.bf16.mxu0 %v1618_v40  ;;  %5160 = vmatprep.mubr.msk.bf16.mxu1 %vm2514_vm0, %v1619_v42  ;;  %v1685_v27 = vcombine.high %v1662_v13, %v1676_v17  ;;  %v5079_v31 = vpack.i.b16 %v527_v62, %v1190_v11  ;;  %v5080_v32 = vpack.i.b16 %v528_v2, %v1192_v15  ;;  %v1204_v59 = vunpack.i.h.s16 %v5550_v18  ;;  %v5045_v17 = vld.sshfl [vmem:[%s5451_s5 + $0xb8] sm:$0xff pattern:$0x75316420] }
  0x37   : > { %v5081_v33 = vpack.i.b16 %v529_v6, %v1194_v19  ;;  %v5082_v36 = vpack.i.b16 %v552_v7, %v1196_v20  ;;  %v5083_v37 = vpack.i.b16 %v559_v10, %v1198_v21  ;;  %v5084_v38 = vpack.i.b16 %v560_v14, %v1200_v22 }
  0x38   : > { %v5085_v39 = vpack.i.b16 %v5550_v18, %v1202_v23  ;;  %v1688_v40 = vcombine.low %v5078_v30, %v5079_v31  ;;  %v576_v42 = vcombine.low %v5040_v28, %v5041_v29  ;;  %v608_v45 = vcombine.low %v5042_v34, %v5043_v35 }
  0x39   : > { %v609_v46 = vcombine.high %v5042_v34, %v5043_v35  ;;  %v591_v57 = vrot.slane %v577_v44, %v5484_v49  ;;  %v640_v30 = vcombine.low %v5044_v16, %v5045_v17 }
  0x3a   : > { %v1691_v47 = vcombine.low %v5084_v38, %v5085_v39  ;;  %v1698_v48 = vrot.slane %v1688_v40, %v5484_v49  ;;  %v584_v51 = vrot.slane %v576_v42, %v5484_v49  ;;  %v616_v58 = vrot.slane %v608_v45, %v5484_v49 }
  0x3b   : > { %v593_v61 = vcombine.high %v591_v57, %v591_v57  ;;  %v623_v55 = vrot.slane %v609_v46, %v5484_v49  ;;  %v1208_v5 = vunpack.i.h.s16 %v591_v57 }
  0x3c   : > { %v1719_v60 = vrot.slane %v1691_v47, %v5484_v49  ;;  %v592_v54 = vcombine.high %v584_v51, %v584_v51  ;;  %v624_v62 = vcombine.high %v616_v58, %v616_v58  ;;  %v1206_v63 = vunpack.i.h.s16 %v584_v51 }
  0x3d   : > { %2595 = vmatmul.mubr.bf16.gmra.mxu0 %v1616_v41  ;;  %2731 = vmatmul.mubr.bf16.gmra.mxu1 %v1617_v43  ;;  %v1689_v41 = vcombine.low %v5080_v32, %v5081_v33  ;;  %v1690_v43 = vcombine.low %v5082_v36, %v5083_v37  ;;  %v5569_v4 = vcombine.high %v623_v55, %v623_v55  ;;  %v1212_v7 = vunpack.i.h.s16 %v593_v61 }
  0x3e   : > { %2602 = vmatprep.mubr.bf16.mxu0 %v1686_v24  ;;  %5161 = vmatprep.mubr.msk.bf16.mxu1 %vm2514_vm0, %v1687_v26  ;;  %v1210_v6 = vunpack.i.h.s16 %v592_v54  ;;  %v1214_v10 = vunpack.i.h.s16 %v616_v58  ;;  %v1216_v11 = vunpack.i.h.s16 %v623_v55  ;;  %v1218_v12 = vunpack.i.h.s16 %v624_v62  ;;  %v5046_v26 = vld.sshfl [vmem:[%s5451_s5 + $0xc0] sm:$0xff pattern:$0x75316420] }
  0x3f   : > { %v1705_v50 = vrot.slane %v1689_v41, %v5484_v49  ;;  %v1712_v56 = vrot.slane %v1690_v43, %v5484_v49  ;;  %v5086_v13 = vpack.i.b16 %v584_v51, %v1204_v59  ;;  %v5087_v14 = vpack.i.b16 %v591_v57, %v1206_v63 }
  0x40   : > { %v5088_v15 = vpack.i.b16 %v592_v54, %v1208_v5  ;;  %v5089_v22 = vpack.i.b16 %v593_v61, %v1210_v6  ;;  %v5090_v23 = vpack.i.b16 %v616_v58, %v1212_v7  ;;  %v5091_v24 = vpack.i.b16 %v623_v55, %v1214_v10 }
  0x41   : > { %v1721_v52 = vcombine.high %v1698_v48, %v1705_v50  ;;  %v1720_v53 = vcombine.low %v1698_v48, %v1705_v50  ;;  %v1723_v0 = vcombine.high %v1712_v56, %v1719_v60  ;;  %v1722_v2 = vcombine.low %v1712_v56, %v1719_v60 }
  0x42   : > { %v5093_v28 = vpack.i.b16 %v5569_v4, %v1218_v12  ;;  %v1756_v29 = vcombine.low %v5086_v13, %v5087_v14  ;;  %v1757_v31 = vcombine.low %v5088_v15, %v5089_v22  ;;  %v1758_v32 = vcombine.low %v5090_v23, %v5091_v24  ;;  %v5050_v14 = vld.sshfl [vmem:[%s5451_s5 + $0xe0] sm:$0xff pattern:$0x75316420]  ;;  %v5051_v15 = vld.sshfl [vmem:[%s5451_s5 + $0xe8] sm:$0xff pattern:$0x75316420] }
  0x43   : > { %v1737_v1 = vrot.slane %v1721_v52, %v5484_v49  ;;  %v1730_v3 = vrot.slane %v1720_v53, %v5484_v49  ;;  %v1751_v8 = vrot.slane %v1723_v0, %v5484_v49  ;;  %v1744_v9 = vrot.slane %v1722_v2, %v5484_v49 }
  0x44   : > { %v641_v33 = vcombine.high %v5044_v16, %v5045_v17  ;;  %v1220_v34 = vunpack.i.h.s16 %v5569_v4  ;;  %v1766_v36 = vrot.slane %v1756_v29, %v5484_v49  ;;  %v648_v37 = vrot.slane %v640_v30, %v5484_v49  ;;  %v5048_v4 = vld.sshfl [vmem:[%s5451_s5 + $0xd0] sm:$0x5 pattern:$0x75316420] }
  0x45   : > { %2603 = vmatmul.mubr.bf16.gmra.mxu0 %v1684_v25  ;;  %2739 = vmatmul.mubr.bf16.gmra.mxu1 %v1685_v27  ;;  %v1754_v18 = vcombine.low %v1737_v1, %v1751_v8  ;;  %v1752_v19 = vcombine.low %v1730_v3, %v1744_v9  ;;  %v1755_v20 = vcombine.high %v1737_v1, %v1751_v8  ;;  %v5047_v27 = vld.sshfl [vmem:[%s5451_s5 + $0xc8] sm:$0xff pattern:$0x75316420] }
  0x46   : > { %v1753_v21 = vcombine.high %v1730_v3, %v1744_v9  ;;  %v5092_v25 = vpack.i.b16 %v624_v62, %v1216_v11  ;;  %v672_v38 = vcombine.low %v5046_v26, %v5047_v27  ;;  %v1773_v39 = vrot.slane %v1757_v31, %v5484_v49  ;;  %v5049_v9 = vld.sshfl [vmem:[%s5451_s5 + $0xd8] sm:$0x5 pattern:$0x75316420] }
  0x47   : > { %2610 = vmatprep.mubr.bf16.mxu0 %v1754_v18  ;;  %5162 = vmatprep.mubr.msk.bf16.mxu1 %vm2514_vm0, %v1755_v20  ;;  %v1780_v40 = vrot.slane %v1758_v32, %v5484_v49  ;;  %v655_v41 = vrot.slane %v641_v33, %v5484_v49  ;;  %v673_v42 = vcombine.high %v5046_v26, %v5047_v27  ;;  %v1222_v46 = vunpack.i.h.s16 %v648_v37  ;;  %v5053_v20 = vld.sshfl [vmem:[%s5451_s5 + $0xf8] sm:$0xff pattern:$0x75316420] }
  0x48   : > { %v1759_v35 = vcombine.low %v5092_v25, %v5093_v28  ;;  %v656_v44 = vcombine.high %v648_v37, %v648_v37  ;;  %v680_v45 = vrot.slane %v672_v38, %v5484_v49  ;;  %v1789_v47 = vcombine.high %v1766_v36, %v1773_v39 }
  0x49   : > { %v1788_v48 = vcombine.low %v1766_v36, %v1773_v39  ;;  %v657_v50 = vcombine.high %v655_v41, %v655_v41  ;;  %v687_v51 = vrot.slane %v673_v42, %v5484_v49  ;;  %v1224_v59 = vunpack.i.h.s16 %v655_v41 }
  0x4a   : > { %v1787_v43 = vrot.slane %v1759_v35, %v5484_v49  ;;  %v688_v58 = vcombine.high %v680_v45, %v680_v45  ;;  %v1805_v60 = vrot.slane %v1789_v47, %v5484_v49  ;;  %v1226_v54 = vunpack.i.h.s16 %v656_v44 }
  0x4b   : > { %v1798_v52 = vrot.slane %v1788_v48, %v5484_v49  ;;  %v689_v53 = vcombine.high %v687_v51, %v687_v51  ;;  %v1228_v62 = vunpack.i.h.s16 %v657_v50  ;;  %v1230_v63 = vunpack.i.h.s16 %v680_v45 }
  0x4c   : > { %v1791_v56 = vcombine.high %v1780_v40, %v1787_v43  ;;  %v1790_v57 = vcombine.low %v1780_v40, %v1787_v43  ;;  %v1232_v0 = vunpack.i.h.s16 %v687_v51  ;;  %v1234_v1 = vunpack.i.h.s16 %v688_v58 }
  0x4d   : > { %2611 = vmatmul.mubr.bf16.gmra.mxu0 %v1752_v19  ;;  %2747 = vmatmul.mubr.bf16.gmra.mxu1 %v1753_v21  ;;  %v5094_v2 = vpack.i.b16 %v648_v37, %v1220_v34  ;;  %v5095_v3 = vpack.i.b16 %v655_v41, %v1222_v46  ;;  %v5096_v10 = vpack.i.b16 %v656_v44, %v1224_v59  ;;  %v5052_v19 = vld.sshfl [vmem:[%s5451_s5 + $0xf0] sm:$0xff pattern:$0x75316420]  ;;  %v1236_v24 = vunpack.i.h.s16 %v689_v53  ;;  %v5055_v46 = vld.sshfl [vmem:[%s5451_s5 + $0x108] sm:$0xff pattern:$0x75316420] }
  0x4e   : > { %v1819_v61 = vrot.slane %v1791_v56, %v5484_v49  ;;  %v1812_v55 = vrot.slane %v1790_v57, %v5484_v49  ;;  %v5097_v11 = vpack.i.b16 %v657_v50, %v1226_v54  ;;  %v5098_v12 = vpack.i.b16 %v680_v45, %v1228_v62  ;;  %v5054_v45 = vld.sshfl [vmem:[%s5451_s5 + $0x100] sm:$0xff pattern:$0x75316420]  ;;  %v5057_v54 = vld.sshfl [vmem:[%s5451_s5 + $0x118] sm:$0xff pattern:$0x75316420] }
  0x4f   : > { %v5099_v13 = vpack.i.b16 %v687_v51, %v1230_v63  ;;  %v5100_v16 = vpack.i.b16 %v688_v58, %v1232_v0  ;;  %v5101_v17 = vpack.i.b16 %v689_v53, %v1234_v1  ;;  %v1824_v18 = vcombine.low %v5094_v2, %v5095_v3  ;;  %v5056_v53 = vld.sshfl [vmem:[%s5451_s5 + $0x110] sm:$0xff pattern:$0x75316420] }
  0x50   : > { %v1822_v5 = vcombine.low %v1805_v60, %v1819_v61  ;;  %v1820_v6 = vcombine.low %v1798_v52, %v1812_v55  ;;  %v1823_v7 = vcombine.high %v1805_v60, %v1819_v61  ;;  %v1821_v8 = vcombine.high %v1798_v52, %v1812_v55 }
  0x51   : > { %v1825_v21 = vcombine.low %v5096_v10, %v5097_v11  ;;  %v1826_v22 = vcombine.low %v5098_v12, %v5099_v13  ;;  %v704_v23 = vcombine.low %v5048_v4, %v5049_v9  ;;  %v1827_v25 = vcombine.low %v5100_v16, %v5101_v17 }
  0x52   : > { %2618 = vmatprep.mubr.bf16.mxu0 %v1822_v5  ;;  %5163 = vmatprep.mubr.msk.bf16.mxu1 %vm2514_vm0, %v1823_v7  ;;  %v1834_v26 = vrot.slane %v1824_v18, %v5484_v49  ;;  %v726_v27 = vcombine.low %v5050_v14, %v5051_v15  ;;  %v727_v28 = vcombine.high %v5050_v14, %v5051_v15 }
  0x53   : > { %v1841_v29 = vrot.slane %v1825_v21, %v5484_v49  ;;  %v1848_v30 = vrot.slane %v1826_v22, %v5484_v49  ;;  %v711_v31 = vrot.slane %v704_v23, %v5484_v49  ;;  %v758_v32 = vcombine.low %v5052_v19, %v5053_v20 }
  0x54   : > { %v1855_v33 = vrot.slane %v1827_v25, %v5484_v49  ;;  %v734_v34 = vrot.slane %v726_v27, %v5484_v49  ;;  %v741_v35 = vrot.slane %v727_v28, %v5484_v49  ;;  %v759_v36 = vcombine.high %v5052_v19, %v5053_v20  ;;  %v5059_v25 = vld.sshfl [vmem:[%s5451_s5 + $0x128] sm:$0xff pattern:$0x75316420] }
  0x55   : > { %2619 = vmatmul.mubr.bf16.gmra.mxu0 %v1820_v6  ;;  %2755 = vmatmul.mubr.bf16.gmra.mxu1 %v1821_v8  ;;  %v1857_v37 = vcombine.high %v1834_v26, %v1841_v29  ;;  %v1856_v38 = vcombine.low %v1834_v26, %v1841_v29  ;;  %v766_v39 = vrot.slane %v758_v32, %v5484_v49 }
  0x56   : > { %v5102_v40 = vpack.i.b16 %v711_v31, %v1236_v24  ;;  %v1859_v41 = vcombine.high %v1848_v30, %v1855_v33  ;;  %v1858_v42 = vcombine.low %v1848_v30, %v1855_v33  ;;  %v742_v43 = vcombine.high %v734_v34, %v734_v34  ;;  %v5058_v24 = vld.sshfl [vmem:[%s5451_s5 + $0x120] sm:$0xff pattern:$0x75316420]  ;;  %v5060_v30 = vld.sshfl [vmem:[%s5451_s5 + $0x130] sm:$0xff pattern:$0x75316420] }
  0x57   : > { %v743_v44 = vcombine.high %v741_v35, %v741_v35  ;;  %v1873_v47 = vrot.slane %v1857_v37, %v5484_v49  ;;  %v1866_v48 = vrot.slane %v1856_v38, %v5484_v49  ;;  %v773_v50 = vrot.slane %v759_v36, %v5484_v49  ;;  %v5061_v31 = vld.sshfl [vmem:[%s5451_s5 + $0x138] sm:$0xff pattern:$0x75316420] }
  0x58   : > { %v774_v51 = vcombine.high %v766_v39, %v766_v39  ;;  %v1887_v56 = vrot.slane %v1859_v41, %v5484_v49  ;;  %v1880_v57 = vrot.slane %v1858_v42, %v5484_v49  ;;  %v1892_v58 = vcombine.low %v5102_v40, %v734_v34 }
  0x59   : > { %v1893_v59 = vcombine.low %v741_v35, %v742_v43  ;;  %v1894_v60 = vcombine.low %v743_v44, %v766_v39  ;;  %v775_v61 = vcombine.high %v773_v50, %v773_v50  ;;  %v790_v55 = vcombine.low %v5054_v45, %v5055_v46 }
  0x5a   : > { %v1895_v52 = vcombine.low %v773_v50, %v774_v51  ;;  %v1890_v62 = vcombine.low %v1873_v47, %v1887_v56  ;;  %v1888_v63 = vcombine.low %v1866_v48, %v1880_v57  ;;  %v1891_v0 = vcombine.high %v1873_v47, %v1887_v56  ;;  %v5063_v56 = vld.sshfl [vmem:[%s5451_s5 + $0x148] sm:$0x5 pattern:$0x75316420] }
  0x5b   : > { %v1889_v1 = vcombine.high %v1866_v48, %v1880_v57  ;;  %v1902_v2 = vrot.slane %v1892_v58, %v5484_v49  ;;  %v1909_v3 = vrot.slane %v1893_v59, %v5484_v49  ;;  %v1916_v4 = vrot.slane %v1894_v60, %v5484_v49 }
  0x5c   : > { %v1923_v5 = vrot.slane %v1895_v52, %v5484_v49  ;;  %2626 = vmatprep.mubr.bf16.mxu0 %v1890_v62  ;;  %5164 = vmatprep.mubr.msk.bf16.mxu1 %vm2514_vm0, %v1891_v0  ;;  %v791_v6 = vcombine.high %v5054_v45, %v5055_v46  ;;  %v798_v7 = vrot.slane %v790_v55, %v5484_v49  ;;  %v5062_v46 = vld.sshfl [vmem:[%s5451_s5 + $0x140] sm:$0x5 pattern:$0x75316420] }
  0x5d   : > { %v822_v8 = vcombine.low %v5056_v53, %v5057_v54  ;;  %2627 = vmatmul.mubr.bf16.gmra.mxu0 %v1888_v63  ;;  %2763 = vmatmul.mubr.bf16.gmra.mxu1 %v1889_v1  ;;  %v1925_v9 = vcombine.high %v1902_v2, %v1909_v3  ;;  %v1924_v11 = vcombine.low %v1902_v2, %v1909_v3 }
  0x5e   : > { %v1927_v10 = vcombine.high %v1916_v4, %v1923_v5  ;;  %v1926_v12 = vcombine.low %v1916_v4, %v1923_v5  ;;  %v805_v13 = vrot.slane %v791_v6, %v5484_v49  ;;  %v806_v14 = vcombine.high %v798_v7, %v798_v7  ;;  %v5064_v4 = vld.sshfl [vmem:[%s5451_s5 + $0x150] sm:$0xff pattern:$0x75316420]  ;;  %v5065_v5 = vld.sshfl [vmem:[%s5451_s5 + $0x158] sm:$0xff pattern:$0x75316420] }
  0x5f   : > { %v823_v15 = vcombine.high %v5056_v53, %v5057_v54  ;;  %v1941_v16 = vrot.slane %v1925_v9, %v5484_v49  ;;  %v1934_v18 = vrot.slane %v1924_v11, %v5484_v49  ;;  %v830_v19 = vrot.slane %v822_v8, %v5484_v49 }
  0x60   : > { %v1955_v17 = vrot.slane %v1927_v10, %v5484_v49  ;;  %v1948_v20 = vrot.slane %v1926_v12, %v5484_v49  ;;  %v807_v21 = vcombine.high %v805_v13, %v805_v13  ;;  %v1960_v23 = vcombine.low %v775_v61, %v798_v7 }
  0x61   : > { %v837_v22 = vrot.slane %v823_v15, %v5484_v49  ;;  %v838_v28 = vcombine.high %v830_v19, %v830_v19  ;;  %v1961_v29 = vcombine.low %v805_v13, %v806_v14  ;;  %v854_v40 = vcombine.low %v5058_v24, %v5059_v25  ;;  %v5066_v15 = vld.sshfl [vmem:[%s5451_s5 + $0x160] sm:$0xff pattern:$0x75316420] }
  0x62   : > { %v1958_v26 = vcombine.low %v1941_v16, %v1955_v17  ;;  %v1959_v27 = vcombine.high %v1941_v16, %v1955_v17  ;;  %v1956_v32 = vcombine.low %v1934_v18, %v1948_v20  ;;  %v1957_v33 = vcombine.high %v1934_v18, %v1948_v20  ;;  %v5067_v16 = vld.sshfl [vmem:[%s5451_s5 + $0x168] sm:$0xff pattern:$0x75316420] }
  0x63   : > { %v1962_v34 = vcombine.low %v807_v21, %v830_v19  ;;  %v1970_v35 = vrot.slane %v1960_v23, %v5484_v49  ;;  %v1963_v36 = vcombine.low %v837_v22, %v838_v28  ;;  %v1977_v37 = vrot.slane %v1961_v29, %v5484_v49 }
  0x64   : > { %2634 = vmatprep.mubr.bf16.mxu0 %v1958_v26  ;;  %5165 = vmatprep.mubr.msk.bf16.mxu1 %vm2514_vm0, %v1959_v27  ;;  %v839_v38 = vcombine.high %v837_v22, %v837_v22  ;;  %v855_v41 = vcombine.high %v5058_v24, %v5059_v25  ;;  %v886_v42 = vcombine.low %v5060_v30, %v5061_v31 }
  0x65   : > { %v1984_v39 = vrot.slane %v1962_v34, %v5484_v49  ;;  %2635 = vmatmul.mubr.bf16.gmra.mxu0 %v1956_v32  ;;  %2771 = vmatmul.mubr.bf16.gmra.mxu1 %v1957_v33  ;;  %v1991_v43 = vrot.slane %v1963_v36, %v5484_v49  ;;  %v1993_v44 = vcombine.high %v1970_v35, %v1977_v37 }
  0x66   : > { %v1992_v45 = vcombine.low %v1970_v35, %v1977_v37  ;;  %v862_v47 = vrot.slane %v854_v40, %v5484_v49  ;;  %v869_v48 = vrot.slane %v855_v41, %v5484_v49  ;;  %v887_v50 = vcombine.high %v5060_v30, %v5061_v31 }
  0x67   : > { %v894_v51 = vrot.slane %v886_v42, %v5484_v49  ;;  %v1995_v57 = vcombine.high %v1984_v39, %v1991_v43  ;;  %v2009_v58 = vrot.slane %v1993_v44, %v5484_v49  ;;  %v1994_v59 = vcombine.low %v1984_v39, %v1991_v43 }
  0x68   : > { %v2002_v60 = vrot.slane %v1992_v45, %v5484_v49  ;;  %v870_v52 = vcombine.high %v862_v47, %v862_v47  ;;  %v871_v53 = vcombine.high %v869_v48, %v869_v48  ;;  %v5646_v54 = vrot.slane %v887_v50, %v5484_v49 }
  0x69   : > { %v902_v61 = vcombine.high %v894_v51, %v894_v51  ;;  %v2023_v55 = vrot.slane %v1995_v57, %v5484_v49  ;;  %v2016_v62 = vrot.slane %v1994_v59, %v5484_v49  ;;  %v2028_v63 = vcombine.low %v839_v38, %v862_v47  ;;  %v5068_v47 = vld.sshfl [vmem:[%s5451_s5 + $0x170] sm:$0xff pattern:$0x75316420]  ;;  %v5070_v57 = vld.sshfl [vmem:[%s5451_s5 + $0x180] sm:$0xff pattern:$0x75316420] }
  0x6a   : > { %v918_v0 = vcombine.low %v5062_v46, %v5063_v56  ;;  %v2029_v1 = vcombine.low %v869_v48, %v870_v52  ;;  %v2030_v2 = vcombine.low %v871_v53, %v894_v51  ;;  %v903_v6 = vcombine.high %v5646_v54, %v5646_v54  ;;  %v5069_v48 = vld.sshfl [vmem:[%s5451_s5 + $0x178] sm:$0xff pattern:$0x75316420] }
  0x6b   : > { %v2031_v3 = vcombine.low %v5646_v54, %v902_v61  ;;  %v2026_v7 = vcombine.low %v2009_v58, %v2023_v55  ;;  %v2024_v8 = vcombine.low %v2002_v60, %v2016_v62  ;;  %v2027_v9 = vcombine.high %v2009_v58, %v2023_v55  ;;  %v5071_v58 = vld.sshfl [vmem:[%s5451_s5 + $0x188] sm:$0xff pattern:$0x75316420] }
  0x6c   : > { %v2025_v10 = vcombine.high %v2002_v60, %v2016_v62  ;;  %v2038_v11 = vrot.slane %v2028_v63, %v5484_v49  ;;  %v2045_v12 = vrot.slane %v2029_v1, %v5484_v49  ;;  %v2052_v13 = vrot.slane %v2030_v2, %v5484_v49 }
  0x6d   : > { %v2059_v14 = vrot.slane %v2031_v3, %v5484_v49  ;;  %2642 = vmatprep.mubr.bf16.mxu0 %v2026_v7  ;;  %5166 = vmatprep.mubr.msk.bf16.mxu1 %vm2514_vm0, %v2027_v9  ;;  %v925_v17 = vrot.slane %v918_v0, %v5484_v49  ;;  %v940_v18 = vcombine.low %v5064_v4, %v5065_v5 }
  0x6e   : > { %v941_v19 = vcombine.high %v5064_v4, %v5065_v5  ;;  %2643 = vmatmul.mubr.bf16.gmra.mxu0 %v2024_v8  ;;  %2779 = vmatmul.mubr.bf16.gmra.mxu1 %v2025_v10  ;;  %v2061_v20 = vcombine.high %v2038_v11, %v2045_v12  ;;  %v2060_v22 = vcombine.low %v2038_v11, %v2045_v12 }
  0x6f   : > { %v2063_v21 = vcombine.high %v2052_v13, %v2059_v14  ;;  %v2062_v23 = vcombine.low %v2052_v13, %v2059_v14  ;;  %v948_v24 = vrot.slane %v940_v18, %v5484_v49  ;;  %v972_v26 = vcombine.low %v5066_v15, %v5067_v16 }
  0x70   : > { %v955_v25 = vrot.slane %v941_v19, %v5484_v49  ;;  %v2077_v27 = vrot.slane %v2061_v20, %v5484_v49  ;;  %v2070_v29 = vrot.slane %v2060_v22, %v5484_v49  ;;  %v973_v30 = vcombine.high %v5066_v15, %v5067_v16 }
  0x71   : > { %v2091_v28 = vrot.slane %v2063_v21, %v5484_v49  ;;  %v2084_v31 = vrot.slane %v2062_v23, %v5484_v49  ;;  %v956_v32 = vcombine.high %v948_v24, %v948_v24  ;;  %v980_v34 = vrot.slane %v972_v26, %v5484_v49 }
  0x72   : > { %v957_v33 = vcombine.high %v955_v25, %v955_v25  ;;  %v987_v37 = vrot.slane %v973_v30, %v5484_v49  ;;  %v1288_v38 = vunpack.i.h.s16 %v948_v24  ;;  %v1290_v42 = vunpack.i.h.s16 %v955_v25 }
  0x73   : > { %v2094_v35 = vcombine.low %v2077_v27, %v2091_v28  ;;  %v2095_v36 = vcombine.high %v2077_v27, %v2091_v28  ;;  %v2092_v39 = vcombine.low %v2070_v29, %v2084_v31  ;;  %v2093_v40 = vcombine.high %v2070_v29, %v2084_v31 }
  0x74   : > { %v988_v41 = vcombine.high %v980_v34, %v980_v34  ;;  %v1292_v43 = vunpack.i.h.s16 %v956_v32  ;;  %v1294_v44 = vunpack.i.h.s16 %v957_v33  ;;  %v1296_v45 = vunpack.i.h.s16 %v980_v34 }
  0x75   : > { %2650 = vmatprep.mubr.bf16.mxu0 %v2094_v35  ;;  %5167 = vmatprep.mubr.msk.bf16.mxu1 %vm2514_vm0, %v2095_v36  ;;  %v1298_v46 = vunpack.i.h.s16 %v987_v37  ;;  %v5103_v50 = vpack.i.b16 %v948_v24, %v925_v17  ;;  %v5104_v51 = vpack.i.b16 %v955_v25, %v1288_v38  ;;  %v5105_v56 = vpack.i.b16 %v956_v32, %v1290_v42  ;;  %v5072_v36 = vld.sshfl [vmem:[%s5451_s5 + $0x190] sm:$0xff pattern:$0x75316420] }
  0x76   : > { %v989_v59 = vcombine.high %v987_v37, %v987_v37  ;;  %2651 = vmatmul.mubr.bf16.gmra.mxu0 %v2092_v39  ;;  %2787 = vmatmul.mubr.bf16.gmra.mxu1 %v2093_v40  ;;  %v5106_v60 = vpack.i.b16 %v957_v33, %v1292_v43  ;;  %v5107_v52 = vpack.i.b16 %v980_v34, %v1294_v44  ;;  %v1300_v54 = vunpack.i.h.s16 %v988_v41 }
  0x77   : > { %v5108_v53 = vpack.i.b16 %v987_v37, %v1296_v45  ;;  %v5109_v61 = vpack.i.b16 %v988_v41, %v1298_v46  ;;  %v2096_v55 = vcombine.low %v903_v6, %v5103_v50  ;;  %v2097_v62 = vcombine.low %v5104_v51, %v5105_v56  ;;  %v5073_v37 = vld.sshfl [vmem:[%s5451_s5 + $0x198] sm:$0xff pattern:$0x75316420]  ;;  %v5074_v46 = vld.sshfl [vmem:[%s5451_s5 + $0x1a0] sm:$0xff pattern:$0x75316420] }
  0x78   : > { %v1004_v63 = vcombine.low %v5068_v47, %v5069_v48  ;;  %v2098_v0 = vcombine.low %v5106_v60, %v5107_v52  ;;  %v1005_v1 = vcombine.high %v5068_v47, %v5069_v48  ;;  %v1036_v2 = vcombine.low %v5070_v57, %v5071_v58  ;;  %v5075_v47 = vld.sshfl [vmem:[%s5451_s5 + $0x1a8] sm:$0xff pattern:$0x75316420] }
  0x79   : > { %v1037_v3 = vcombine.high %v5070_v57, %v5071_v58  ;;  %v2099_v4 = vcombine.low %v5108_v53, %v5109_v61  ;;  %v2106_v5 = vrot.slane %v2096_v55, %v5484_v49  ;;  %v2113_v7 = vrot.slane %v2097_v62, %v5484_v49 }
  0x7a   : > { %v1012_v8 = vrot.slane %v1004_v63, %v5484_v49  ;;  %v2120_v9 = vrot.slane %v2098_v0, %v5484_v49  ;;  %v1019_v10 = vrot.slane %v1005_v1, %v5484_v49  ;;  %v1044_v11 = vrot.slane %v1036_v2, %v5484_v49 }
  0x7b   : > { %v1051_v6 = vrot.slane %v1037_v3, %v5484_v49  ;;  %v2127_v12 = vrot.slane %v2099_v4, %v5484_v49  ;;  %v2129_v13 = vcombine.high %v2106_v5, %v2113_v7  ;;  %v2128_v14 = vcombine.low %v2106_v5, %v2113_v7 }
  0x7c   : > { %v1020_v15 = vcombine.high %v1012_v8, %v1012_v8  ;;  %v1021_v16 = vcombine.high %v1019_v10, %v1019_v10  ;;  %v5684_v17 = vcombine.high %v1044_v11, %v1044_v11  ;;  %v1302_v18 = vunpack.i.h.s16 %v989_v59 }
  0x7d   : > { %v1304_v19 = vunpack.i.h.s16 %v1012_v8  ;;  %v2131_v20 = vcombine.high %v2120_v9, %v2127_v12  ;;  %v2145_v21 = vrot.slane %v2129_v13, %v5484_v49  ;;  %v2130_v22 = vcombine.low %v2120_v9, %v2127_v12 }
  0x7e   : > { %v2138_v23 = vrot.slane %v2128_v14, %v5484_v49  ;;  %v1306_v24 = vunpack.i.h.s16 %v1019_v10  ;;  %v1308_v25 = vunpack.i.h.s16 %v1020_v15  ;;  %v1310_v26 = vunpack.i.h.s16 %v1021_v16 }
  0x7f   : > { %v1312_v27 = vunpack.i.h.s16 %v1044_v11  ;;  %v2159_v28 = vrot.slane %v2131_v20, %v5484_v49  ;;  %v2152_v29 = vrot.slane %v2130_v22, %v5484_v49  ;;  %v1314_v30 = vunpack.i.h.s16 %v1051_v6 }
  0x80   : > { %v5110_v31 = vpack.i.b16 %v989_v59, %v1300_v54  ;;  %v5111_v32 = vpack.i.b16 %v1012_v8, %v1302_v18  ;;  %v5112_v33 = vpack.i.b16 %v1019_v10, %v1304_v19  ;;  %v5113_v34 = vpack.i.b16 %v1020_v15, %v1306_v24  ;;  %v5076_v24 = vld.sshfl [vmem:[%s5451_s5 + $0x1b0] sm:$0x5 pattern:$0x75316420] }
  0x81   : > { %v5114_v35 = vpack.i.b16 %v1021_v16, %v1308_v25  ;;  %v2162_v38 = vcombine.low %v2145_v21, %v2159_v28  ;;  %v2160_v39 = vcombine.low %v2138_v23, %v2152_v29  ;;  %v2163_v40 = vcombine.high %v2145_v21, %v2159_v28 }
  0x82   : > { %v2161_v41 = vcombine.high %v2138_v23, %v2152_v29  ;;  %v5115_v42 = vpack.i.b16 %v1044_v11, %v1310_v26  ;;  %v5116_v43 = vpack.i.b16 %v1051_v6, %v1312_v27  ;;  %v5117_v44 = vpack.i.b16 %v5684_v17, %v1314_v30  ;;  %v5077_v29 = vld.sshfl [vmem:[%s5451_s5 + $0x1b8] sm:$0x5 pattern:$0x75316420] }
  0x83   : > { %v2164_v45 = vcombine.low %v5110_v31, %v5111_v32  ;;  %2658 = vmatprep.mubr.bf16.mxu0 %v2162_v38  ;;  %5168 = vmatprep.mubr.msk.bf16.mxu1 %vm2514_vm0, %v2163_v40  ;;  %v2165_v48 = vcombine.low %v5112_v33, %v5113_v34  ;;  %v1053_v50 = vcombine.high %v1051_v6, %v1051_v6  ;;  %v1316_v59 = vunpack.i.h.s16 %v5684_v17 }
  0x84   : > { %v1068_v51 = vcombine.low %v5072_v36, %v5073_v37  ;;  %2659 = vmatmul.mubr.bf16.gmra.mxu0 %v2160_v39  ;;  %2795 = vmatmul.mubr.bf16.gmra.mxu1 %v2161_v41  ;;  %v2166_v56 = vcombine.low %v5114_v35, %v5115_v42  ;;  %v2167_v57 = vcombine.low %v5116_v43, %v5117_v44 }
  0x85   : > { %v2174_v58 = vrot.slane %v2164_v45, %v5484_v49  ;;  %v2181_v60 = vrot.slane %v2165_v48, %v5484_v49  ;;  %v1069_v52 = vcombine.high %v5072_v36, %v5073_v37  ;;  %v1100_v54 = vcombine.low %v5074_v46, %v5075_v47 }
  0x86   : > { %v1076_v53 = vrot.slane %v1068_v51, %v5484_v49  ;;  %v2188_v61 = vrot.slane %v2166_v56, %v5484_v49  ;;  %v2195_v55 = vrot.slane %v2167_v57, %v5484_v49  ;;  %v1101_v62 = vcombine.high %v5074_v46, %v5075_v47 }
  0x87   : > { %v1318_v63 = vunpack.i.h.s16 %v1053_v50  ;;  %v2197_v0 = vcombine.high %v2174_v58, %v2181_v60  ;;  %v2196_v1 = vcombine.low %v2174_v58, %v2181_v60  ;;  %v1083_v2 = vrot.slane %v1069_v52, %v5484_v49 }
  0x88   : > { %v1084_v3 = vcombine.high %v1076_v53, %v1076_v53  ;;  %v2199_v4 = vcombine.high %v2188_v61, %v2195_v55  ;;  %v2198_v5 = vcombine.low %v2188_v61, %v2195_v55  ;;  %v1108_v7 = vrot.slane %v1100_v54, %v5484_v49 }
  0x89   : > { %v1115_v8 = vrot.slane %v1101_v62, %v5484_v49  ;;  %v2213_v9 = vrot.slane %v2197_v0, %v5484_v49  ;;  %v2206_v10 = vrot.slane %v2196_v1, %v5484_v49  ;;  %v1085_v11 = vcombine.high %v1083_v2, %v1083_v2 }
  0x8a   : > { %v1320_v6 = vunpack.i.h.s16 %v1076_v53  ;;  %v2227_v12 = vrot.slane %v2199_v4, %v5484_v49  ;;  %v2220_v13 = vrot.slane %v2198_v5, %v5484_v49  ;;  %v1116_v14 = vcombine.high %v1108_v7, %v1108_v7 }
  0x8b   : > { %v1322_v15 = vunpack.i.h.s16 %v1083_v2  ;;  %v1324_v16 = vunpack.i.h.s16 %v1084_v3  ;;  %v1326_v17 = vunpack.i.h.s16 %v1085_v11  ;;  %v1328_v18 = vunpack.i.h.s16 %v1108_v7 }
  0x8c   : > { %v1330_v19 = vunpack.i.h.s16 %v1115_v8  ;;  %v2230_v20 = vcombine.low %v2213_v9, %v2227_v12  ;;  %v2228_v21 = vcombine.low %v2206_v10, %v2220_v13  ;;  %v2231_v22 = vcombine.high %v2213_v9, %v2227_v12 }
  0x8d   : > { %v2229_v23 = vcombine.high %v2206_v10, %v2220_v13  ;;  %v5118_v25 = vpack.i.b16 %v1053_v50, %v1316_v59  ;;  %v5119_v26 = vpack.i.b16 %v1076_v53, %v1318_v63  ;;  %v5120_v27 = vpack.i.b16 %v1083_v2, %v1320_v6 }
  0x8e   : > { %v5121_v28 = vpack.i.b16 %v1084_v3, %v1322_v15  ;;  %2666 = vmatprep.mubr.bf16.mxu0 %v2230_v20  ;;  %5169 = vmatprep.mubr.msk.bf16.mxu1 %vm2514_vm0, %v2231_v22  ;;  %v5122_v30 = vpack.i.b16 %v1085_v11, %v1324_v16  ;;  %v5123_v31 = vpack.i.b16 %v1108_v7, %v1326_v17  ;;  %v1332_v33 = vunpack.i.h.s16 %v1116_v14 }
  0x8f   : > { %v5124_v32 = vpack.i.b16 %v1115_v8, %v1328_v18  ;;  %2667 = vmatmul.mubr.bf16.gmra.mxu0 %v2228_v21  ;;  %2803 = vmatmul.mubr.bf16.gmra.mxu1 %v2229_v23  ;;  %v5125_v34 = vpack.i.b16 %v1116_v14, %v1330_v19  ;;  %v2232_v35 = vcombine.low %v5118_v25, %v5119_v26  ;;  %v5172_v21 = vld [vmem:[%s6701_s2] ss:$0 sm:$0xff] }
  0x90   : > { %v2233_v36 = vcombine.low %v5120_v27, %v5121_v28  ;;  %v2234_v37 = vcombine.low %v5122_v30, %v5123_v31  ;;  %v1117_v38 = vcombine.high %v1115_v8, %v1115_v8  ;;  %v1132_v39 = vcombine.low %v5076_v24, %v5077_v29 }
  0x91   : > { %v2235_v40 = vcombine.low %v5124_v32, %v5125_v34  ;;  %v2242_v41 = vrot.slane %v2232_v35, %v5484_v49  ;;  %v4407_v29 = vrot.slane %v5172_v21, %v5484_v49  ;;  %v4400_v30 = vcombine.high %v5172_v21, %v5172_v21 }
  0x92   : > { %v2249_v42 = vrot.slane %v2233_v36, %v5484_v49  ;;  %v2256_v43 = vrot.slane %v2234_v37, %v5484_v49  ;;  %v1139_v44 = vrot.slane %v1132_v39, %v5484_v49  ;;  %v1334_v45 = vunpack.i.h.s16 %v1117_v38 }
  0x93   : > { %v5126_v46 = vpack.i.b16 %v1117_v38, %v1332_v33  ;;  %v2263_v47 = vrot.slane %v2235_v40, %v5484_v49  ;;  %v4415_v40 = vcombine.high %v4407_v29, %v4407_v29 }
  0x94   : > { %v2265_v48 = vcombine.high %v2242_v41, %v2249_v42  ;;  %v2264_v50 = vcombine.low %v2242_v41, %v2249_v42  ;;  %v5127_v51 = vpack.i.b16 %v1139_v44, %v1334_v45  ;;  %v4414_v41 = vrot.slane %v4400_v30, %v5484_v49 }
  0x95   : > { %v2267_v56 = vcombine.high %v2256_v43, %v2263_v47  ;;  %v2266_v58 = vcombine.low %v2256_v43, %v2263_v47  ;;  %v5735_v44 = vrot.slane %v4407_v29, %v5484_v49 }
  0x96   : > { %v2281_v57 = vrot.slane %v2265_v48, %v5484_v49  ;;  %v2274_v59 = vrot.slane %v2264_v50, %v5484_v49  ;;  %v2300_v60 = vcombine.low %v5126_v46, %v5127_v51 }
  0x97   : > { %v2295_v52 = vrot.slane %v2267_v56, %v5484_v49  ;;  %v2288_v53 = vrot.slane %v2266_v58, %v5484_v49 }
  0x98   : > { %v2307_v54 = vrot.slane %v2300_v60, %v5484_v49  ;;  %v5742_v60 = vrot.slane %v4415_v40, %v5484_v49 }
  0x99   : > { %v2298_v61 = vcombine.low %v2281_v57, %v2295_v52  ;;  %v2296_v55 = vcombine.low %v2274_v59, %v2288_v53  ;;  %v2299_v62 = vcombine.high %v2281_v57, %v2295_v52  ;;  %v2297_v63 = vcombine.high %v2274_v59, %v2288_v53 }
  0x9a   : > { %v2308_v0 = vcombine.high %v2307_v54, %v2307_v54  ;;  %v2315_v2 = vrot.slane %v2307_v54, %v5484_v49  ;;  %v4416_v52 = vcombine.high %v4414_v41, %v4414_v41 }
  0x9b   : > { %2674 = vmatprep.mubr.bf16.mxu0 %v2298_v61  ;;  %5170 = vmatprep.mubr.msk.bf16.mxu1 %vm2514_vm0, %v2299_v62 }
  0x9c   : > { %2675 = vmatmul.mubr.bf16.gmra.mxu0 %v2296_v55  ;;  %2811 = vmatmul.mubr.bf16.gmra.mxu1 %v2297_v63  ;;  %v2322_v1 = vrot.slane %v2308_v0, %v5484_v49  ;;  %v2323_v4 = vcombine.high %v2315_v2, %v2315_v2  ;;  %v5747_v55 = vcombine.high %v5735_v44, %v5735_v44 }
  0x9e   : > { %v2324_v3 = vcombine.high %v2322_v1, %v2322_v1  ;;  %2682 = vmatprep.mubr.bf16.mxu0 %v2322_v1 }
  0xa0   : > { %5171 = vmatprep.mubr.msk.bf16.mxu1 %vm2514_vm0, %v2324_v3 }
  0xa4   : > { %2683 = vmatmul.mubr.bf16.gmra.mxu0 %v2315_v2  ;;  %2819 = vmatmul.mubr.bf16.gmra.mxu1 %v2323_v4 }
  0xf5   : > { %v5222_v5 = vpop.f32.mrf.mxu0  ;;  %v2724_v7 = vpop.f32.mrf.mxu1 }
  0xf7   : > { %v5223_v8 = vpop.f32.mrf.mxu0  ;;  %v2726_v9 = vpop.f32.mrf.mxu1 }
  0xf8   : > { %v5224_v10 = vadd.f32 %v5223_v8, %v5222_v5 }
  0xf9   : > { %v5225_v11 = vpop.f32.mrf.mxu0  ;;  %v2727_v6 = vpop.f32.mrf.mxu1 }
  0xfa   : > { %v2725_v12 = vadd.f32 %v5224_v10, %v2724_v7  ;;  %v5766_v10 = vcombine.high %v5742_v60, %v5742_v60 }
  0xfb   : > { %v5226_v13 = vpop.f32.mrf.mxu0  ;;  %v2729_v14 = vpop.f32.mrf.mxu1 }
  0xfc   : > { %v5227_v15 = vadd.f32 %v5226_v13, %v5225_v11  ;;  %v2851_v25 = vcombine.high %v2725_v12, %v2725_v12  ;;  %v2858_v34 = vrot.slane %v2725_v12, %v5484_v49  ;;  %v5769_v11 = vrot.slane %v4414_v41, %v5484_v49 }
  0xfd   : > { %v5228_v16 = vpop.f32.mrf.mxu0  ;;  %v2732_v17 = vpop.f32.mrf.mxu1 }
  0xfe   : > { %v2728_v18 = vadd.f32 %v5227_v15, %v2727_v6  ;;  %v2865_v35 = vrot.slane %v2851_v25, %v5484_v49  ;;  %v2866_v48 = vcombine.high %v2858_v34, %v2858_v34  ;;  %v5750_v62 = vrot.slane %v2858_v34, %v5484_v49 }
  0xff   : > { %v5229_v19 = vpop.f32.mrf.mxu0  ;;  %v2734_v20 = vpop.f32.mrf.mxu1  ;;  %v5772_v6 = vrot.slane %v4416_v52, %v5484_v49 }
 0x100   : > { %v5230_v22 = vadd.f32 %v5229_v19, %v5228_v16  ;;  %v2900_v36 = vcombine.high %v2728_v18, %v2728_v18  ;;  %v2907_v42 = vrot.slane %v2728_v18, %v5484_v49  ;;  %v2867_v50 = vcombine.high %v2865_v35, %v2865_v35 }
 0x101   : > { %v5231_v23 = vpop.f32.mrf.mxu0  ;;  %v2735_v24 = vpop.f32.mrf.mxu1  ;;  %v5753_v63 = vrot.slane %v2865_v35, %v5484_v49  ;;  %v5757_v2 = vrot.slane %v2866_v48, %v5484_v49  ;;  %v2896_v16 = vcombine.high %v5750_v62, %v5750_v62 }
 0x102   : > { %v2733_v26 = vadd.f32 %v5230_v22, %v2732_v17  ;;  %v2914_v51 = vrot.slane %v2900_v36, %v5484_v49  ;;  %v2915_v53 = vcombine.high %v2907_v42, %v2907_v42  ;;  %v5760_v3 = vrot.slane %v2867_v50, %v5484_v49 }
 0x103   : > { %v5232_v27 = vpop.f32.mrf.mxu0  ;;  %v2737_v28 = vpop.f32.mrf.mxu1  ;;  %v5775_v12 = vrot.slane %v2907_v42, %v5484_v49  ;;  %v2897_v17 = vcombine.high %v5753_v63, %v5753_v63  ;;  %v2898_v22 = vcombine.high %v5757_v2, %v5757_v2 }
 0x104   : > { %v5233_v31 = vadd.f32 %v5232_v27, %v5231_v23  ;;  %v2949_v43 = vcombine.high %v2733_v26, %v2733_v26  ;;  %v2956_v56 = vrot.slane %v2733_v26, %v5484_v49  ;;  %v2916_v4 = vcombine.high %v2914_v51, %v2914_v51 }
 0x105   : > { %v5234_v32 = vpop.f32.mrf.mxu0  ;;  %v2740_v33 = vpop.f32.mrf.mxu1  ;;  %v5778_v13 = vrot.slane %v2914_v51, %v5484_v49  ;;  %v5781_v14 = vrot.slane %v2915_v53, %v5484_v49  ;;  %v2899_v25 = vcombine.high %v5760_v3, %v5760_v3 }
 0x106   : > { %v2736_v37 = vadd.f32 %v5233_v31, %v2735_v24  ;;  %v2963_v54 = vrot.slane %v2949_v43, %v5484_v49  ;;  %v2964_v7 = vcombine.high %v2956_v56, %v2956_v56  ;;  %v5791_v23 = vrot.slane %v2916_v4, %v5484_v49 }
 0x107   : > { %v5235_v38 = vpop.f32.mrf.mxu0  ;;  %v2742_v39 = vpop.f32.mrf.mxu1  ;;  %v5794_v24 = vrot.slane %v2956_v56, %v5484_v49  ;;  %v2947_v34 = vcombine.high %v5781_v14, %v5781_v14 }
 0x108   : > { %v5236_v45 = vadd.f32 %v5235_v38, %v5234_v32  ;;  %v2998_v0 = vcombine.high %v2736_v37, %v2736_v37  ;;  %v3005_v1 = vrot.slane %v2736_v37, %v5484_v49  ;;  %v2965_v15 = vcombine.high %v2963_v54, %v2963_v54 }
 0x109   : > { %v5237_v46 = vpop.f32.mrf.mxu0  ;;  %v2743_v47 = vpop.f32.mrf.mxu1  ;;  %6742 = vst [vmem:[#allocation2_spill] sm:$0xff] %v5794_v24  ;;  %v5799_v26 = vrot.slane %v2963_v54, %v5484_v49  ;;  %v5802_v27 = vrot.slane %v2964_v7, %v5484_v49  ;;  %v2945_v32 = vcombine.high %v5775_v12, %v5775_v12 }
 0x10a   : > { %v5739_v57 = vadd.f32 %v5236_v45, %v2740_v33  ;;  %v3012_v18 = vrot.slane %v2998_v0, %v5484_v49  ;;  %v3013_v19 = vcombine.high %v3005_v1, %v3005_v1  ;;  %v5805_v28 = vrot.slane %v3005_v1, %v5484_v49 }
 0x10b   : > { %v5238_v58 = vpop.f32.mrf.mxu0  ;;  %v2745_v59 = vpop.f32.mrf.mxu1  ;;  %6743 = vst [vmem:[#allocation3_spill] sm:$0xff] %v5799_v26  ;;  %v2946_v33 = vcombine.high %v5778_v13, %v5778_v13  ;;  %v5814_v35 = vrot.slane %v2965_v15, %v5484_v49 }
 0x10c   : > { %v5239_v61 = vadd.f32 %v5238_v58, %v5237_v46  ;;  %6744 = vst [vmem:[#allocation4_spill] sm:$0xff] %v5805_v28  ;;  %v3014_v36 = vcombine.high %v3012_v18, %v3012_v18  ;;  %v5817_v37 = vrot.slane %v3012_v18, %v5484_v49  ;;  %v5820_v38 = vrot.slane %v3013_v19, %v5484_v49 }
 0x10d   : > { %v5240_v8 = vpop.f32.mrf.mxu0  ;;  %v2748_v9 = vpop.f32.mrf.mxu1  ;;  %v3047_v39 = vcombine.high %v5739_v57, %v5739_v57  ;;  %v2948_v46 = vcombine.high %v5791_v23, %v5791_v23  ;;  %v5836_v51 = vrot.slane %v5739_v57, %v5484_v49 }
 0x10e   : > { %v5762_v5 = vadd.f32 %v5239_v61, %v2743_v47  ;;  %6745 = vst [vmem:[#allocation5_spill] sm:$0xff] %v5817_v37  ;;  %v5842_v53 = vrot.slane %v3014_v36, %v5484_v49 }
 0x10f   : > { %v5241_v20 = vpop.f32.mrf.mxu0  ;;  %v2750_v21 = vpop.f32.mrf.mxu1  ;;  %v5849_v0 = vrot.slane %v3047_v39, %v5484_v49 }
 0x110   : > { %v5242_v29 = vadd.f32 %v5241_v20, %v5240_v8  ;;  %v3062_v8 = vcombine.high %v5836_v51, %v5836_v51  ;;  %v3096_v15 = vcombine.high %v5762_v5, %v5762_v5  ;;  %v5872_v36 = vrot.slane %v5762_v5, %v5484_v49 }
 0x111   : > { %v5243_v30 = vpop.f32.mrf.mxu0  ;;  %v2751_v31 = vpop.f32.mrf.mxu1 }
 0x112   : > { %v2749_v43 = vadd.f32 %v5242_v29, %v2748_v9  ;;  %v5859_v9 = vrot.slane %v5836_v51, %v5484_v49 }
 0x113   : > { %v5244_v40 = vpop.f32.mrf.mxu0  ;;  %v2753_v41 = vpop.f32.mrf.mxu1 }
 0x114   : > { %v5245_v45 = vadd.f32 %v5244_v40, %v5243_v30  ;;  %v3145_v56 = vcombine.high %v2749_v43, %v2749_v43  ;;  %v3152_v58 = vrot.slane %v2749_v43, %v5484_v49  ;;  %6747 = vst [vmem:[#allocation7_spill] sm:$0xff] %v5859_v9 }
 0x115   : > { %v5246_v19 = vpop.f32.mrf.mxu0  ;;  %v2756_v20 = vpop.f32.mrf.mxu1 }
 0x116   : > { %v2752_v59 = vadd.f32 %v5245_v45, %v2751_v31  ;;  %v3159_v57 = vrot.slane %v3145_v56, %v5484_v49  ;;  %v3160_v1 = vcombine.high %v3152_v58, %v3152_v58  ;;  %v5853_v4 = vrot.slane %v3152_v58, %v5484_v49 }
 0x117   : > { %v5247_v43 = vpop.f32.mrf.mxu0  ;;  %v2758_v45 = vpop.f32.mrf.mxu1 }
 0x118   : > { %6746 = vst [vmem:[#allocation6_spill] sm:$0xff] %v5853_v4  ;;  %v3194_v7 = vcombine.high %v2752_v59, %v2752_v59  ;;  %v3201_v18 = vrot.slane %v2752_v59, %v5484_v49  ;;  %v3161_v21 = vcombine.high %v3159_v57, %v3159_v57  ;;  %v3175_v29 = vrot.slane %v3159_v57, %v5484_v49 }
 0x119   : > { %v5866_v30 = vrot.slane %v3160_v1, %v5484_v49  ;;  %v3190_v31 = vcombine.high %v5853_v4, %v5853_v4  ;;  %v2759_v45 = vpop.f32.mrf.mxu1 }
 0x11a   : > { %v3208_v39 = vrot.slane %v3194_v7, %v5484_v49  ;;  %v3209_v40 = vcombine.high %v3201_v18, %v3201_v18  ;;  %v3217_v41 = vrot.slane %v3201_v18, %v5484_v49  ;;  %v5877_v51 = vrot.slane %v3161_v21, %v5484_v49  ;;  %v5249_v18 = vpop.f32.mrf.mxu0 }
 0x11b   : > { %v3191_v56 = vcombine.high %v3175_v29, %v3175_v29  ;;  %v3192_v58 = vcombine.high %v5866_v30, %v5866_v30  ;;  %v5884_v5 = vmax.f32 %v5757_v2, %v3190_v31  ;;  %v5886_v57 = vmax.f32 %v2898_v22, %v3175_v29  ;;  %v2761_v50 = vpop.f32.mrf.mxu1 }
 0x11c   : > { %v3210_v1 = vcombine.high %v3208_v39, %v3208_v39  ;;  %v3224_v7 = vrot.slane %v3208_v39, %v5484_v49  ;;  %v3193_v21 = vcombine.high %v5877_v51, %v5877_v51  ;;  %v5899_v2 = vrot.slane %v3209_v40, %v5484_v49  ;;  %v5250_v47 = vpop.f32.mrf.mxu0 }
 0x11d   : > { %v5894_v54 = vmax.f32 %v2896_v16, %v3192_v58  ;;  %v3239_v29 = vcombine.high %v3217_v41, %v3217_v41  ;;  %v5907_v39 = vmax.f32 %v2899_v25, %v3217_v41  ;;  %v5251_v41 = vadd.f32 %v5250_v47, %v5249_v18 }
 0x11e   : > { %v5902_v22 = vrot.slane %v3210_v1, %v5484_v49  ;;  %v3240_v31 = vcombine.high %v3224_v7, %v3224_v7  ;;  %v3241_v16 = vcombine.high %v5899_v2, %v5899_v2  ;;  %v5916_v40 = vmax.f32 %v2947_v34, %v3224_v7 }
 0x11f   : > { %v5248_v1 = vadd.f32 %v5247_v43, %v5246_v19  ;;  %v5921_v25 = vmax.f32 %v5781_v14, %v3239_v29  ;;  %v5931_v34 = vmax.f32 %v5760_v3, %v3191_v56  ;;  %v5936_v19 = vmax.f32 %v2897_v17, %v3193_v21  ;;  %v2764_v21 = vpop.f32.mrf.mxu1 }
 0x120   : > { %v3242_v59 = vcombine.high %v5902_v22, %v5902_v22  ;;  %v5928_v58 = vmax.f32 %v2945_v32, %v3241_v16  ;;  %v2760_v14 = vadd.f32 %v5251_v41, %v2759_v45  ;;  %v5941_v47 = vmax.f32 %v5791_v23, %v3240_v31 }
 0x121   : > { %v2757_v61 = vadd.f32 %v5248_v1, %v2756_v20  ;;  %v5952_v20 = vrot.slane %v5849_v0, %v5484_v49  ;;  %v5956_v7 = vrot.slane %v3062_v8, %v5484_v49  ;;  %v5959_v18 = vrot.slane %v3096_v15, %v5484_v49  ;;  %v2766_v50 = vpop.f32.mrf.mxu1 }
 0x122   : > { %6748 = vst [vmem:[#allocation8_spill] sm:$0xff] %v5941_v47  ;;  %v5946_v32 = vmax.f32 %v2946_v33, %v3242_v59  ;;  %v3292_v45 = vcombine.high %v2760_v14, %v2760_v14  ;;  %v3299_v33 = vrot.slane %v2760_v14, %v5484_v49  ;;  %v5252_v59 = vpop.f32.mrf.mxu0  ;;  %v6760_v23 = vcombine.high %v5794_v24, %v5794_v24 }
 0x123   : > { %6750 = vst [vmem:[#allocation10_spill] sm:$0xff] %v5952_v20  ;;  %v3243_v17 = vcombine.high %v2757_v61, %v2757_v61  ;;  %v3250_v56 = vrot.slane %v2757_v61, %v5484_v49  ;;  %v5968_v61 = vrot.slane %v5872_v36, %v5484_v49  ;;  %v2767_v50 = vpop.f32.mrf.mxu1 }
 0x124   : > { %6749 = vst [vmem:[#allocation9_spill] sm:$0xff] %v5946_v32  ;;  %v3306_v8 = vrot.slane %v3292_v45, %v5484_v49  ;;  %v3307_v15 = vcombine.high %v3299_v33, %v3299_v33  ;;  %v3315_v41 = vrot.slane %v3299_v33, %v5484_v49  ;;  %v5253_v14 = vpop.f32.mrf.mxu0 }
 0x125   : > { %v3257_v31 = vrot.slane %v3243_v17, %v5484_v49  ;;  %v3258_v16 = vcombine.high %v3250_v56, %v3250_v56  ;;  %v3266_v1 = vrot.slane %v3250_v56, %v5484_v49  ;;  %6751 = vst [vmem:[#allocation11_spill] sm:$0xff] %v5968_v61 }
 0x126   : > { %v3308_v52 = vcombine.high %v3306_v8, %v3306_v8  ;;  %v3322_v45 = vrot.slane %v3306_v8, %v5484_v49  ;;  %v5983_v42 = vrot.slane %v3307_v15, %v5484_v49  ;;  %v5255_v33 = vpop.f32.mrf.mxu0 }
 0x127   : > { %v3259_v43 = vcombine.high %v3257_v31, %v3257_v31  ;;  %v3273_v3 = vrot.slane %v3257_v31, %v5484_v49  ;;  %v5974_v29 = vrot.slane %v3258_v16, %v5484_v49  ;;  %v3288_v17 = vcombine.high %v3266_v1, %v3266_v1 }
 0x128   : > { %v5979_v56 = vmax.f32 %v2948_v46, %v3266_v1  ;;  %6754 = vst [vmem:[#allocation14_spill] sm:$0xff] %v5983_v42  ;;  %v6757_v1 = vcombine.high %v5802_v27, %v5802_v27  ;;  %v6001_v15 = vrot.slane %v3308_v52, %v5484_v49  ;;  %v5256_v4 = vpop.f32.mrf.mxu0 }
 0x129   : > { %6752 = vst [vmem:[#allocation12_spill] sm:$0xff] %v5974_v29  ;;  %v5986_v48 = vrot.slane %v3259_v43, %v5484_v49  ;;  %v3289_v31 = vcombine.high %v3273_v3, %v3273_v3  ;;  %v3290_v16 = vcombine.high %v5974_v29, %v5974_v29  ;;  %v5993_v46 = vmax.f32 %v5802_v27, %v3288_v17 }
 0x12a   : > { %6753 = vst [vmem:[#allocation13_spill] sm:$0xff] %v5979_v56  ;;  %v5998_v8 = vmax.f32 %v6757_v1, %v3273_v3  ;;  %6759 = vst [vmem:[#allocation18_spill] sm:$0xff] %v6001_v15  ;;  %v3337_v43 = vcombine.high %v3315_v41, %v3315_v41  ;;  %v2769_v56 = vpop.f32.mrf.mxu1  ;;  %v3338_v27 = vcombine.high %v3322_v45, %v3322_v45 }
 0x12b   : > { %6755 = vst [vmem:[#allocation15_spill] sm:$0xff] %v5986_v48  ;;  %6756 = vst [vmem:[#allocation16_spill] sm:$0xff] %v5993_v46  ;;  %v3291_v32 = vcombine.high %v5986_v48, %v5986_v48  ;;  %v6008_v29 = vmax.f32 %v6760_v23, %v3290_v16  ;;  %v3339_v3 = vcombine.high %v5983_v42, %v5983_v42  ;;  %v5258_v16 = vpop.f32.mrf.mxu0 }
 0x12c   : > { %6758 = vst [vmem:[#allocation17_spill] sm:$0xff] %v5998_v8  ;;  %v3340_v52 = vcombine.high %v6001_v15, %v6001_v15  ;;  %v6762_v56 = vcombine.high %v5814_v35, %v5814_v35  ;;  %v2772_v23 = vpop.f32.mrf.mxu1  ;;  %v6765_v17 = vcombine.high %v5820_v38, %v5820_v38  ;;  %v5254_v46 = vadd.f32 %v5253_v14, %v5252_v59 }
 0x12d   : > { %6761 = vst [vmem:[#allocation19_spill] sm:$0xff] %v6008_v29  ;;  %v6024_v29 = vmax.f32 %v5820_v38, %v3337_v43  ;;  %v5257_v8 = vadd.f32 %v5256_v4, %v5255_v33  ;;  %v5259_v42 = vpop.f32.mrf.mxu0  ;;  %v6039_v43 = vmax.f32 %v5814_v35, %v3289_v31  ;;  %v6770_v38 = vcombine.high %v5799_v26, %v5799_v26 }
 0x12e   : > { %v6019_v1 = vmax.f32 %v6762_v56, %v3315_v41  ;;  %v6029_v48 = vmax.f32 %v6765_v17, %v3322_v45  ;;  %v6767_v41 = vcombine.high %v5805_v28, %v5805_v28  ;;  %v2765_v17 = vadd.f32 %v5254_v46, %v2764_v21 }
 0x12f   : > { %6764 = vst [vmem:[#allocation21_spill] sm:$0xff] %v6024_v29  ;;  %6769 = vst [vmem:[#allocation24_spill] sm:$0xff] %v6039_v43  ;;  %v6044_v45 = vmax.f32 %v6770_v38, %v3291_v32  ;;  %v6047_v59 = vmax.f32 %v5842_v53, %v3338_v27  ;;  %v6773_v14 = vcombine.high %v5817_v37, %v5817_v37  ;;  %v5261_v33 = vpop.f32.mrf.mxu0 }
 0x130   : > { %6763 = vst [vmem:[#allocation20_spill] sm:$0xff] %v6019_v1  ;;  %6766 = vst [vmem:[#allocation22_spill] sm:$0xff] %v6029_v48  ;;  %v6036_v56 = vmax.f32 %v6767_v41, %v3339_v3  ;;  %v2774_v1 = vpop.f32.mrf.mxu1  ;;  %v5260_v48 = vadd.f32 %v5259_v42, %v5258_v16  ;;  %v6775_v35 = vcombine.high %v5849_v0, %v5849_v0 }
 0x131   : > { %6771 = vst [vmem:[#allocation25_spill] sm:$0xff] %v6044_v45  ;;  %6772 = vst [vmem:[#allocation26_spill] sm:$0xff] %v6047_v59  ;;  %v6052_v3 = vmax.f32 %v6773_v14, %v3340_v52  ;;  %v3092_v32 = vcombine.high %v5859_v9, %v5859_v9  ;;  %v3094_v42 = vcombine.high %v5956_v7, %v5956_v7  ;;  %v5262_v38 = vpop.f32.mrf.mxu0 }
 0x132   : > { %6768 = vst [vmem:[#allocation23_spill] sm:$0xff] %v6036_v56  ;;  %v6058_v4 = vrot.slane %v6775_v35, %v5484_v49  ;;  %v2768_v21 = vadd.f32 %v5257_v8, %v2767_v50  ;;  %v6064_v31 = vpop.f32.mrf.mxu1  ;;  %v3112_v46 = vcombine.high %v5959_v18, %v5959_v18  ;;  %v6070_v27 = vrot.slane %v5959_v18, %v5484_v49 }
 0x133   : > { %6774 = vst [vmem:[#allocation27_spill] sm:$0xff] %v6052_v3  ;;  %v3341_v0 = vcombine.high %v2765_v17, %v2765_v17  ;;  %v3348_v52 = vrot.slane %v2765_v17, %v5484_v49  ;;  %v6777_v1 = vcombine.high %v5872_v36, %v5872_v36  ;;  %v2773_v8 = vadd.f32 %v5260_v48, %v2772_v23 }
 0x134   : > { %6776 = vst [vmem:[#allocation28_spill] sm:$0xff] %v6070_v27  ;;  %v3390_v41 = vcombine.high %v2768_v21, %v2768_v21  ;;  %v3397_v50 = vrot.slane %v2768_v21, %v5484_v49  ;;  %v2777_v14 = vpop.f32.mrf.mxu1  ;;  %v3141_v35 = vcombine.high %v5968_v61, %v5968_v61  ;;  %v3095_v17 = vcombine.high %v6058_v4, %v6058_v4 }
 0x135   : > { %v3133_v16 = vrot.slane %v6777_v1, %v5484_v49  ;;  %v3355_v18 = vrot.slane %v3341_v0, %v5484_v49  ;;  %v3356_v24 = vcombine.high %v3348_v52, %v3348_v52  ;;  %v3364_v3 = vrot.slane %v3348_v52, %v5484_v49  ;;  %v5264_v0 = vpop.f32.mrf.mxu0 }
 0x136   : > { %v3404_v36 = vrot.slane %v3390_v41, %v5484_v49  ;;  %v3405_v1 = vcombine.high %v3397_v50, %v3397_v50  ;;  %v3413_v59 = vrot.slane %v3397_v50, %v5484_v49  ;;  %v2780_v15 = vpop.f32.mrf.mxu1  ;;  %v6779_v52 = vcombine.high %v5842_v53, %v5842_v53 }
 0x137   : > { %v3357_v21 = vcombine.high %v3355_v18, %v3355_v18  ;;  %v6087_v48 = vrot.slane %v3355_v18, %v5484_v49  ;;  %v6090_v23 = vrot.slane %v3356_v24, %v5484_v49  ;;  %v3386_v14 = vcombine.high %v3364_v3, %v3364_v3  ;;  %v5265_v53 = vpop.f32.mrf.mxu0 }
 0x138   : > { %v6095_v37 = vmax.f32 %v6779_v52, %v3364_v3  ;;  %v3406_v56 = vcombine.high %v3404_v36, %v3404_v36  ;;  %v6098_v41 = vrot.slane %v3405_v1, %v5484_v49  ;;  %v3439_v50 = vcombine.high %v2773_v8, %v2773_v8  ;;  %v2782_v3 = vpop.f32.mrf.mxu1 }
 0x139   : > { %6778 = vst [vmem:[#allocation29_spill] sm:$0xff] %v6090_v23  ;;  %v6101_v29 = vrot.slane %v3357_v21, %v5484_v49  ;;  %v3388_v24 = vcombine.high %v6090_v23, %v6090_v23  ;;  %v6108_v28 = vrot.slane %v3404_v36, %v5484_v49  ;;  %v6111_v52 = vmax.f32 %v5956_v7, %v3386_v14  ;;  %v5267_v3 = vpop.f32.mrf.mxu0 }
 0x13a   : > { %6780 = vst [vmem:[#allocation30_spill] sm:$0xff] %v6095_v37  ;;  %6781 = vst [vmem:[#allocation31_spill] sm:$0xff] %v6098_v41  ;;  %v6114_v1 = vmax.f32 %v3094_v42, %v6087_v48  ;;  %v6117_v21 = vrot.slane %v3406_v56, %v5484_v49  ;;  %v3435_v37 = vcombine.high %v3413_v59, %v3413_v59  ;;  %v2783_v23 = vpop.f32.mrf.mxu1 }
 0x13b   : > { %6782 = vst [vmem:[#allocation32_spill] sm:$0xff] %v6101_v29  ;;  %6783 = vst [vmem:[#allocation33_spill] sm:$0xff] %v6111_v52  ;;  %v6120_v45 = vrot.slane %v3112_v46, %v5484_v49  ;;  %v3143_v43 = vcombine.high %v3133_v16, %v3133_v16  ;;  %v6122_v18 = vmax.f32 %v3092_v32, %v3388_v24  ;;  %v5268_v36 = vpop.f32.mrf.mxu0 }
 0x13c   : > { %6784 = vst [vmem:[#allocation34_spill] sm:$0xff] %v6114_v1  ;;  %6785 = vst [vmem:[#allocation35_spill] sm:$0xff] %v6117_v21  ;;  %v3437_v7 = vcombine.high %v6098_v41, %v6098_v41  ;;  %v6128_v42 = vmax.f32 %v3095_v17, %v3413_v59  ;;  %v3446_v14 = vrot.slane %v2773_v8, %v5484_v49  ;;  %v2785_v1 = vpop.f32.mrf.mxu1 }
 0x13d   : > { %6786 = vst [vmem:[#allocation36_spill] sm:$0xff] %v6120_v45  ;;  %6787 = vst [vmem:[#allocation37_spill] sm:$0xff] %v6122_v18  ;;  %v6133_v46 = vmax.f32 %v3133_v16, %v3435_v37  ;;  %v6136_v32 = vmax.f32 %v3143_v43, %v6108_v28  ;;  %v6142_v9 = vcombine.high %v5769_v11, %v5769_v11  ;;  %v5270_v24 = vpop.f32.mrf.mxu0 }
 0x13e   : > { %6788 = vst [vmem:[#allocation38_spill] sm:$0xff] %v6128_v42  ;;  %v6144_v59 = vmax.f32 %v3141_v35, %v3437_v7  ;;  %v3453_v17 = vrot.slane %v3439_v50, %v5484_v49  ;;  %v5263_v56 = vadd.f32 %v5262_v38, %v5261_v33  ;;  %v6149_v37 = vcombine.high %v5772_v6, %v5772_v6 }
 0x13f   : > { %6789 = vst [vmem:[#allocation39_spill] sm:$0xff] %v6133_v46  ;;  %6790 = vst [vmem:[#allocation40_spill] sm:$0xff] %v6136_v32  ;;  %v5266_v8 = vadd.f32 %v5265_v53, %v5264_v0  ;;  %v5269_v1 = vadd.f32 %v5268_v36, %v5267_v3  ;;  %v2788_v32 = vpop.f32.mrf.mxu1  ;;  %v3454_v38 = vcombine.high %v3446_v14, %v3446_v14  ;;  %v5271_v53 = vpop.f32.mrf.mxu0 }
 0x140   : > { %6791 = vst [vmem:[#allocation41_spill] sm:$0xff] %v6144_v59  ;;  %v2776_v50 = vadd.f32 %v5263_v56, %v6064_v31  ;;  %v3389_v7 = vcombine.high %v6101_v29, %v6101_v29  ;;  %v3436_v43 = vcombine.high %v6108_v28, %v6108_v28  ;;  %v3455_v3 = vcombine.high %v3453_v17, %v3453_v17 }
 0x141   : > { %v2781_v16 = vadd.f32 %v5266_v8, %v2780_v15  ;;  %v2784_v0 = vadd.f32 %v5269_v1, %v2783_v23  ;;  %v2790_v36 = vpop.f32.mrf.mxu1  ;;  %v6165_v59 = vrot.slane %v3446_v14, %v5484_v49  ;;  %v6169_v46 = vrot.slane %v3453_v17, %v5484_v49  ;;  %v5273_v8 = vpop.f32.mrf.mxu0 }
 0x142   : > { %v3488_v35 = vcombine.high %v2776_v50, %v2776_v50  ;;  %v3495_v33 = vrot.slane %v2776_v50, %v5484_v49  ;;  %v6173_v28 = vrot.slane %v3454_v38, %v5484_v49 }
 0x143   : > { %6792 = vst [vmem:[#allocation42_spill] sm:$0xff] %v6165_v59  ;;  %v3537_v31 = vcombine.high %v2781_v16, %v2781_v16  ;;  %v3544_v56 = vrot.slane %v2781_v16, %v5484_v49  ;;  %v3586_v41 = vcombine.high %v2784_v0, %v2784_v0  ;;  %v2791_v61 = vpop.f32.mrf.mxu1  ;;  %v3593_v14 = vrot.slane %v2784_v0, %v5484_v49 }
 0x144   : > { %6793 = vst [vmem:[#allocation43_spill] sm:$0xff] %v6173_v28  ;;  %v3502_v15 = vrot.slane %v3488_v35, %v5484_v49  ;;  %v3503_v23 = vcombine.high %v3495_v33, %v3495_v33  ;;  %v6178_v1 = vrot.slane %v3495_v33, %v5484_v49  ;;  %v5272_v35 = vadd.f32 %v5271_v53, %v5270_v24  ;;  %v5274_v53 = vpop.f32.mrf.mxu0 }
 0x145   : > { %v3551_v17 = vrot.slane %v3537_v31, %v5484_v49  ;;  %v3552_v50 = vcombine.high %v3544_v56, %v3544_v56  ;;  %v3600_v36 = vrot.slane %v3586_v41, %v5484_v49  ;;  %v2793_v16 = vpop.f32.mrf.mxu1  ;;  %v6186_v38 = vrot.slane %v3544_v56, %v5484_v49 }
 0x146   : > { %v3504_v42 = vcombine.high %v3502_v15, %v3502_v15  ;;  %v6183_v29 = vrot.slane %v3502_v15, %v5484_v49  ;;  %v3438_v0 = vcombine.high %v6117_v21, %v6117_v21  ;;  %v6191_v33 = vrot.slane %v3503_v23, %v5484_v49 }
 0x147   : > { %v3553_v18 = vcombine.high %v3551_v17, %v3551_v17  ;;  %v6194_v31 = vrot.slane %v3551_v17, %v5484_v49  ;;  %v6197_v41 = vrot.slane %v3455_v3, %v5484_v49  ;;  %v6204_v24 = vrot.slane %v3552_v50, %v5484_v49 }
 0x148   : > { %v3601_v16 = vcombine.high %v3593_v14, %v3593_v14  ;;  %v3602_v21 = vcombine.high %v3600_v36, %v3600_v36  ;;  %v6211_v3 = vrot.slane %v3504_v42, %v5484_v49  ;;  %v2789_v50 = vadd.f32 %v5272_v35, %v2788_v32 }
 0x149   : > { %6794 = vst [vmem:[#allocation44_spill] sm:$0xff] %v6194_v31  ;;  %v6220_v23 = vrot.slane %v3553_v18, %v5484_v49  ;;  %v5275_v26 = vadd.f32 %v5274_v53, %v5273_v8  ;;  %v6227_v47 = vrot.slane %v3593_v14, %v5484_v49  ;;  %v6230_v15 = vrot.slane %v3600_v36, %v5484_v49  ;;  %v5276_v8 = vpop.f32.mrf.mxu0  ;;  %v2796_v53 = vpop.f32.mrf.mxu1 }
 0x14a   : > { %v3635_v32 = vcombine.high %v2789_v50, %v2789_v50  ;;  %v6233_v35 = vrot.slane %v3601_v16, %v5484_v49  ;;  %v6236_v18 = vrot.slane %v3602_v21, %v5484_v49  ;;  %v3642_v56 = vrot.slane %v2789_v50, %v5484_v49 }
 0x14b   : > { %v2792_v17 = vadd.f32 %v5275_v26, %v2791_v61  ;;  %v6795_v14 = vcombine.high %v6087_v48, %v6087_v48  ;;  %v6797_v16 = vcombine.high %v5952_v20, %v5952_v20  ;;  %v6252_v21 = vmax.f32 %v6120_v45, %v3436_v43  ;;  %v5277_v31 = vpop.f32.mrf.mxu0 }
 0x14c   : > { %v3649_v42 = vrot.slane %v3635_v32, %v5484_v49  ;;  %v3650_v50 = vcombine.high %v3642_v56, %v3642_v56  ;;  %v2798_v32 = vpop.f32.mrf.mxu1  ;;  %v6800_v43 = vcombine.high %v6070_v27, %v6070_v27 }
 0x14d   : > { %v6244_v36 = vmax.f32 %v6058_v4, %v6795_v14  ;;  %v6249_v52 = vmax.f32 %v6797_v16, %v3389_v7  ;;  %6799 = vst [vmem:[#allocation47_spill] sm:$0xff] %v6252_v21  ;;  %v3684_v26 = vcombine.high %v2792_v17, %v2792_v17  ;;  %v3691_v61 = vrot.slane %v2792_v17, %v5484_v49  ;;  %v5279_v48 = vpop.f32.mrf.mxu0 }
 0x14e   : > { %v5278_v14 = vadd.f32 %v5277_v31, %v5276_v8  ;;  %v6264_v16 = vmax.f32 %v6800_v43, %v3438_v0  ;;  %v3651_v21 = vcombine.high %v3649_v42, %v3649_v42  ;;  %v6267_v17 = vrot.slane %v3642_v56, %v5484_v49 }
 0x14f   : > { %6796 = vst [vmem:[#allocation45_spill] sm:$0xff] %v6244_v36  ;;  %6798 = vst [vmem:[#allocation46_spill] sm:$0xff] %v6249_v52  ;;  %v3698_v32 = vrot.slane %v3684_v26, %v5484_v49  ;;  %v3699_v45 = vcombine.high %v3691_v61, %v3691_v61  ;;  %v2799_v52 = vpop.f32.mrf.mxu1  ;;  %v6275_v4 = vrot.slane %v3649_v42, %v5484_v49 }
 0x150   : > { %6801 = vst [vmem:[#allocation48_spill] sm:$0xff] %v6264_v16  ;;  %6802 = vst [vmem:[#allocation49_spill] sm:$0xff] %v6267_v17  ;;  %v2797_v0 = vadd.f32 %v5278_v14, %v2796_v53  ;;  %v6278_v43 = vrot.slane %v3650_v50, %v5484_v49  ;;  %v6281_v7 = vrot.slane %v3691_v61, %v5484_v49  ;;  %v5280_v16 = vpop.f32.mrf.mxu0 }
 0x151   : > { %6803 = vst [vmem:[#allocation50_spill] sm:$0xff] %v6275_v4  ;;  %v3700_v56 = vcombine.high %v3698_v32, %v3698_v32  ;;  %v6284_v26 = vrot.slane %v3698_v32, %v5484_v49  ;;  %v2801_v27 = vpop.f32.mrf.mxu1  ;;  %v6287_v31 = vrot.slane %v3699_v45, %v5484_v49  ;;  %v5281_v36 = vadd.f32 %v5280_v16, %v5279_v48 }
 0x152   : > { %6804 = vst [vmem:[#allocation51_spill] sm:$0xff] %v6278_v43  ;;  %6805 = vst [vmem:[#allocation52_spill] sm:$0xff] %v6281_v7  ;;  %v3733_v8 = vcombine.high %v2797_v0, %v2797_v0  ;;  %v3740_v42 = vrot.slane %v2797_v0, %v5484_v49  ;;  %v6291_v53 = vrot.slane %v3651_v21, %v5484_v49 }
 0x153   : > { %6806 = vst [vmem:[#allocation53_spill] sm:$0xff] %v6284_v26  ;;  %6807 = vst [vmem:[#allocation54_spill] sm:$0xff] %v6287_v31  ;;  %v2800_v0 = vadd.f32 %v5281_v36, %v2799_v52  ;;  %v6305_v48 = vrot.slane %v3700_v56, %v5484_v49  ;;  %v5282_v36 = vpop.f32.mrf.mxu0  ;;  %v6317_v21 = vpop.f32.mrf.mxu1  ;;  %v6815_v43 = vmax.f32 %v5753_v63, %v5877_v51 }
 0x154   : > { %6808 = vst [vmem:[#allocation55_spill] sm:$0xff] %v6291_v53  ;;  %v3747_v27 = vrot.slane %v3733_v8, %v5484_v49  ;;  %v3748_v32 = vcombine.high %v3740_v42, %v3740_v42  ;;  %v6320_v56 = vrot.slane %v3740_v42, %v5484_v49 }
 0x155   : > { %v3782_v61 = vcombine.high %v2800_v0, %v2800_v0  ;;  %v3789_v16 = vrot.slane %v2800_v0, %v5484_v49  ;;  %v5283_v7 = vpop.f32.mrf.mxu0  ;;  %v2806_v20 = vpop.f32.mrf.mxu1 }
 0x156   : > { %v3749_v45 = vcombine.high %v3747_v27, %v3747_v27  ;;  %v3763_v8 = vrot.slane %v3747_v27, %v5484_v49  ;;  %v6315_v52 = vrot.slane %v3748_v32, %v5484_v49  ;;  %6810 = vst [vmem:[#allocation57_spill] sm:$0xff] %v6320_v56  ;;  %v6811_v32 = vcombine.high %v6173_v28, %v6173_v28 }
 0x157   : > { %v3796_v42 = vrot.slane %v3782_v61, %v5484_v49  ;;  %v3797_v56 = vcombine.high %v3789_v16, %v3789_v16  ;;  %v3805_v0 = vrot.slane %v3789_v16, %v5484_v49  ;;  %v6333_v4 = vadd.f32 %v5283_v7, %v5282_v36  ;;  %v6340_v28 = vpop.f32.mrf.mxu1  ;;  %v6345_v7 = vpop.f32.mrf.mxu0 }
 0x158   : > { %6809 = vst [vmem:[#allocation56_spill] sm:$0xff] %v6315_v52  ;;  %v3777_v14 = vrot.slane %v3749_v45, %v5484_v49  ;;  %v3779_v26 = vcombine.high %v3763_v8, %v3763_v8  ;;  %v3780_v27 = vcombine.high %v6315_v52, %v6315_v52  ;;  %v4297_v31 = vmax.f32 %v6811_v32, %v3763_v8 }
 0x159   : > { %v6812_v45 = vcombine.high %v6165_v59, %v6165_v59  ;;  %v3798_v8 = vcombine.high %v3796_v42, %v3796_v42  ;;  %v3812_v61 = vrot.slane %v3796_v42, %v5484_v49  ;;  %v3819_v16 = vrot.slane %v3797_v56, %v5484_v49 }
 0x15a   : > { %v3781_v50 = vcombine.high %v3777_v14, %v3777_v14  ;;  %v4298_v52 = vmax.f32 %v6169_v46, %v3777_v14  ;;  %v4299_v17 = vmax.f32 %v6197_v41, %v3779_v26  ;;  %v4346_v20 = vmax.f32 %v5884_v5, %v4297_v31  ;;  %v2809_v5 = vpop.f32.mrf.mxu1 }
 0x15b   : > { %v4296_v53 = vmax.f32 %v6812_v45, %v3780_v27  ;;  %v6813_v36 = vcombine.high %v6169_v46, %v6169_v46  ;;  %v6814_v14 = vmax.f32 %v5750_v62, %v5866_v30  ;;  %v3826_v42 = vrot.slane %v3798_v8, %v5484_v49 }
 0x15c   : > { %v4347_v26 = vmax.f32 %v5894_v54, %v4298_v52  ;;  %v4348_v45 = vmax.f32 %v5886_v57, %v4299_v17  ;;  %v4458_v31 = vadd.f32 %v5742_v60, %v4346_v20  ;;  %v3827_v56 = vcombine.high %v3805_v0, %v3805_v0  ;;  %v5286_v20 = vpop.f32.mrf.mxu0 }
 0x15d   : > { %v4300_v32 = vmax.f32 %v6813_v36, %v3781_v50  ;;  %v4345_v27 = vmax.f32 %v6814_v14, %v4296_v53  ;;  %v3828_v59 = vcombine.high %v3812_v61, %v3812_v61  ;;  %v3829_v53 = vcombine.high %v3819_v16, %v3819_v16 }
 0x15e   : > { %v4459_v62 = vadd.f32 %v5747_v55, %v4347_v26  ;;  %v4460_v30 = vadd.f32 %v5766_v10, %v4348_v45  ;;  %v4507_v54 = vmax.f32 %v4458_v31, 0.0  ;;  %v3830_v57 = vcombine.high %v3826_v42, %v3826_v42 }
 0x15f   : > { %v4349_v46 = vmax.f32 %v6815_v43, %v4300_v32  ;;  %v4457_v50 = vadd.f32 %v5735_v44, %v4345_v27  ;;  %v6816_v17 = vcombine.high %v6197_v41, %v6197_v41  ;;  %v4302_v63 = vmax.f32 %v6178_v1, %v3819_v16 }
 0x160   : > { %v4508_v36 = vmax.f32 %v4459_v62, 0.0  ;;  %v4509_v14 = vmax.f32 %v4460_v30, 0.0  ;;  %v4303_v51 = vmax.f32 %v6191_v33, %v3827_v56  ;;  %v6817_v43 = vcombine.high %v6178_v1, %v6178_v1  ;;  %v5288_v62 = vpop.f32.mrf.mxu0 }
 0x161   : > { %v4301_v52 = vmax.f32 %v6816_v17, %v3805_v0  ;;  %v4506_v8 = vmax.f32 %v4457_v50, 0.0  ;;  %v6818_v27 = vcombine.high %v6191_v33, %v6191_v33  ;;  %v4306_v45 = vmax.f32 %v6183_v29, %v3826_v42  ;;  %v6385_v42 = vpop.f32.mrf.mxu1 }
 0x162   : > { %v4304_v32 = vmax.f32 %v6817_v43, %v3829_v53  ;;  %v4605_v0 = vcombine.low %v4508_v36, %v4509_v14  ;;  %v4307_v5 = vmax.f32 %v6211_v3, %v3828_v59  ;;  %v6819_v31 = vcombine.high %v6183_v29, %v6183_v29  ;;  %v5289_v53 = vpop.f32.mrf.mxu0 }
 0x163   : > { %v4305_v26 = vmax.f32 %v6818_v27, %v3812_v61  ;;  %v4604_v41 = vcombine.low %v4506_v8, %v4507_v54  ;;  %v4350_v56 = vmax.f32 %v5931_v34, %v4301_v52  ;;  %v4351_v50 = vmax.f32 %v5936_v19, %v4302_v63 }
 0x164   : > { %v4308_v16 = vmax.f32 %v6819_v31, %v3830_v57  ;;  %v4352_v1 = vmax.f32 %v5907_v39, %v4303_v51  ;;  %v6820_v33 = vmax.f32 %v5775_v12, %v5899_v2  ;;  %v4621_v59 = vrot.slane %v4605_v0, %v5484_v49  ;;  %v2814_v57 = vpop.f32.mrf.mxu1  ;;  %v6403_v36 = vpop.f32.mrf.mxu0 }
 0x165   : > { %v4614_v30 = vrot.slane %v4604_v41, %v5484_v49  ;;  %v4354_v29 = vmax.f32 %v5921_v25, %v4305_v26  ;;  %v4355_v54 = vmax.f32 %v5928_v58, %v4306_v45  ;;  %v4356_v34 = vmax.f32 %v5916_v40, %v4307_v5 }
 0x166   : > { %v4353_v61 = vmax.f32 %v6820_v33, %v4304_v32  ;;  %v6821_v39 = vmax.f32 %v5778_v13, %v5902_v22  ;;  %v4461_v12 = vadd.f32 %v5769_v11, %v4349_v46  ;;  %v4462_v2 = vadd.f32 %v5772_v6, %v4350_v56  ;;  %v6405_v46 = vpop.f32.mrf.mxu1  ;;  %v6409_v41 = vpop.f32.mrf.mxu0 }
 0x167   : > { %v4636_v17 = vcombine.low %v4614_v30, %v4621_v59  ;;  %v4463_v52 = vadd.f32 %v6142_v9, %v4351_v50  ;;  %v4464_v8 = vadd.f32 %v6149_v37, %v4352_v1  ;;  %v4466_v58 = vadd.f32 %v5742_v60, %v4354_v29 }
 0x168   : > { %v4357_v19 = vmax.f32 %v6821_v39, %v4308_v16  ;;  %v4465_v25 = vadd.f32 %v5735_v44, %v4353_v61  ;;  %v4467_v40 = vadd.f32 %v5747_v55, %v4355_v54  ;;  %v4468_v13 = vadd.f32 %v5766_v10, %v4356_v34  ;;  %v2817_v0 = vpop.f32.mrf.mxu1  ;;  %v6418_v30 = vpop.f32.mrf.mxu0 }
 0x169   : > { %v4510_v22 = vmax.f32 %v4461_v12, 0.0  ;;  %v4511_v14 = vmax.f32 %v4462_v2, 0.0  ;;  %v4512_v63 = vmax.f32 %v4463_v52, 0.0  ;;  %v4513_v51 = vmax.f32 %v4464_v8, 0.0 }
 0x16a   : > { %v3732_v43 = vcombine.high %v6305_v48, %v6305_v48  ;;  %v4514_v32 = vmax.f32 %v4465_v25, 0.0  ;;  %v4515_v27 = vmax.f32 %v4466_v58, 0.0  ;;  %v4516_v26 = vmax.f32 %v4467_v40, 0.0  ;;  %v6420_v59 = vpop.f32.mrf.mxu1 }
 0x16b   : > { %v4517_v45 = vmax.f32 %v4468_v13, 0.0  ;;  %v4644_v5 = vrot.slane %v4636_v17, %v5484_v49  ;;  %v4606_v31 = vcombine.low %v4510_v22, %v4511_v14  ;;  %v4607_v16 = vcombine.low %v4512_v63, %v4513_v51 }
 0x16c   : > { %v2805_v56 = vadd.f32 %v6333_v4, %v6317_v21  ;;  %v4653_v50 = vcombine.low %v4514_v32, %v4515_v27  ;;  %v6415_v33 = vadd.f32 %v5769_v11, %v4357_v19  ;;  %v5287_v61 = vadd.f32 %v5286_v20, %v6345_v7  ;;  %v6430_v7 = vpop.f32.mrf.mxu0  ;;  %v2822_v20 = vpop.f32.mrf.mxu1 }
 0x16d   : > { %v4654_v1 = vcombine.low %v4516_v26, %v4517_v45  ;;  %v4628_v29 = vrot.slane %v4606_v31, %v5484_v49  ;;  %v4635_v54 = vrot.slane %v4607_v16, %v5484_v49  ;;  %v6428_v12 = vadd.f32 %v5289_v53, %v5288_v62  ;;  %v6827_v20 = vld [vmem:[#allocation9_spill] sm:$0xff] }
 0x16e   : > { %v3831_v34 = vcombine.high %v2805_v56, %v2805_v56  ;;  %v3838_v39 = vrot.slane %v2805_v56, %v5484_v49  ;;  %v4663_v4 = vrot.slane %v4653_v50, %v5484_v49  ;;  %v2808_v19 = vadd.f32 %v5287_v61, %v6340_v28  ;;  %v5297_v13 = vpop.f32.mrf.mxu0  ;;  %v2823_v28 = vpop.f32.mrf.mxu1 }
 0x16f   : > { %v4670_v21 = vrot.slane %v4654_v1, %v5484_v49  ;;  %v4637_v2 = vcombine.low %v4628_v29, %v4635_v54  ;;  %v4518_v25 = vmax.f32 %v6415_v33, 0.0  ;;  %v6822_v32 = vcombine.high %v6211_v3, %v6211_v3  ;;  %v6824_v3 = vld [vmem:[#allocation8_spill] sm:$0xff] }
 0x170   : > { %v3845_v57 = vrot.slane %v3831_v34, %v5484_v49  ;;  %v3846_v17 = vcombine.high %v3838_v39, %v3838_v39  ;;  %v3854_v52 = vrot.slane %v3838_v39, %v5484_v49  ;;  %v3880_v58 = vcombine.high %v2808_v19, %v2808_v19  ;;  %v5298_v45 = vpop.f32.mrf.mxu0  ;;  %v2824_v0 = vpop.f32.mrf.mxu1 }
 0x171   : > { %v6434_v8 = vcombine.low %v4663_v4, %v4670_v21  ;;  %v3887_v40 = vrot.slane %v2808_v19, %v5484_v49  ;;  %v4651_v62 = vrot.slane %v4637_v2, %v5484_v49  ;;  %v6823_v61 = vcombine.high %v6204_v24, %v6204_v24  ;;  %v6826_v4 = vld [vmem:[#allocation44_spill] sm:$0xff] }
 0x172   : > { %v3847_v53 = vcombine.high %v3845_v57, %v3845_v57  ;;  %v3861_v22 = vrot.slane %v3845_v57, %v5484_v49  ;;  %v3868_v14 = vrot.slane %v3846_v17, %v5484_v49  ;;  %v3876_v51 = vcombine.high %v3854_v52, %v3854_v52  ;;  %v6828_v57 = vld [vmem:[#allocation13_spill] sm:$0xff] }
 0x173   : > { %v4693_v63 = vrot.slane %v6434_v8, %v5484_v49  ;;  %v4309_v27 = vmax.f32 %v6822_v32, %v3854_v52  ;;  %v3894_v26 = vrot.slane %v3880_v58, %v5484_v49  ;;  %v6447_v31 = vcombine.low %v4644_v5, %v4651_v62  ;;  %v6829_v52 = vld [vmem:[#allocation16_spill] sm:$0xff]  ;;  %v6831_v62 = vld [vmem:[#allocation2_spill] sm:$0xff]  ;;  %v6835_v32 = vld [vmem:[#allocation17_spill] sm:$0xff] }
 0x174   : > { %v3875_v16 = vrot.slane %v3847_v53, %v5484_v49  ;;  %v3877_v56 = vcombine.high %v3861_v22, %v3861_v22  ;;  %v3878_v50 = vcombine.high %v3868_v14, %v3868_v14  ;;  %v4310_v1 = vmax.f32 %v6186_v38, %v3868_v14  ;;  %v6832_v53 = vld [vmem:[#allocation12_spill] sm:$0xff]  ;;  %v6834_v14 = vld [vmem:[#allocation19_spill] sm:$0xff] }
 0x175   : > { %v4311_v33 = vmax.f32 %v6204_v24, %v3876_v51  ;;  %v4313_v29 = vmax.f32 %v6823_v61, %v3861_v22  ;;  %v4358_v54 = vmax.f32 %v6824_v3, %v4309_v27  ;;  %v6825_v39 = vcombine.high %v6186_v38, %v6186_v38 }
 0x176   : > { %v3879_v34 = vcombine.high %v3875_v16, %v3875_v16  ;;  %v4314_v21 = vmax.f32 %v6826_v4, %v3875_v16  ;;  %v4315_v19 = vmax.f32 %v6220_v23, %v3877_v56  ;;  %v4359_v2 = vmax.f32 %v6827_v20, %v4310_v1  ;;  %v6837_v1 = vld [vmem:[#allocation15_spill] sm:$0xff] }
 0x177   : > { %v4312_v5 = vmax.f32 %v6825_v39, %v3878_v50  ;;  %v4360_v17 = vmax.f32 %v6828_v57, %v4311_v33  ;;  %v4362_v58 = vmax.f32 %v6829_v52, %v4313_v29  ;;  %v4470_v24 = vadd.f32 %v5772_v6, %v4358_v54  ;;  %v6836_v50 = vld [vmem:[#allocation3_spill] sm:$0xff] }
 0x178   : > { %v6830_v13 = vcombine.high %v6826_v4, %v6826_v4  ;;  %v6833_v38 = vmax.f32 %v6831_v62, %v6832_v53  ;;  %v4363_v51 = vmax.f32 %v6834_v14, %v4314_v21  ;;  %v4364_v27 = vmax.f32 %v6835_v32, %v4315_v19 }
 0x179   : > { %v4471_v45 = vadd.f32 %v6142_v9, %v4359_v2  ;;  %v4472_v0 = vadd.f32 %v6149_v37, %v4360_v17  ;;  %v4474_v16 = vadd.f32 %v5742_v60, %v4362_v58  ;;  %v4519_v56 = vmax.f32 %v4470_v24, 0.0 }
 0x17a   : > { %v4316_v28 = vmax.f32 %v6830_v13, %v3879_v34  ;;  %v4361_v22 = vmax.f32 %v6833_v38, %v4312_v5  ;;  %v6838_v33 = vmax.f32 %v6836_v50, %v6837_v1  ;;  %v4475_v3 = vadd.f32 %v5747_v55, %v4363_v51 }
 0x17b   : > { %v4476_v54 = vadd.f32 %v5766_v10, %v4364_v27  ;;  %v4520_v34 = vmax.f32 %v4471_v45, 0.0  ;;  %v4521_v39 = vmax.f32 %v4472_v0, 0.0  ;;  %v4523_v5 = vmax.f32 %v4474_v16, 0.0 }
 0x17c   : > { %v4365_v61 = vmax.f32 %v6838_v33, %v4316_v28  ;;  %v4473_v29 = vadd.f32 %v5735_v44, %v4361_v22  ;;  %v4655_v4 = vcombine.low %v4518_v25, %v4519_v56  ;;  %v4524_v19 = vmax.f32 %v4475_v3, 0.0 }
 0x17d   : > { %v4525_v20 = vmax.f32 %v4476_v54, 0.0  ;;  %v3895_v2 = vcombine.high %v3887_v40, %v3887_v40  ;;  %v4656_v57 = vcombine.low %v4520_v34, %v4521_v39  ;;  %v3896_v52 = vcombine.high %v3894_v26, %v3894_v26 }
 0x17e   : > { %v4522_v21 = vmax.f32 %v4473_v29, 0.0  ;;  %v4677_v17 = vrot.slane %v4655_v4, %v5484_v49  ;;  %v3903_v58 = vrot.slane %v3887_v40, %v5484_v49  ;;  %v3910_v28 = vrot.slane %v3894_v26, %v5484_v49 }
 0x17f   : > { %v4703_v13 = vcombine.low %v4524_v19, %v4525_v20  ;;  %v3917_v62 = vrot.slane %v3895_v2, %v5484_v49  ;;  %v4684_v53 = vrot.slane %v4656_v57, %v5484_v49  ;;  %v3924_v25 = vrot.slane %v3896_v52, %v5484_v49  ;;  %v6846_v2 = vld [vmem:[#allocation4_spill] sm:$0xff]  ;;  %v6847_v57 = vld [vmem:[#allocation14_spill] sm:$0xff] }
 0x180   : > { %v4702_v24 = vcombine.low %v4522_v21, %v4523_v5  ;;  %v3925_v38 = vcombine.high %v3903_v58, %v3903_v58  ;;  %v6839_v22 = vcombine.high %v6220_v23, %v6220_v23  ;;  %v3926_v32 = vcombine.high %v3910_v28, %v3910_v28  ;;  %v6843_v5 = vld [vmem:[#allocation24_spill] sm:$0xff]  ;;  %v6844_v21 = vld [vmem:[#allocation25_spill] sm:$0xff] }
 0x181   : > { %v4719_v40 = vrot.slane %v4703_v13, %v5484_v49  ;;  %v3927_v27 = vcombine.high %v3917_v62, %v3917_v62  ;;  %v4686_v45 = vcombine.low %v4677_v17, %v4684_v53  ;;  %v3928_v0 = vcombine.high %v3924_v25, %v3924_v25  ;;  %v6850_v13 = vld [vmem:[#allocation23_spill] sm:$0xff] }
 0x182   : > { %v4317_v14 = vmax.f32 %v6839_v22, %v3903_v58  ;;  %v4712_v51 = vrot.slane %v4702_v24, %v5484_v49  ;;  %v4318_v26 = vmax.f32 %v6227_v47, %v3917_v62  ;;  %v4319_v16 = vmax.f32 %v6233_v35, %v3925_v38  ;;  %v6849_v24 = vld [vmem:[#allocation21_spill] sm:$0xff]  ;;  %v6851_v62 = vld [vmem:[#allocation22_spill] sm:$0xff] }
 0x183   : > { %v6840_v50 = vcombine.high %v6227_v47, %v6227_v47  ;;  %v6841_v1 = vcombine.high %v6233_v35, %v6233_v35  ;;  %v4322_v29 = vmax.f32 %v6230_v15, %v3924_v25  ;;  %v4700_v3 = vrot.slane %v4686_v45, %v5484_v49  ;;  %v6845_v47 = vld [vmem:[#allocation20_spill] sm:$0xff]  ;;  %v6852_v25 = vld [vmem:[#allocation5_spill] sm:$0xff]  ;;  %v6853_v38 = vld [vmem:[#allocation18_spill] sm:$0xff] }
 0x184   : > { %v6496_v56 = vcombine.low %v4712_v51, %v4719_v40  ;;  %v4323_v54 = vmax.f32 %v6236_v18, %v3926_v32  ;;  %v6842_v34 = vcombine.high %v6230_v15, %v6230_v15  ;;  %v4366_v4 = vmax.f32 %v6843_v5, %v4317_v14 }
 0x185   : > { %v4320_v23 = vmax.f32 %v6840_v50, %v3927_v27  ;;  %v4321_v33 = vmax.f32 %v6841_v1, %v3910_v28  ;;  %v4367_v19 = vmax.f32 %v6844_v21, %v4318_v26  ;;  %v4368_v20 = vmax.f32 %v6845_v47, %v4319_v16 }
 0x186   : > { %v4324_v39 = vmax.f32 %v6842_v34, %v3928_v0  ;;  %v6848_v35 = vmax.f32 %v6846_v2, %v6847_v57  ;;  %v2813_v52 = vadd.f32 %v6428_v12, %v6385_v42  ;;  %v4701_v58 = vcombine.low %v4693_v63, %v4700_v3 }
 0x187   : > { %v4370_v15 = vmax.f32 %v6849_v24, %v4321_v33  ;;  %v4371_v28 = vmax.f32 %v6850_v13, %v4322_v29  ;;  %v4372_v53 = vmax.f32 %v6851_v62, %v4323_v54  ;;  %v6854_v22 = vmax.f32 %v6852_v25, %v6853_v38  ;;  %v6856_v38 = vld [vmem:[#allocation51_spill] sm:$0xff] }
 0x188   : > { %v4369_v17 = vmax.f32 %v6848_v35, %v4320_v23  ;;  %v4477_v12 = vadd.f32 %v5769_v11, %v4365_v61  ;;  %v4478_v8 = vadd.f32 %v5772_v6, %v4366_v4  ;;  %v4479_v63 = vadd.f32 %v6142_v9, %v4367_v19 }
 0x189   : > { %v4373_v42 = vmax.f32 %v6854_v22, %v4324_v39  ;;  %v5192_v14 = vpack.c.bf16 %v4701_v58, %v6447_v31  ;;  %v4480_v51 = vadd.f32 %v6149_v37, %v4368_v20  ;;  %v4482_v32 = vadd.f32 %v5742_v60, %v4370_v15 }
 0x18a   : > { %v4481_v40 = vadd.f32 %v5735_v44, %v4369_v17  ;;  %v4483_v27 = vadd.f32 %v5747_v55, %v4371_v28  ;;  %v4484_v45 = vadd.f32 %v5766_v10, %v4372_v53  ;;  %v4526_v0 = vmax.f32 %v4477_v12, 0.0 }
 0x18b   : > { %v4527_v26 = vmax.f32 %v4478_v8, 0.0  ;;  %5193 = vst [vmem:[%s6527_s22] sm:$0xff] %v5192_v14   ;;  %v4528_v61 = vmax.f32 %v4479_v63, 0.0  ;;  %v4529_v16 = vmax.f32 %v4480_v51, 0.0  ;;  %v4531_v23 = vmax.f32 %v4482_v32, 0.0  ;;  %v6859_v51 = vld [vmem:[#allocation50_spill] sm:$0xff] }
 0x18c   : > { %v4530_v50 = vmax.f32 %v4481_v40, 0.0  ;;  %v4532_v1 = vmax.f32 %v4483_v27, 0.0  ;;  %v4533_v33 = vmax.f32 %v4484_v45, 0.0  ;;  %v3929_v29 = vcombine.high %v2813_v52, %v2813_v52  ;;  %v6860_v40 = vld [vmem:[#allocation55_spill] sm:$0xff] }
 0x18d   : > { %v4704_v31 = vcombine.low %v4526_v0, %v4527_v26  ;;  %v4742_v3 = vrot.slane %v6496_v56, %v5484_v49  ;;  %v4705_v54 = vcombine.low %v4528_v61, %v4529_v16  ;;  %v3936_v39 = vrot.slane %v2813_v52, %v5484_v49  ;;  %v6862_v61 = vld [vmem:[#allocation26_spill] sm:$0xff] }
 0x18e   : > { %v4751_v34 = vcombine.low %v4530_v50, %v4531_v23  ;;  %v4752_v4 = vcombine.low %v4532_v1, %v4533_v33  ;;  %v3943_v21 = vrot.slane %v3929_v29, %v5484_v49  ;;  %v4485_v19 = vadd.f32 %v5769_v11, %v4373_v42  ;;  %v6863_v50 = vld [vmem:[#allocation27_spill] sm:$0xff] }
 0x18f   : > { %v4726_v5 = vrot.slane %v4704_v31, %v5484_v49  ;;  %v4733_v47 = vrot.slane %v4705_v54, %v5484_v49  ;;  %v3944_v2 = vcombine.high %v3936_v39, %v3936_v39  ;;  %v3952_v57 = vrot.slane %v3936_v39, %v5484_v49  ;;  %v6865_v31 = vld [vmem:[#allocation30_spill] sm:$0xff]  ;;  %v6866_v54 = vld [vmem:[#allocation33_spill] sm:$0xff] }
 0x190   : > { %v4761_v20 = vrot.slane %v4751_v34, %v5484_v49  ;;  %v4768_v56 = vrot.slane %v4752_v4, %v5484_v49  ;;  %v3945_v35 = vcombine.high %v3943_v21, %v3943_v21  ;;  %v3959_v17 = vrot.slane %v3943_v21, %v5484_v49  ;;  %v6867_v39 = vld [vmem:[#allocation37_spill] sm:$0xff] }
 0x191   : > { %v5293_v52 = vadd.f32 %v6409_v41, %v6403_v36  ;;  %v4735_v58 = vcombine.low %v4726_v5, %v4733_v47  ;;  %v3966_v24 = vrot.slane %v3944_v2, %v5484_v49  ;;  %v3974_v15 = vcombine.high %v3952_v57, %v3952_v57  ;;  %v6858_v41 = vld [vmem:[#allocation49_spill] sm:$0xff]  ;;  %v6871_v47 = vld [vmem:[#allocation34_spill] sm:$0xff] }
 0x192   : > { %v6855_v13 = vcombine.high %v6236_v18, %v6236_v18  ;;  %v6559_v62 = vcombine.low %v4761_v20, %v4768_v56  ;;  %v3973_v53 = vrot.slane %v3945_v35, %v5484_v49  ;;  %v3975_v25 = vcombine.high %v3959_v17, %v3959_v17  ;;  %v6869_v4 = vld [vmem:[#allocation29_spill] sm:$0xff]  ;;  %v6872_v56 = vld [vmem:[#allocation10_spill] sm:$0xff]  ;;  %v6873_v35 = vld [vmem:[#allocation32_spill] sm:$0xff] }
 0x193   : > { %v6857_v22 = vcombine.high %v6856_v38, %v6856_v38  ;;  %v4749_v12 = vrot.slane %v4735_v58, %v5484_v49  ;;  %v3976_v36 = vcombine.high %v3966_v24, %v3966_v24  ;;  %v4326_v8 = vmax.f32 %v6858_v41, %v3966_v24 }
 0x194   : > { %v4325_v28 = vmax.f32 %v6855_v13, %v3952_v57  ;;  %v4327_v63 = vmax.f32 %v6856_v38, %v3974_v15  ;;  %v3977_v14 = vcombine.high %v3973_v53, %v3973_v53  ;;  %v4330_v18 = vmax.f32 %v6859_v51, %v3973_v53 }
 0x195   : > { %v4329_v42 = vmax.f32 %v6857_v22, %v3959_v17  ;;  %v4331_v32 = vmax.f32 %v6860_v40, %v3975_v25  ;;  %v4534_v27 = vmax.f32 %v4485_v19, 0.0  ;;  %v6570_v45 = vcombine.low %v4742_v3, %v4749_v12  ;;  %v6868_v3 = vld [vmem:[#allocation7_spill] sm:$0xff]  ;;  %v6875_v22 = vld [vmem:[#allocation57_spill] sm:$0xff] }
 0x196   : > { %v6861_v0 = vcombine.high %v6858_v41, %v6858_v41  ;;  %v4374_v16 = vmax.f32 %v6862_v61, %v4325_v28  ;;  %v4375_v23 = vmax.f32 %v6863_v50, %v4326_v8  ;;  %v6864_v1 = vcombine.high %v6859_v51, %v6859_v51 }
 0x197   : > { %v4376_v29 = vmax.f32 %v6865_v31, %v4327_v63  ;;  %v4378_v34 = vmax.f32 %v6866_v54, %v4329_v42  ;;  %v4379_v5 = vmax.f32 %v6867_v39, %v4330_v18  ;;  %v6870_v21 = vmax.f32 %v6868_v3, %v6869_v4 }
 0x198   : > { %v4328_v26 = vmax.f32 %v6861_v0, %v3976_v36  ;;  %v4332_v33 = vmax.f32 %v6864_v1, %v3977_v14  ;;  %v4380_v20 = vmax.f32 %v6871_v47, %v4331_v32  ;;  %v4486_v2 = vadd.f32 %v5772_v6, %v4374_v16 }
 0x199   : > { %v4487_v57 = vadd.f32 %v6142_v9, %v4375_v23  ;;  %v6874_v17 = vmax.f32 %v6872_v56, %v6873_v35  ;;  %v4488_v24 = vadd.f32 %v6149_v37, %v4376_v29  ;;  %v4490_v15 = vadd.f32 %v5742_v60, %v4378_v34  ;;  %v6878_v56 = vld [vmem:[#allocation54_spill] sm:$0xff] }
 0x19a   : > { %v4377_v19 = vmax.f32 %v6870_v21, %v4328_v26  ;;  %v4491_v13 = vadd.f32 %v5747_v55, %v4379_v5  ;;  %v4492_v53 = vadd.f32 %v5766_v10, %v4380_v20  ;;  %v4535_v25 = vmax.f32 %v4486_v2, 0.0  ;;  %v6877_v2 = vld [vmem:[#allocation52_spill] sm:$0xff] }
 0x19b   : > { %v4381_v58 = vmax.f32 %v6874_v17, %v4332_v33  ;;  %v4536_v38 = vmax.f32 %v4487_v57, 0.0  ;;  %v3778_v42 = vcombine.high %v6875_v22, %v6875_v22  ;;  %v4537_v12 = vmax.f32 %v4488_v24, 0.0 }
 0x19c   : > { %v4489_v28 = vadd.f32 %v5735_v44, %v4377_v19  ;;  %v4540_v36 = vmax.f32 %v4491_v13, 0.0  ;;  %v2816_v41 = vadd.f32 %v5293_v52, %v6405_v46  ;;  %v4539_v63 = vmax.f32 %v4490_v15, 0.0 }
 0x19d   : > { %v4541_v14 = vmax.f32 %v4492_v53, 0.0  ;;  %v4753_v51 = vcombine.low %v4534_v27, %v4535_v25  ;;  %v4754_v18 = vcombine.low %v4536_v38, %v4537_v12  ;;  %v5296_v26 = vadd.f32 %v6430_v7, %v6418_v30  ;;  %v6881_v53 = vld [vmem:[#allocation53_spill] sm:$0xff] }
 0x19e   : > { %v4538_v8 = vmax.f32 %v4489_v28, 0.0  ;;  %v3978_v32 = vcombine.high %v2816_v41, %v2816_v41  ;;  %v3985_v0 = vrot.slane %v2816_v41, %v5484_v49  ;;  %v4493_v23 = vadd.f32 %v5769_v11, %v4381_v58  ;;  %v6882_v12 = vld [vmem:[#allocation45_spill] sm:$0xff]  ;;  %v6883_v41 = vld [vmem:[#allocation46_spill] sm:$0xff] }
 0x19f   : > { %v4775_v61 = vrot.slane %v4753_v51, %v5484_v49  ;;  %v4801_v50 = vcombine.low %v4540_v36, %v4541_v14  ;;  %v4782_v1 = vrot.slane %v4754_v18, %v5484_v49  ;;  %v4791_v33 = vrot.slane %v6559_v62, %v5484_v49 }
 0x1a0   : > { %v4800_v16 = vcombine.low %v4538_v8, %v4539_v63  ;;  %v3992_v46 = vrot.slane %v3978_v32, %v5484_v49  ;;  %v3993_v52 = vcombine.high %v3985_v0, %v3985_v0  ;;  %v4001_v27 = vrot.slane %v3985_v0, %v5484_v49  ;;  %v6884_v63 = vld [vmem:[#allocation38_spill] sm:$0xff]  ;;  %v6886_v0 = vld [vmem:[#allocation11_spill] sm:$0xff] }
 0x1a1   : > { %v4817_v30 = vrot.slane %v4801_v50, %v5484_v49  ;;  %v2821_v7 = vadd.f32 %v5296_v26, %v6420_v59  ;;  %v4784_v29 = vcombine.low %v4775_v61, %v4782_v1  ;;  %v6876_v4 = vcombine.high %v6860_v40, %v6860_v40  ;;  %v6887_v26 = vld [vmem:[#allocation31_spill] sm:$0xff]  ;;  %v6890_v1 = vld [vmem:[#allocation41_spill] sm:$0xff] }
 0x1a2   : > { %v4810_v31 = vrot.slane %v4800_v16, %v5484_v49  ;;  %v3994_v54 = vcombine.high %v3992_v46, %v3992_v46  ;;  %v4008_v34 = vrot.slane %v3992_v46, %v5484_v49  ;;  %v4015_v39 = vrot.slane %v3993_v52, %v5484_v49  ;;  %v6889_v50 = vld [vmem:[#allocation39_spill] sm:$0xff]  ;;  %v6891_v52 = vld [vmem:[#allocation40_spill] sm:$0xff] }
 0x1a3   : > { %v4023_v3 = vcombine.high %v4001_v27, %v4001_v27  ;;  %v4333_v21 = vmax.f32 %v6876_v4, %v4001_v27  ;;  %v4542_v62 = vmax.f32 %v4493_v23, 0.0  ;;  %v4798_v19 = vrot.slane %v4784_v29, %v5484_v49 }
 0x1a4   : > { %v6615_v5 = vcombine.low %v4810_v31, %v4817_v30  ;;  %v4022_v47 = vrot.slane %v3994_v54, %v5484_v49  ;;  %v4024_v20 = vcombine.high %v4008_v34, %v4008_v34  ;;  %v4025_v59 = vcombine.high %v4015_v39, %v4015_v39  ;;  %v6893_v30 = vld [vmem:[#allocation35_spill] sm:$0xff] }
 0x1a5   : > { %v4334_v57 = vmax.f32 %v6877_v2, %v4015_v39  ;;  %v4335_v35 = vmax.f32 %v6878_v56, %v4023_v3  ;;  %v6879_v17 = vcombine.high %v6878_v56, %v6878_v56  ;;  %v4033_v24 = vrot.slane %v2821_v7, %v5484_v49 }
 0x1a6   : > { %v4799_v15 = vcombine.low %v4791_v33, %v4798_v19  ;;  %v4026_v40 = vcombine.high %v4022_v47, %v4022_v47  ;;  %v6880_v13 = vcombine.high %v6877_v2, %v6877_v2  ;;  %v4338_v25 = vmax.f32 %v6881_v53, %v4022_v47 }
 0x1a7   : > { %v4337_v58 = vmax.f32 %v6879_v17, %v4008_v34  ;;  %v4339_v38 = vmax.f32 %v6305_v48, %v4024_v20  ;;  %v4382_v36 = vmax.f32 %v6882_v12, %v4333_v21  ;;  %v4383_v8 = vmax.f32 %v6883_v41, %v4334_v57  ;;  %v6896_v12 = vld [vmem:[#allocation36_spill] sm:$0xff]  ;;  %v6900_v48 = vld [vmem:[#allocation43_spill] sm:$0xff] }
 0x1a8   : > { %v4336_v28 = vmax.f32 %v6880_v13, %v4025_v59  ;;  %v4384_v14 = vmax.f32 %v6884_v63, %v4335_v35  ;;  %v5197_v51 = vpack.c.bf16 %v4799_v15, %v6570_v45  ;;  %v6885_v18 = vcombine.high %v6881_v53, %v6881_v53  ;;  %v6892_v45 = vld [vmem:[#allocation28_spill] sm:$0xff] }
 0x1a9   : > { %v6888_v61 = vmax.f32 %v6886_v0, %v6887_v26  ;;  %v4386_v23 = vmax.f32 %v6889_v50, %v4337_v58  ;;  %v4387_v46 = vmax.f32 %v6890_v1, %v4338_v25  ;;  %v4388_v27 = vmax.f32 %v6891_v52, %v4339_v38  ;;  %v6895_v38 = vld [vmem:[#allocation42_spill] sm:$0xff]  ;;  %v6902_v26 = vld [vmem:[#allocation48_spill] sm:$0xff] }
 0x1aa   : > { %v4340_v32 = vmax.f32 %v6885_v18, %v4026_v40  ;;  %v4494_v33 = vadd.f32 %v5772_v6, %v4382_v36  ;;  %v4495_v31 = vadd.f32 %v6142_v9, %v4383_v8  ;;  %5204 = vst [vmem:[%s6527_s22 + $0x8] sm:$0xff] %v5197_v51   ;;  %v6894_v7 = vmax.f32 %v6892_v45, %v6893_v30  ;;  %v6898_v8 = vld [vmem:[#allocation56_spill] sm:$0xff] }
 0x1ab   : > { %v4385_v16 = vmax.f32 %v6888_v61, %v4336_v28  ;;  %v4496_v54 = vadd.f32 %v6149_v37, %v4384_v14  ;;  %v4498_v39 = vadd.f32 %v5742_v60, %v4386_v23  ;;  %v4499_v3 = vadd.f32 %v5747_v55, %v4387_v46  ;;  %v6899_v14 = vld [vmem:[#allocation47_spill] sm:$0xff] }
 0x1ac   : > { %v4389_v29 = vmax.f32 %v6894_v7, %v4340_v32  ;;  %v4500_v4 = vadd.f32 %v5766_v10, %v4388_v27  ;;  %v4543_v21 = vmax.f32 %v4494_v33, 0.0  ;;  %v4544_v19 = vmax.f32 %v4495_v31, 0.0 }
 0x1ad   : > { %v4497_v34 = vadd.f32 %v5735_v44, %v4385_v16  ;;  %v4545_v47 = vmax.f32 %v4496_v54, 0.0  ;;  %v4547_v59 = vmax.f32 %v4498_v39, 0.0  ;;  %v4034_v2 = vcombine.high %v4033_v24, %v4033_v24 }
 0x1ae   : > { %v4548_v57 = vmax.f32 %v4499_v3, 0.0  ;;  %v4549_v56 = vmax.f32 %v4500_v4, 0.0  ;;  %v4802_v35 = vcombine.low %v4542_v62, %v4543_v21  ;;  %v4041_v17 = vrot.slane %v4033_v24, %v5484_v49 }
 0x1af   : > { %v4546_v20 = vmax.f32 %v4497_v34, 0.0  ;;  %v4803_v58 = vcombine.low %v4544_v19, %v4545_v47  ;;  %v4048_v40 = vrot.slane %v4034_v2, %v5484_v49  ;;  %v4501_v60 = vadd.f32 %v5769_v11, %v4389_v29 }
 0x1b0   : > { %v4824_v55 = vrot.slane %v4802_v35, %v5484_v49  ;;  %v4850_v10 = vcombine.low %v4548_v57, %v4549_v56  ;;  %v4049_v13 = vcombine.high %v4041_v17, %v4041_v17  ;;  %v4341_v28 = vmax.f32 %v3732_v43, %v4041_v17  ;;  %v6901_v43 = vld [vmem:[#allocation6_spill] sm:$0xff] }
 0x1b1   : > { %v4849_v15 = vcombine.low %v4546_v20, %v4547_v59  ;;  %v4831_v53 = vrot.slane %v4803_v58, %v5484_v49  ;;  %v4050_v25 = vcombine.high %v4048_v40, %v4048_v40  ;;  %v4342_v24 = vmax.f32 %v6875_v22, %v4048_v40 }
 0x1b2   : > { %v6897_v36 = vcombine.high %v6896_v12, %v6896_v12  ;;  %v4866_v41 = vrot.slane %v4850_v10, %v5484_v49  ;;  %v4343_v63 = vmax.f32 %v6898_v8, %v4049_v13  ;;  %v4390_v51 = vmax.f32 %v6899_v14, %v4341_v28 }
 0x1b3   : > { %v4859_v62 = vrot.slane %v4849_v15, %v5484_v49  ;;  %v4295_v18 = vmax.f32 %v6901_v43, %v6900_v48  ;;  %v4833_v32 = vcombine.low %v4824_v55, %v4831_v53  ;;  %v4344_v0 = vmax.f32 %v3778_v42, %v4050_v25 }
 0x1b4   : > { %v4294_v11 = vmax.f32 %v6897_v36, %v6895_v38  ;;  %v4391_v61 = vmax.f32 %v6902_v26, %v4342_v24  ;;  %v4502_v23 = vadd.f32 %v5772_v6, %v4390_v51  ;;  %v4550_v1 = vmax.f32 %v4501_v60, 0.0 }
 0x1b5   : > { %v4881_v16 = vcombine.low %v4859_v62, %v4866_v41  ;;  %v4840_v46 = vrot.slane %v6615_v5, %v5484_v49  ;;  %v4847_v52 = vrot.slane %v4833_v32, %v5484_v49  ;;  %v4393_v27 = vmax.f32 %v4295_v18, %v4344_v0 }
 0x1b6   : > { %v4392_v50 = vmax.f32 %v4294_v11, %v4343_v63  ;;  %v4503_v33 = vadd.f32 %v6142_v9, %v4391_v61  ;;  %v4551_v45 = vmax.f32 %v4502_v23, 0.0 }
 0x1b7   : > { %v4848_v22 = vcombine.low %v4840_v46, %v4847_v52  ;;  %v4505_v42 = vadd.f32 %v5735_v44, %v4393_v27  ;;  %v4957_v44 = vld [vmem:[%s6527_s22 + $0x18] sm:$0x1]  ;;  %v4889_v4 = vrot.slane %v4881_v16, %v5484_v49 }
 0x1b8   : > { %v4504_v31 = vadd.f32 %v6149_v37, %v4392_v50  ;;  %v4552_v30 = vmax.f32 %v4503_v33, 0.0  ;;  %v4851_v29 = vcombine.low %v4550_v1, %v4551_v45 }
 0x1b9   : > { %v4554_v6 = vmax.f32 %v4505_v42, 0.0 }
 0x1ba   : > { %v4553_v7 = vmax.f32 %v4504_v31, 0.0  ;;  %v4873_v5 = vrot.slane %v4851_v29, %v5484_v49 }
 0x1bb   : > { %v4904_v34 = vrot.slane %v4554_v6, %v5484_v49 }
 0x1bc   : > { %v4852_v54 = vcombine.low %v4552_v30, %v4553_v7 }
 0x1bd   : > { %v4911_v37 = vrot.slane %v4904_v34, %v5484_v49 }
 0x1be   : > { %v4880_v9 = vrot.slane %v4852_v54, %v5484_v49 }
 0x1bf   : > { %v5188_v3 = vpack.c.bf16 %v4911_v37, %v4911_v37 }
 0x1c0   : > { %v4882_v39 = vcombine.low %v4873_v5, %v4880_v9 }
 0x1c1   : > { %v4958_v19 = vsel %vm4956_vm3, %v5188_v3, %v4957_v44 }
 0x1c2   : > { %v4896_v21 = vrot.slane %v4882_v39, %v5484_v49  ;;  %4959 = vst [vmem:[%s6527_s22 + $0x18] sm:$0x1] %v4958_v19 }
 0x1c4   : > { %v4897_v47 = vcombine.low %v4889_v4, %v4896_v21 }
 0x1c6   : > { %v5202_v20 = vpack.c.bf16 %v4897_v47, %v4848_v22 }
 0x1c8   : > { %5205 = vst [vmem:[%s6527_s22 + $0x10] sm:$0xff] %v5202_v20  }
 0x1c9 PF: > { %s13_s12 = sadd.s32 1, %s5343_s12  }
 0x1ca   : > { %p10_p4 = scmp.ge.s32.totalorder %s13_s12, 4  }
 0x1cc   :  { %12 = sbr.rel (!%p10_p4) target bundleno = 1 (0x1), region = 62 }

// kernel: cnn_forward.5
= control target key start
LH: loop header
LB: loop body
LE: loop exit
PB: predicated region body
PF: predicated region fallthrough
CT: control target
= control target key end

     0   :  { %v227_v28 = vlaneseq  ;;  %v1579_v36 = vmov 1966171168   ;;  %s1927_s0 = inlined_call_operand.vmem [shape: bf16[2,1568], index: 0, kind: input, shape index: {}]   ;;  %s1928_s1 = inlined_call_operand.vmem [shape: bf16[1568,128], index: 1, kind: input, shape index: {}]   ;;  %s1929_s2 = inlined_call_operand.vmem [shape: f32[1,128], index: 2, kind: input, shape index: {}]   ;;  %s1930_s3 = inlined_call_operand.hbm [shape: f32[2,128], index: 3, kind: output, shape index: {}]  }
   0x1   :  { %v1457_v0 = vld [vmem:[%s1928_s1 + $0x78] sm:$0xff]   ;;  %v1461_v4 = vld [vmem:[%s1928_s1 + $0x70] sm:$0xff]   ;;  %v1465_v8 = vld [vmem:[%s1928_s1 + $0x68] sm:$0xff]   ;;  %v225_v37 = vunpack.c.l.s4 %v1579_v36 }
   0x2   :  { %v1458_v1 = vld [vmem:[%s1928_s1 + $0xf8] sm:$0xff]   ;;  %1310 = vmatprep.subr.bf16.mxu0 %v1457_v0  ;;  %v1462_v5 = vld [vmem:[%s1928_s1 + $0xf0] sm:$0xff]   ;;  %v1466_v9 = vld [vmem:[%s1928_s1 + $0xe8] sm:$0xff]   ;;  %v228_v33 = vshrl.u32 %v227_v28, 7 }
   0x3   :  { %v1459_v2 = vld [vmem:[%s1928_s1 + $0x38] sm:$0xff]   ;;  %1332 = vmatprep.subr.bf16.mxu1 %v1458_v1  ;;  %v1463_v6 = vld [vmem:[%s1928_s1 + $0x30] sm:$0xff]   ;;  %v1467_v10 = vld [vmem:[%s1928_s1 + $0x28] sm:$0xff]   ;;  %v226_v40 = vunpack.c.0.s8 %v225_v37 }
   0x4   :  { %v1460_v3 = vld [vmem:[%s1928_s1 + $0xb8] sm:$0xff]   ;;  %1311 = vmatpush3.bf16.msra.mxu0 %v1459_v2  ;;  %v1464_v7 = vld [vmem:[%s1928_s1 + $0xb0] sm:$0xff]   ;;  %v1468_v11 = vld [vmem:[%s1928_s1 + $0xa8] sm:$0xff]  }
   0x5   :  { %1333 = vmatpush3.bf16.msra.mxu1 %v1460_v3  ;;  %1312 = vmatprep.subr.bf16.mxu0 %v1461_v4  ;;  %v1469_v12 = vld [vmem:[%s1928_s1 + $0x60] sm:$0xff]   ;;  %v1473_v16 = vld [vmem:[%s1928_s1 + $0x58] sm:$0xff]   ;;  %v1477_v20 = vld [vmem:[%s1928_s1 + $0x50] sm:$0xff]   ;;  %v1708_v41 = vsub.s32 %v226_v40, %v228_v33 }
   0x6   :  { %1334 = vmatprep.subr.bf16.mxu1 %v1462_v5  ;;  %v1470_v13 = vld [vmem:[%s1928_s1 + $0xe0] sm:$0xff]   ;;  %v1474_v17 = vld [vmem:[%s1928_s1 + $0xd8] sm:$0xff]   ;;  %v1478_v21 = vld [vmem:[%s1928_s1 + $0xd0] sm:$0xff]  }
   0x7   :  { %v1471_v14 = vld [vmem:[%s1928_s1 + $0x20] sm:$0xff]   ;;  %v1475_v18 = vld [vmem:[%s1928_s1 + $0x18] sm:$0xff]   ;;  %v1479_v22 = vld [vmem:[%s1928_s1 + $0x10] sm:$0xff]  }
   0x8   :  { %1313 = vmatpush3.bf16.msra.mxu0 %v1463_v6  ;;  %v1472_v15 = vld [vmem:[%s1928_s1 + $0xa0] sm:$0xff]   ;;  %v1476_v19 = vld [vmem:[%s1928_s1 + $0x98] sm:$0xff]   ;;  %v1480_v23 = vld [vmem:[%s1928_s1 + $0x90] sm:$0xff]  }
   0x9   :  { %1335 = vmatpush3.bf16.msra.mxu1 %v1464_v7  ;;  %1314 = vmatprep.subr.bf16.mxu0 %v1465_v8  ;;  %v1481_v24 = vld [vmem:[%s1928_s1 + $0x48] sm:$0xff]   ;;  %v1485_v29 = vld [vmem:[%s1928_s1 + $0x40] sm:$0xff]   ;;  %v1490_v35 = vld [vmem:[%s1928_s1 + $0x178] sm:$0xff]  }
   0xa   :  { %1336 = vmatprep.subr.bf16.mxu1 %v1466_v9  ;;  %v1482_v25 = vld [vmem:[%s1928_s1 + $0xc8] sm:$0xff]   ;;  %v1486_v30 = vld [vmem:[%s1928_s1 + $0xc0] sm:$0xff]   ;;  %v1491_v38 = vld [vmem:[%s1928_s1 + $0x1f8] sm:$0xff]  }
   0xb   :  { %v1483_v26 = vld [vmem:[%s1928_s1 + $0x8] sm:$0xff]   ;;  %v1487_v31 = vld [vmem:[%s1928_s1] sm:$0xff]   ;;  %v1492_v48 = vld [vmem:[%s1928_s1 + $0x138] sm:$0xff]  }
   0xc   :  { %1315 = vmatpush3.bf16.msra.mxu0 %v1467_v10  ;;  %v1484_v27 = vld [vmem:[%s1928_s1 + $0x88] sm:$0xff]   ;;  %v1488_v32 = vld [vmem:[%s1928_s1 + $0x80] sm:$0xff]   ;;  %v1494_v51 = vld [vmem:[%s1928_s1 + $0x170] sm:$0xff]  }
   0xd   :  { %1337 = vmatpush3.bf16.msra.mxu1 %v1468_v11  ;;  %1316 = vmatprep.subr.bf16.mxu0 %v1469_v12  ;;  %v16_v34 = vld [vmem:[%s1927_s0] sm:$0xff]  ;;  %v1493_v53 = vld [vmem:[%s1928_s1 + $0x1b8] sm:$0xff]   ;;  %v1495_v54 = vld [vmem:[%s1928_s1 + $0x1f0] sm:$0xff]  }
   0xe   :  { %1338 = vmatprep.subr.bf16.mxu1 %v1470_v13  ;;  %v223_v39 = vcombine.high %v16_v34, %v16_v34  ;;  %v230_v42 = vrot.slane %v16_v34, %v1708_v41  ;;  %v1496_v56 = vld [vmem:[%s1928_s1 + $0x130] sm:$0xff]   ;;  %v1498_v57 = vld [vmem:[%s1928_s1 + $0x168] sm:$0xff]   ;;  %v1502_v61 = vld [vmem:[%s1928_s1 + $0x160] sm:$0xff]  }
   0xf   :  { %v1497_v58 = vld [vmem:[%s1928_s1 + $0x1b0] sm:$0xff]   ;;  %v1499_v59 = vld [vmem:[%s1928_s1 + $0x1e8] sm:$0xff]   ;;  %v1503_v63 = vld [vmem:[%s1928_s1 + $0x1e0] sm:$0xff]  }
  0x10   :  { %1317 = vmatpush3.bf16.msra.mxu0 %v1471_v14  ;;  %v1712_v43 = vrot.slane %v223_v39, %v1708_v41  ;;  %v238_v44 = vcombine.high %v230_v42, %v230_v42  ;;  %v246_v45 = vrot.slane %v230_v42, %v1708_v41  ;;  %v1500_v60 = vld [vmem:[%s1928_s1 + $0x128] sm:$0xff]   ;;  %v1504_v0 = vld [vmem:[%s1928_s1 + $0x120] sm:$0xff]   ;;  %v1506_v1 = vld [vmem:[%s1928_s1 + $0x158] sm:$0xff]  }
  0x11   :  { %1339 = vmatpush3.bf16.msra.mxu1 %v1472_v15  ;;  %1318 = vmatprep.subr.bf16.mxu0 %v1473_v16  ;;  %v1501_v62 = vld [vmem:[%s1928_s1 + $0x1a8] sm:$0xff]   ;;  %v1505_v2 = vld [vmem:[%s1928_s1 + $0x1a0] sm:$0xff]   ;;  %v1507_v3 = vld [vmem:[%s1928_s1 + $0x1d8] sm:$0xff]  }
  0x12   :  { %1340 = vmatprep.subr.bf16.mxu1 %v1474_v17  ;;  %v239_v46 = vcombine.high %v1712_v43, %v1712_v43  ;;  %v260_v47 = vrot.slane %v238_v44, %v1708_v41  ;;  %v268_v50 = vcombine.high %v246_v45, %v246_v45  ;;  %v1508_v4 = vld [vmem:[%s1928_s1 + $0x118] sm:$0xff]   ;;  %v1510_v5 = vld [vmem:[%s1928_s1 + $0x150] sm:$0xff]   ;;  %v1514_v9 = vld [vmem:[%s1928_s1 + $0x148] sm:$0xff]   ;;  %v253_v17 = vrot.slane %v1712_v43, %v1708_v41 }
  0x13   :  { %v1509_v6 = vld [vmem:[%s1928_s1 + $0x198] sm:$0xff]   ;;  %v1511_v7 = vld [vmem:[%s1928_s1 + $0x1d0] sm:$0xff]   ;;  %v1515_v11 = vld [vmem:[%s1928_s1 + $0x1c8] sm:$0xff]  }
  0x14   :  { %1319 = vmatpush3.bf16.msra.mxu0 %v1475_v18  ;;  %v267_v49 = vrot.slane %v239_v46, %v1708_v41  ;;  %947 = vmatprep.mubr.bf16.mxu0 %v260_v47  ;;  %v270_v52 = vcombine.high %v260_v47, %v260_v47  ;;  %v1512_v8 = vld [vmem:[%s1928_s1 + $0x110] sm:$0xff]   ;;  %v1516_v12 = vld [vmem:[%s1928_s1 + $0x108] sm:$0xff]   ;;  %v1518_v13 = vld [vmem:[%s1928_s1 + $0x140] sm:$0xff]  }
  0x15   :  { %1341 = vmatpush3.bf16.msra.mxu1 %v1476_v19  ;;  %1320 = vmatprep.subr.bf16.mxu0 %v1477_v20  ;;  %v1513_v10 = vld [vmem:[%s1928_s1 + $0x190] sm:$0xff]   ;;  %v1517_v14 = vld [vmem:[%s1928_s1 + $0x188] sm:$0xff]   ;;  %v1519_v15 = vld [vmem:[%s1928_s1 + $0x1c0] sm:$0xff]  }
  0x16   :  { %1342 = vmatprep.subr.bf16.mxu1 %v1478_v21  ;;  %v271_v55 = vcombine.high %v267_v49, %v267_v49  ;;  %987 = vmatprep.mubr.bf16.mxu1 %v270_v52  ;;  %v1520_v16 = vld [vmem:[%s1928_s1 + $0x100] sm:$0xff]   ;;  %v1522_v18 = vld [vmem:[%s1928_s1 + $0x278] sm:$0xff]   ;;  %v1529_v28 = vld [vmem:[%s1928_s1 + $0x2b0] sm:$0xff]  }
  0x17   :  { %v1521_v19 = vld [vmem:[%s1928_s1 + $0x180] sm:$0xff]   ;;  %v1523_v20 = vld [vmem:[%s1928_s1 + $0x2f8] sm:$0xff]   ;;  %v1542_v39 = vld [vmem:[%s1928_s1 + $0x250] sm:$0xff]  }
  0x18   :  { %1321 = vmatpush3.bf16.msra.mxu0 %v1479_v22  ;;  %v1524_v21 = vld [vmem:[%s1928_s1 + $0x238] sm:$0xff]   ;;  %v269_v22 = vcombine.high %v253_v17, %v253_v17  ;;  %v1535_v33 = vld [vmem:[%s1928_s1 + $0x2e0] sm:$0xff]   ;;  %v1543_v42 = vld [vmem:[%s1928_s1 + $0x2d0] sm:$0xff]  }
  0x19   :  { %1343 = vmatpush3.bf16.msra.mxu1 %v1480_v23  ;;  %1322 = vmatprep.subr.bf16.mxu0 %v1481_v24  ;;  %v1526_v23 = vld [vmem:[%s1928_s1 + $0x270] sm:$0xff]   ;;  %v1525_v24 = vld [vmem:[%s1928_s1 + $0x2b8] sm:$0xff]   ;;  %v1536_v34 = vld [vmem:[%s1928_s1 + $0x220] sm:$0xff]  }
  0x1a   :  { %1344 = vmatprep.subr.bf16.mxu1 %v1482_v25  ;;  %v1527_v25 = vld [vmem:[%s1928_s1 + $0x2f0] sm:$0xff]   ;;  %v1537_v36 = vld [vmem:[%s1928_s1 + $0x2a0] sm:$0xff]   ;;  %v1539_v37 = vld [vmem:[%s1928_s1 + $0x2d8] sm:$0xff]  }
  0x1b   :  { %v1541_v40 = vld [vmem:[%s1928_s1 + $0x298] sm:$0xff]   ;;  %v1544_v43 = vld [vmem:[%s1928_s1 + $0x210] sm:$0xff]   ;;  %v1546_v44 = vld [vmem:[%s1928_s1 + $0x248] sm:$0xff]  }
  0x1c   :  { %1323 = vmatpush3.bf16.msra.mxu0 %v1483_v26  ;;  %v1528_v26 = vld [vmem:[%s1928_s1 + $0x230] sm:$0xff]  }
  0x1d   :  { %1345 = vmatpush3.bf16.msra.mxu1 %v1484_v27  ;;  %1324 = vmatprep.subr.bf16.mxu0 %v1485_v29  ;;  %v1530_v27 = vld [vmem:[%s1928_s1 + $0x268] sm:$0xff]   ;;  %v1545_v46 = vld [vmem:[%s1928_s1 + $0x290] sm:$0xff]  }
  0x1e   :  { %1346 = vmatprep.subr.bf16.mxu1 %v1486_v30  ;;  %v1531_v29 = vld [vmem:[%s1928_s1 + $0x2e8] sm:$0xff]  }
  0x1f   :  { %v1532_v30 = vld [vmem:[%s1928_s1 + $0x228] sm:$0xff]  }
  0x20   :  { %1325 = vmatpush3.bf16.msra.mxu0 %v1487_v31  ;;  %v1534_v31 = vld [vmem:[%s1928_s1 + $0x260] sm:$0xff]  }
  0x21   :  { %1347 = vmatpush3.bf16.msra.mxu1 %v1488_v32  ;;  %1354 = vmatprep.subr.bf16.mxu0 %v1490_v35  ;;  %v1533_v32 = vld [vmem:[%s1928_s1 + $0x2a8] sm:$0xff]   ;;  %v1538_v35 = vld [vmem:[%s1928_s1 + $0x258] sm:$0xff]  }
  0x22   :  { %1376 = vmatprep.subr.bf16.mxu1 %v1491_v38  ;;  %v1540_v38 = vld [vmem:[%s1928_s1 + $0x218] sm:$0xff]  }
  0x23   :  { %948 = vmatmul.mubr.bf16.vlgmr.msra.gmra.mxu0 %v246_v45  ;;  %v17_v45 = vld [vmem:[%s1927_s0 + $0x8] sm:$0x1f] }
  0x24   :  { %1355 = vmatpush3.bf16.msra.mxu0 %v1492_v48  ;;  %988 = vmatmul.mubr.bf16.vlgmr.msra.gmra.mxu1 %v268_v50  ;;  %v279_v47 = vrot.slane %v17_v45, %v1708_v41  ;;  %v1547_v48 = vld [vmem:[%s1928_s1 + $0x2c8] sm:$0xff]  }
  0x25   :  { %1356 = vmatprep.subr.bf16.mxu0 %v1494_v51  ;;  %1377 = vmatpush3.bf16.msra.mxu1 %v1493_v53 }
  0x26   :  { %1027 = vmatprep.mubr.bf16.mxu0 %v267_v49  ;;  %1378 = vmatprep.subr.bf16.mxu1 %v1495_v54 }
  0x27   :  { %1067 = vmatprep.mubr.bf16.mxu1 %v271_v55 }
  0x28   :  { %1357 = vmatpush3.bf16.msra.mxu0 %v1496_v56 }
  0x29   :  { %1358 = vmatprep.subr.bf16.mxu0 %v1498_v57  ;;  %1379 = vmatpush3.bf16.msra.mxu1 %v1497_v58 }
  0x2a   :  { %1380 = vmatprep.subr.bf16.mxu1 %v1499_v59 }
  0x2c   :  { %1359 = vmatpush3.bf16.msra.mxu0 %v1500_v60 }
  0x2d   :  { %1360 = vmatprep.subr.bf16.mxu0 %v1502_v61  ;;  %1381 = vmatpush3.bf16.msra.mxu1 %v1501_v62 }
  0x2e   :  { %1382 = vmatprep.subr.bf16.mxu1 %v1503_v63 }
  0x30   :  { %1361 = vmatpush3.bf16.msra.mxu0 %v1504_v0 }
  0x31   :  { %1362 = vmatprep.subr.bf16.mxu0 %v1506_v1  ;;  %1383 = vmatpush3.bf16.msra.mxu1 %v1505_v2 }
  0x32   :  { %1384 = vmatprep.subr.bf16.mxu1 %v1507_v3 }
  0x34   :  { %1363 = vmatpush3.bf16.msra.mxu0 %v1508_v4 }
  0x35   :  { %1364 = vmatprep.subr.bf16.mxu0 %v1510_v5  ;;  %1385 = vmatpush3.bf16.msra.mxu1 %v1509_v6 }
  0x36   :  { %1386 = vmatprep.subr.bf16.mxu1 %v1511_v7 }
  0x38   :  { %1365 = vmatpush3.bf16.msra.mxu0 %v1512_v8 }
  0x39   :  { %1366 = vmatprep.subr.bf16.mxu0 %v1514_v9  ;;  %1387 = vmatpush3.bf16.msra.mxu1 %v1513_v10 }
  0x3a   :  { %1388 = vmatprep.subr.bf16.mxu1 %v1515_v11 }
  0x3c   :  { %1367 = vmatpush3.bf16.msra.mxu0 %v1516_v12 }
  0x3d   :  { %1368 = vmatprep.subr.bf16.mxu0 %v1518_v13  ;;  %1389 = vmatpush3.bf16.msra.mxu1 %v1517_v14 }
  0x3e   :  { %1390 = vmatprep.subr.bf16.mxu1 %v1519_v15 }
  0x40   :  { %1369 = vmatpush3.bf16.msra.mxu0 %v1520_v16 }
  0x41   :  { %1398 = vmatprep.subr.bf16.mxu0 %v1522_v18  ;;  %1391 = vmatpush3.bf16.msra.mxu1 %v1521_v19 }
  0x42   :  { %1420 = vmatprep.subr.bf16.mxu1 %v1523_v20 }
  0x43   :  { %1028 = vmatmul.mubr.bf16.vlgmr.msra.gmra.mxu0 %v253_v17 }
  0x44   :  { %1399 = vmatpush3.bf16.msra.mxu0 %v1524_v21  ;;  %1068 = vmatmul.mubr.bf16.vlgmr.msra.gmra.mxu1 %v269_v22 }
  0x45   :  { %1400 = vmatprep.subr.bf16.mxu0 %v1526_v23  ;;  %1421 = vmatpush3.bf16.msra.mxu1 %v1525_v24 }
  0x46   :  { %1422 = vmatprep.subr.bf16.mxu1 %v1527_v25 }
  0x48   :  { %1401 = vmatpush3.bf16.msra.mxu0 %v1528_v26 }
  0x49   :  { %1402 = vmatprep.subr.bf16.mxu0 %v1530_v27  ;;  %1423 = vmatpush3.bf16.msra.mxu1 %v1529_v28 }
  0x4a   :  { %1424 = vmatprep.subr.bf16.mxu1 %v1531_v29 }
  0x4c   :  { %1403 = vmatpush3.bf16.msra.mxu0 %v1532_v30 }
  0x4d   :  { %1404 = vmatprep.subr.bf16.mxu0 %v1534_v31  ;;  %1425 = vmatpush3.bf16.msra.mxu1 %v1533_v32 }
  0x4e   :  { %1426 = vmatprep.subr.bf16.mxu1 %v1535_v33 }
  0x50   :  { %1405 = vmatpush3.bf16.msra.mxu0 %v1536_v34 }
  0x51   :  { %1406 = vmatprep.subr.bf16.mxu0 %v1538_v35  ;;  %1427 = vmatpush3.bf16.msra.mxu1 %v1537_v36 }
  0x52   :  { %1428 = vmatprep.subr.bf16.mxu1 %v1539_v37 }
  0x54   :  { %1407 = vmatpush3.bf16.msra.mxu0 %v1540_v38 }
  0x55   :  { %1408 = vmatprep.subr.bf16.mxu0 %v1542_v39  ;;  %1429 = vmatpush3.bf16.msra.mxu1 %v1541_v40 }
  0x56   :  { %1430 = vmatprep.subr.bf16.mxu1 %v1543_v42 }
  0x57   :  { %8 = vsyncpa [#allocation3], 0  ;;  %v1548_v49 = vld [vmem:[%s1928_s1 + $0x208] sm:$0xff]   ;;  %v287_v50 = vcombine.high %v279_v47, %v279_v47  ;;  %v1550_v51 = vld [vmem:[%s1928_s1 + $0x240] sm:$0xff]   ;;  %v294_v57 = vrot.slane %v279_v47, %v1708_v41  ;;  %v272_v59 = vcombine.high %v17_v45, %v17_v45  ;;  %v1580_v62 = vmov 0.0   ;;  %s1582_s23 = smov [#allocation2]  }
  0x58   :  { %1409 = vmatpush3.bf16.msra.mxu0 %v1544_v43  ;;  %v1549_v52 = vld [vmem:[%s1928_s1 + $0x288] sm:$0xff]   ;;  %v1551_v54 = vld [vmem:[%s1928_s1 + $0x2c0] sm:$0xff]   ;;  %vm1581_vm0 = vmmov 0   ;;  %vm911_vm1 = vcmask 261120   ;;  %s1202_s24 = sshll.u32 %s1582_s23, 4  ;;  %s1203_s24 = int_to_ptr.vmem [resolvable:$true] %s1202_s24 }
  0x59   :  { %1410 = vmatprep.subr.bf16.mxu0 %v1546_v44  ;;  %1431 = vmatpush3.bf16.msra.mxu1 %v1545_v46  ;;  %v308_v53 = vrot.slane %v287_v50, %v1708_v41  ;;  %v1552_v55 = vld [vmem:[%s1928_s1 + $0x200] sm:$0xff]   ;;  %v1555_v60 = vld [vmem:[%s1928_s1 + $0x308] sm:$0xff]   ;;  %v309_v61 = vcombine.high %v294_v57, %v294_v57  ;;  %v286_v63 = vrot.slane %v272_v59, %v1708_v41  ;;  %p1562_p1 = scmp.lt.s32.totalorder %s1203_s24, %s1203_s24 }
  0x5a   :  { %1432 = vmatprep.subr.bf16.mxu1 %v1547_v48  ;;  %v1553_v58 = vld [vmem:[%s1928_s1 + $0x280] sm:$0xff]  }
  0x5b   :  { %1107 = vmatprep.mubr.bf16.mxu0 %v308_v53  ;;  %v310_v56 = vcombine.high %v308_v53, %v308_v53  ;;  %v1556_v0 = vld [vmem:[%s1928_s1 + $0x300] sm:$0xff]   ;;  %v301_v1 = vrot.slane %v286_v63, %v1708_v41 }
  0x5c   :  { %1411 = vmatpush3.bf16.msra.mxu0 %v1548_v49  ;;  %v1210_v18 = vld [vmem:[%s1929_s2] ss:$0 sm:$0xff]  ;;  %s1557_s2 = scalar_lea.vmem %s1203_s24, 32 }
  0x5d   :  { %1412 = vmatprep.subr.bf16.mxu0 %v1550_v51  ;;  %1433 = vmatpush3.bf16.msra.mxu1 %v1549_v52  ;;  %p1558_p0 = scmp.ne.s32.totalorder %s1203_s24, %s1557_s2  ;;  %p1563_p2 = scmp.lt.s32.totalorder %s1557_s2, %s1557_s2 }
  0x5e   :  { %1147 = vmatprep.mubr.bf16.mxu1 %v310_v56  ;;  %1434 = vmatprep.subr.bf16.mxu1 %v1551_v54 }
  0x5f   :  { %p1564_p3 = por %p1563_p2, %p1562_p1 }
  0x60   :  { %1413 = vmatpush3.bf16.msra.mxu0 %v1552_v55 }
  0x61   :  { %1445 = vmatprep.subr.bf16.mxu0 %v1580_v62  ;;  %1435 = vmatpush3.bf16.msra.mxu1 %v1553_v58  ;;  %p1565_p4 = pnand %p1564_p3, %p1558_p0 }
  0x63   :  { %1108 = vmatmul.mubr.bf16.vlgmr.msra.gmra.mxu0 %v294_v57 }
  0x64   :  { %1446 = vmatpush3.bf16.msra.mxu0 %v1555_v60  ;;  %1449 = vmatprep.mubr.msk.bf16.mxu0 %vm1581_vm0, %v1580_v62 }
  0x65   :  { %1148 = vmatmul.mubr.bf16.vlgmr.msra.gmra.mxu1 %v309_v61  ;;  %1447 = vmatprep.subr.bf16.mxu0 %v1580_v62 }
  0x68   :  { %1448 = vmatpush3.bf16.msra.mxu0 %v1556_v0 }
  0x6b   :  { %1450 = vmatmul.mubr.msk.bf16.vlgmr.msra.gmra.mxu0 %vm911_vm1, %v301_v1 }
  0xe3   :  { %v1326_v2 = vpop.f32.mrf.mxu0 }
  0xe4   :  { %v1348_v3 = vpop.f32.mrf.mxu1 }
  0xe5   :  { %v1327_v4 = vpop.f32.mrf.mxu0 }
  0xe6   :  { %v1349_v5 = vpop.f32.mrf.mxu1  ;;  %v1328_v41 = vadd.f32 %v1327_v4, %v1326_v2 }
  0xe7   :  { %v1329_v6 = vpop.f32.mrf.mxu0  ;;  %v1350_v20 = vadd.f32 %v1349_v5, %v1348_v3 }
  0xe8   :  { %v1351_v7 = vpop.f32.mrf.mxu1  ;;  %v950_v19 = vadd.f32 %v1328_v41, %v1210_v18 }
  0xe9   :  { %v1330_v8 = vpop.f32.mrf.mxu0 }
  0xea   :  { %v1352_v9 = vpop.f32.mrf.mxu1  ;;  %v990_v22 = vadd.f32 %v1350_v20, %v950_v19 }
 0x103   :  { %v1370_v10 = vpop.f32.mrf.mxu0 }
 0x104   :  { %v1392_v11 = vpop.f32.mrf.mxu1 }
 0x105   :  { %v1371_v12 = vpop.f32.mrf.mxu0 }
 0x106   :  { %v1393_v13 = vpop.f32.mrf.mxu1  ;;  %v1372_v21 = vadd.f32 %v1371_v12, %v1370_v10 }
 0x107   :  { %v1373_v14 = vpop.f32.mrf.mxu0  ;;  %v1394_v24 = vadd.f32 %v1393_v13, %v1392_v11 }
 0x108   :  { %v1395_v15 = vpop.f32.mrf.mxu1  ;;  %v1030_v23 = vadd.f32 %v1372_v21, %v990_v22 }
 0x109   :  { %v1374_v16 = vpop.f32.mrf.mxu0 }
 0x10a   :  { %v1396_v17 = vpop.f32.mrf.mxu1  ;;  %v1070_v28 = vadd.f32 %v1394_v24, %v1030_v23 }
 0x123   :  { %v1414_v25 = vpop.f32.mrf.mxu0 }
 0x125   :  { %v1436_v26 = vpop.f32.mrf.mxu1  ;;  %v1415_v27 = vpop.f32.mrf.mxu0 }
 0x126   :  { %v1416_v29 = vadd.f32 %v1415_v27, %v1414_v25 }
 0x127   :  { %v1437_v30 = vpop.f32.mrf.mxu1  ;;  %v1417_v31 = vpop.f32.mrf.mxu0 }
 0x128   :  { %v1110_v32 = vadd.f32 %v1416_v29, %v1070_v28  ;;  %v1438_v33 = vadd.f32 %v1437_v30, %v1436_v26 }
 0x129   :  { %v1439_v34 = vpop.f32.mrf.mxu1  ;;  %v1418_v35 = vpop.f32.mrf.mxu0 }
 0x12a   :  { %v1150_v36 = vadd.f32 %v1438_v33, %v1110_v32 }
 0x12b   :  { %v1440_v37 = vpop.f32.mrf.mxu1  ;;  %v1189_v38 = vpop.f32.mrf.mxu0 }
 0x12c   :  { %v1190_v39 = vadd.f32 %v1189_v38, %v1150_v36 }
 0x12d   :  { %v1451_v40 = vpop.f32.mrf.mxu0 }
 0x12e   :  { %1195 = vst [vmem:[#allocation2] sm:$0x3] %v1190_v39 }
 0x12f   :  { %v1192_v42 = vpop.f32.mrf.mxu0 }
 0x130   :  { %1568 = shalt.err (!%p1565_p4)
}
 0x131   :  { %1205 = dma.vmem_to_hbm [thread:$0]  %s1203_s24, 32, %s1930_s3, [#allocation3]   ;;  %v1452_v43 = vpop.f32.mrf.mxu0 }
 0x132   :  { %1577 = dma.done.wait [#allocation3], 32  }
 0x133   :  { %1578 = vsyncadd [#allocation3], 4294967264 }
 0x134   :  { %1209 = vsyncpa [#allocation3], 1 }

</bundles_post_ra>
